<compile_context>
chip_gen: v7x
topology: tpu7x:2x2x1
jax: 0.10.0
libtpu: 0.0.40
codegen_flags: <defaults>
</compile_context>

<pallas_src>
import math
import jax
import jax.numpy as jnp
from jax.experimental import pallas as pl
from jax.experimental.pallas import tpu as pltpu

D_MODEL = 512
D_HIDDEN = 4 * D_MODEL          # 2048
DROPOUT_P = 0.1                 # eval-mode dropout == identity


def _ffn_kernel(x_ref, w1_ref, b1_ref, w2_ref, b2_ref, o_ref):
    # x_ref:  (tm, D_MODEL)            bf16
    # w1_ref: (D_MODEL, D_HIDDEN)      bf16   b1_ref: (1, D_HIDDEN) f32
    # w2_ref: (D_HIDDEN, D_MODEL)      bf16   b2_ref: (1, D_MODEL)  f32
    # o_ref:  (tm, D_MODEL)            f32
    h = jnp.dot(x_ref[...], w1_ref[...],
                preferred_element_type=jnp.float32) + b1_ref[...]
    h = jnp.maximum(h, 0.0).astype(jnp.bfloat16)        # bias + ReLU in f32
    y = jnp.dot(h, w2_ref[...],
                preferred_element_type=jnp.float32) + b2_ref[...]
    # TODO(synk): nn.Dropout(p=0.1) training-mode masking is not implemented;
    # eval-mode semantics (identity) are used (would need pltpu.prng_seed +
    # pltpu.prng_random_bits + mask / (1-p) rescale for training parity).
    o_ref[...] = y.astype(o_ref.dtype)


def _round_up(n, m):
    return (n + m - 1) // m * m


def prepare_params(w1, b1, w2, b2):
    """One-time (outside the hot path) layout/dtype prep of the FFN params.

    Weights -> bf16 (half the HBM/VMEM traffic, 4-5x MXU throughput vs f32),
    biases -> (1, N) f32 rows for the VPU adds.
    """
    return (w1.astype(jnp.bfloat16),
            b1.reshape(1, D_HIDDEN).astype(jnp.float32),
            w2.astype(jnp.bfloat16),
            b2.reshape(1, D_MODEL).astype(jnp.float32))


def _pick_tile(M):
    # Large tiles keep the 128/256-deep MXU full and amortize the ~0.35us/step
    # pipeline overhead; keep >= 2 grid steps when M permits so v7x's second
    # TensorCore gets work via dimension_semantics=("parallel",).
    if M >= 1024:
        return 512
    if M >= 512:
        return 256
    return _round_up(M, 8)      # tiny M: single tile (multiple of 8 sublanes)


def ffn_forward(x, w1_bf, b1_2d, w2_bf, b2_2d, *, tm=None):
    """x: (B, T, D_MODEL) float32 -> (B, T, D_MODEL) float32 (eval-mode FFN).

    Params must already be prepared via prepare_params (bf16 weights,
    (1, N) f32 biases) so no per-call weight casts hit HBM.
    """
    B, T, D = x.shape
    assert D == D_MODEL
    assert w1_bf.dtype == jnp.bfloat16 and w2_bf.dtype == jnp.bfloat16
    M = B * T
    if tm is None:
        tm = _pick_tile(M)
    Mp = _round_up(M, tm)

    # bf16 operands for the MXU; cast in the wrapper so the kernel DMAs half
    # the bytes for x and does no per-tile VPU cast.
    x2 = x.reshape(M, D).astype(jnp.bfloat16)
    if Mp != M:
        # Fallback for ragged M only; aligned sizes skip this copy entirely.
        x2 = jnp.pad(x2, ((0, Mp - M), (0, 0)))

    resident = pl.Buffered(1)   # constant index_map -> no need to double-buffer

    out = pl.pallas_call(
        _ffn_kernel,
        out_shape=jax.ShapeDtypeStruct((Mp, D_MODEL), x.dtype),
        grid_spec=pltpu.PrefetchScalarGridSpec(
            num_scalar_prefetch=0,
            grid=(Mp // tm,),
            in_specs=[
                pl.BlockSpec((tm, D_MODEL), lambda i: (i, 0)),             # x rows (bf16)
                pl.BlockSpec((D_MODEL, D_HIDDEN), lambda i: (0, 0),
                             pipeline_mode=resident),                      # W1 (bf16)
                pl.BlockSpec((1, D_HIDDEN), lambda i: (0, 0),
                             pipeline_mode=resident),                      # b1 (f32)
                pl.BlockSpec((D_HIDDEN, D_MODEL), lambda i: (0, 0),
                             pipeline_mode=resident),                      # W2 (bf16)
                pl.BlockSpec((1, D_MODEL), lambda i: (0, 0),
                             pipeline_mode=resident),                      # b2 (f32)
            ],
            out_specs=pl.BlockSpec((tm, D_MODEL), lambda i: (i, 0)),
        ),
        compiler_params=pltpu.CompilerParams(
            dimension_semantics=("parallel",),   # M axis shards across TCs (v7x)
            vmem_limit_bytes=48 << 20,           # safe on v7x's 64 MiB/TC
        ),
    )(x2, w1_bf, b1_2d, w2_bf, b2_2d)

    if Mp != M:
        out = out[:M]
    return out.reshape(B, T, D_MODEL)


def init_params(key):
    """Deterministic PyTorch-Linear-style init (uniform +-1/sqrt(fan_in))."""
    k1, k2, k3, k4 = jax.random.split(key, 4)
    lim1 = 1.0 / math.sqrt(D_MODEL)
    lim2 = 1.0 / math.sqrt(D_HIDDEN)
    w1 = jax.random.uniform(k1, (D_MODEL, D_HIDDEN), jnp.float32, -lim1, lim1)
    b1 = jax.random.uniform(k2, (D_HIDDEN,), jnp.float32, -lim1, lim1)
    w2 = jax.random.uniform(k3, (D_HIDDEN, D_MODEL), jnp.float32, -lim2, lim2)
    b2 = jax.random.uniform(k4, (D_MODEL,), jnp.float32, -lim2, lim2)
    return w1, b1, w2, b2


if __name__ == "__main__":
    key = jax.random.PRNGKey(0)
    kx, kp = jax.random.split(key)

    B, T = 2, 16  # CONTEXT_LENGTH = 16
    x = jax.random.normal(kx, (B, T, D_MODEL), dtype=jnp.float32)
    w1, b1, w2, b2 = init_params(kp)

    # One-time parameter prep (bf16 weights, 2-D f32 biases) -- hoisted out of
    # the per-call hot path.
    w1_bf, b1_2d, w2_bf, b2_2d = prepare_params(w1, b1, w2, b2)

    y = jax.block_until_ready(ffn_forward(x, w1_bf, b1_2d, w2_bf, b2_2d))

    # Reference in plain JAX using the same bf16-operand / f32-accumulate
    # matmul recipe as the kernel (eval-mode dropout = identity).
    xb = x.reshape(-1, D_MODEL).astype(jnp.bfloat16)
    h_ref = jnp.maximum(
        jnp.dot(xb, w1.astype(jnp.bfloat16),
                preferred_element_type=jnp.float32) + b1, 0.0)
    ref = jnp.dot(h_ref.astype(jnp.bfloat16), w2.astype(jnp.bfloat16),
                  preferred_element_type=jnp.float32) + b2
    ref = ref.reshape(B, T, D_MODEL)

    assert y.shape == (B, T, D_MODEL)
    assert y.dtype == jnp.float32
    assert jnp.allclose(y, ref, atol=1e-2, rtol=1e-2), "mismatch vs reference"

    print("KERNEL_OK")
</pallas_src>

<mosaic_0001>
module attributes {stable_mosaic.version = 11 : i64} {
  func.func @_ffn_kernel(%arg0: i32, %arg1: memref<32x512xbf16, #tpu.memory_space<vmem>>, %arg2: memref<512x2048xbf16, #tpu.memory_space<vmem>>, %arg3: memref<1x2048xf32, #tpu.memory_space<vmem>>, %arg4: memref<2048x512xbf16, #tpu.memory_space<vmem>>, %arg5: memref<1x512xf32, #tpu.memory_space<vmem>>, %arg6: memref<32x512xf32, #tpu.memory_space<vmem>>) attributes {dimension_semantics = [#tpu.dimension_semantics<parallel>], iteration_bounds = array<i64: 1>, scalar_prefetch = 0 : i64, scratch_operands = 0 : i64, tpu.core_type = #tpu.core_type<tc>, window_params = [{transform_indices = @transform_0, window_bounds = array<i64: 32, 512>}, {pipeline_mode = #tpu.pipeline_mode<synchronous>, transform_indices = @transform_1, window_bounds = array<i64: 512, 2048>}, {pipeline_mode = #tpu.pipeline_mode<synchronous>, transform_indices = @transform_2, window_bounds = array<i64: 1, 2048>}, {pipeline_mode = #tpu.pipeline_mode<synchronous>, transform_indices = @transform_3, window_bounds = array<i64: 2048, 512>}, {pipeline_mode = #tpu.pipeline_mode<synchronous>, transform_indices = @transform_4, window_bounds = array<i64: 1, 512>}, {transform_indices = @transform_5, window_bounds = array<i64: 32, 512>}]} {
    %c0 = arith.constant 0 : index
    %c0_0 = arith.constant 0 : index
    %0 = vector.load %arg1[%c0, %c0_0] : memref<32x512xbf16, #tpu.memory_space<vmem>>, vector<32x512xbf16>
    %c0_1 = arith.constant 0 : index
    %c0_2 = arith.constant 0 : index
    %1 = vector.load %arg2[%c0_1, %c0_2] : memref<512x2048xbf16, #tpu.memory_space<vmem>>, vector<512x2048xbf16>
    %cst = arith.constant dense<0.000000e+00> : vector<32x2048xf32>
    %2 = tpu.matmul %0, %1, %cst {dimension_numbers = #tpu.dot_dimension_numbers<[1], [0], [0], [1], [0, 0, 1, 1], [], []>} : vector<32x512xbf16>, vector<512x2048xbf16>, vector<32x2048xf32> -> vector<32x2048xf32>
    %c0_3 = arith.constant 0 : index
    %c0_4 = arith.constant 0 : index
    %3 = vector.load %arg3[%c0_3, %c0_4] : memref<1x2048xf32, #tpu.memory_space<vmem>>, vector<1x2048xf32>
    %4 = vector.broadcast %3 : vector<1x2048xf32> to vector<32x2048xf32>
    %5 = arith.addf %2, %4 : vector<32x2048xf32>
    %cst_5 = arith.constant 0.000000e+00 : f32
    %6 = vector.broadcast %cst_5 : f32 to vector<32x2048xf32>
    %7 = arith.maximumf %5, %6 : vector<32x2048xf32>
    %8 = arith.truncf %7 : vector<32x2048xf32> to vector<32x2048xbf16>
    %c0_6 = arith.constant 0 : index
    %c0_7 = arith.constant 0 : index
    %9 = vector.load %arg4[%c0_6, %c0_7] : memref<2048x512xbf16, #tpu.memory_space<vmem>>, vector<2048x512xbf16>
    %cst_8 = arith.constant dense<0.000000e+00> : vector<32x512xf32>
    %10 = tpu.matmul %8, %9, %cst_8 {dimension_numbers = #tpu.dot_dimension_numbers<[1], [0], [0], [1], [0, 0, 1, 1], [], []>} : vector<32x2048xbf16>, vector<2048x512xbf16>, vector<32x512xf32> -> vector<32x512xf32>
    %c0_9 = arith.constant 0 : index
    %c0_10 = arith.constant 0 : index
    %11 = vector.load %arg5[%c0_9, %c0_10] : memref<1x512xf32, #tpu.memory_space<vmem>>, vector<1x512xf32>
    %12 = vector.broadcast %11 : vector<1x512xf32> to vector<32x512xf32>
    %13 = arith.addf %10, %12 : vector<32x512xf32>
    %c0_11 = arith.constant 0 : index
    %c0_12 = arith.constant 0 : index
    %14 = vector.load %arg6[%c0_11, %c0_12] : memref<32x512xf32, #tpu.memory_space<vmem>>, vector<32x512xf32>
    tpu.vector_store %arg6[%c0_11, %c0_12], %13 {strides = array<i32>} : memref<32x512xf32, #tpu.memory_space<vmem>>, vector<32x512xf32>,
    return
  }
  func.func @transform_0(%arg0: i32) -> (i32, i32) {
    %c0_i32 = arith.constant 0 : i32
    %c0_i32_0 = arith.constant 0 : i32
    return %arg0, %c0_i32 : i32, i32
  }
  func.func @transform_1(%arg0: i32) -> (i32, i32) {
    %c0_i32 = arith.constant 0 : i32
    %c0_i32_0 = arith.constant 0 : i32
    %c0_i32_1 = arith.constant 0 : i32
    return %c0_i32, %c0_i32_0 : i32, i32
  }
  func.func @transform_2(%arg0: i32) -> (i32, i32) {
    %c0_i32 = arith.constant 0 : i32
    %c0_i32_0 = arith.constant 0 : i32
    %c0_i32_1 = arith.constant 0 : i32
    return %c0_i32, %c0_i32_0 : i32, i32
  }
  func.func @transform_3(%arg0: i32) -> (i32, i32) {
    %c0_i32 = arith.constant 0 : i32
    %c0_i32_0 = arith.constant 0 : i32
    %c0_i32_1 = arith.constant 0 : i32
    return %c0_i32, %c0_i32_0 : i32, i32
  }
  func.func @transform_4(%arg0: i32) -> (i32, i32) {
    %c0_i32 = arith.constant 0 : i32
    %c0_i32_0 = arith.constant 0 : i32
    %c0_i32_1 = arith.constant 0 : i32
    return %c0_i32, %c0_i32_0 : i32, i32
  }
  func.func @transform_5(%arg0: i32) -> (i32, i32) {
    %c0_i32 = arith.constant 0 : i32
    %c0_i32_0 = arith.constant 0 : i32
    return %arg0, %c0_i32 : i32, i32
  }
}

</mosaic_0001>

<bundles_post_ra>
// kernel: tpu_custom_call.1
= control target key start
LH: loop header
LB: loop body
LE: loop exit
PB: predicated region body
PF: predicated region fallthrough
CT: control target
= control target key end

     0   :  { %10 = vsyncpa [#allocation3], 0  ;;  %s10933_s0 = inlined_call_operand.hbm [shape: bf16[32,512], index: 0, kind: input, shape index: {}]   ;;  %s10934_s1 = inlined_call_operand.hbm [shape: bf16[512,2048], index: 1, kind: input, shape index: {}]   ;;  %s10935_s2 = inlined_call_operand.hbm [shape: f32[1,2048], index: 2, kind: input, shape index: {}]   ;;  %s10936_s3 = inlined_call_operand.hbm [shape: bf16[2048,512], index: 3, kind: input, shape index: {}]   ;;  %s10937_s4 = inlined_call_operand.hbm [shape: f32[1,512], index: 4, kind: input, shape index: {}]   ;;  %s10938_s5 = inlined_call_operand.hbm [shape: f32[32,512], index: 5, kind: output, shape index: {}]  }
   0x1   :  { %11 = vsyncpa [#allocation6], 0 }
   0x2   :  { %12 = vsyncpa [#allocation9], 0 }
   0x3   :  { %13 = vsyncpa [#allocation4], 0  ;;  %s10447_s18 = smov [#allocation5]   ;;  %s10307_s22 = scalar_lea.hbm %s10934_s1, 65536 }
   0x4   :  { %s31_s19 = sshll.u32 %s10447_s18, 4  ;;  %p10308_p0 = scmp.ne.s32.totalorder %s10934_s1, %s10307_s22  ;;  %s32_s19 = int_to_ptr.vmem [resolvable:$true] %s31_s19 }
   0x5   :  { %p10311_p1 = scmp.lt.u32.totalorder %s10307_s22, %s10934_s1 }
   0x7   :  { %p10313_p2 = pnand %p10311_p1, %p10308_p0 }
   0x9   :  { %10316 = shalt.err (!%p10313_p2)
}
   0xa   :  { %s10317_s27 = scalar_lea.vmem %s32_s19, 65536  ;;  %p10322_p4 = scmp.lt.s32.totalorder %s32_s19, %s32_s19 }
   0xb   :  { %p10318_p3 = scmp.ne.s32.totalorder %s32_s19, %s10317_s27  ;;  %p10323_p5 = scmp.lt.s32.totalorder %s10317_s27, %s10317_s27 }
   0xd   :  { %p10324_p6 = por %p10323_p5, %p10322_p4 }
   0xf   :  { %p10325_p7 = pnand %p10324_p6, %p10318_p3 }
  0x11   :  { %10328 = shalt.err (!%p10325_p7)
}
  0x12   :  { %s10448_s28 = smov 1024   ;;  %s10449_s29 = smov 64  }
  0x13   :  { %37 = dma.hbm_to_vmem [thread:$0]  %s10934_s1, 65536, %s32_s19, [#allocation6], %s10448_s28, %s10448_s28, %s10449_s29  }
  0x14   :  { %s10450_s7 = smov [#allocation8]   ;;  %s10451_s9 = smov [#allocation2]  }
  0x15   :  { %s53_s8 = sshll.u32 %s10450_s7, 4  ;;  %s19_s10 = sshll.u32 %s10451_s9, 4  ;;  %s54_s8 = int_to_ptr.vmem [resolvable:$true] %s53_s8  ;;  %s20_s10 = int_to_ptr.vmem [resolvable:$true] %s19_s10 }
  0x16   :  { %s10329_s13 = scalar_lea.hbm %s10936_s3, 65536 }
  0x17   :  { %p10330_p8 = scmp.ne.s32.totalorder %s10936_s3, %s10329_s13  ;;  %p10333_p9 = scmp.lt.u32.totalorder %s10329_s13, %s10936_s3 }
  0x19   :  { %p10335_p10 = pnand %p10333_p9, %p10330_p8 }
  0x1b   :  { %10338 = shalt.err (!%p10335_p10)
}
  0x1c   :  { %s10339_s1 = scalar_lea.vmem %s54_s8, 65536  ;;  %p10344_p12 = scmp.lt.s32.totalorder %s54_s8, %s54_s8 }
  0x1d   :  { %p10340_p11 = scmp.ne.s32.totalorder %s54_s8, %s10339_s1  ;;  %p10345_p13 = scmp.lt.s32.totalorder %s10339_s1, %s10339_s1 }
  0x1f   :  { %p10346_p0 = por %p10345_p13, %p10344_p12 }
  0x21   :  { %p10347_p1 = pnand %p10346_p0, %p10340_p11 }
  0x23   :  { %10350 = shalt.err (!%p10347_p1)
}
  0x24   :  { %s10452_s18 = smov 256   ;;  %s10453_s19 = smov 16  }
  0x25   :  { %59 = dma.hbm_to_vmem [thread:$0]  %s10936_s3, 65536, %s54_s8, [#allocation9], %s10452_s18, %s10452_s18, %s10453_s19  }
  0x26   :  { %s10351_s24 = scalar_lea.hbm %s10933_s0, 1024 }
  0x27   :  { %p10352_p2 = scmp.ne.s32.totalorder %s10933_s0, %s10351_s24  ;;  %p10355_p3 = scmp.lt.u32.totalorder %s10351_s24, %s10933_s0 }
  0x29   :  { %p10357_p4 = pnand %p10355_p3, %p10352_p2 }
  0x2b   :  { %10360 = shalt.err (!%p10357_p4)
}
  0x2c   :  { %s10361_s29 = scalar_lea.vmem %s20_s10, 1024  ;;  %p10366_p6 = scmp.lt.s32.totalorder %s20_s10, %s20_s10 }
  0x2d   :  { %p10362_p5 = scmp.ne.s32.totalorder %s20_s10, %s10361_s29  ;;  %p10367_p7 = scmp.lt.s32.totalorder %s10361_s29, %s10361_s29 }
  0x2f   :  { %p10368_p8 = por %p10367_p7, %p10366_p6 }
  0x31   :  { %p10369_p9 = pnand %p10368_p8, %p10362_p5 }
  0x33   :  { %10372 = shalt.err (!%p10369_p9)
}
  0x34   :  { %25 = dma.hbm_to_vmem [thread:$0]  %s10933_s0, 1024, %s20_s10, [#allocation3], %s10452_s18, %s10452_s18, %s10453_s19  }
  0x35   :  { %s10454_s6 = smov [#allocation7]   ;;  %s10455_s8 = smov [#allocation10]  }
  0x36   :  { %s44_s7 = sshll.u32 %s10454_s6, 4  ;;  %s66_s9 = sshll.u32 %s10455_s8, 4  ;;  %s45_s7 = int_to_ptr.vmem [resolvable:$true] %s44_s7  ;;  %s67_s9 = int_to_ptr.vmem [resolvable:$true] %s66_s9 }
  0x37   :  { %s10373_s13 = scalar_lea.hbm %s10935_s2, 256 }
  0x38   :  { %p10374_p10 = scmp.ne.s32.totalorder %s10935_s2, %s10373_s13  ;;  %p10377_p11 = scmp.lt.u32.totalorder %s10373_s13, %s10935_s2 }
  0x3a   :  { %p10379_p12 = pnand %p10377_p11, %p10374_p10 }
  0x3c   :  { %10382 = shalt.err (!%p10379_p12)
}
  0x3d   :  { %s10383_s0 = scalar_lea.vmem %s45_s7, 256  ;;  %p10388_p0 = scmp.lt.s32.totalorder %s45_s7, %s45_s7 }
  0x3e   :  { %p10384_p13 = scmp.ne.s32.totalorder %s45_s7, %s10383_s0  ;;  %p10389_p1 = scmp.lt.s32.totalorder %s10383_s0, %s10383_s0 }
  0x40   :  { %p10390_p2 = por %p10389_p1, %p10388_p0 }
  0x42   :  { %p10391_p3 = pnand %p10390_p2, %p10384_p13 }
  0x44   :  { %10394 = shalt.err (!%p10391_p3)
}
  0x45   :  { %47 = dma.hbm_to_vmem [thread:$0]  %s10935_s2, 256, %s45_s7, [#allocation6]  }
  0x46   :  { %s10395_s20 = scalar_lea.hbm %s10937_s4, 64 }
  0x47   :  { %p10396_p4 = scmp.ne.s32.totalorder %s10937_s4, %s10395_s20  ;;  %p10399_p5 = scmp.lt.u32.totalorder %s10395_s20, %s10937_s4 }
  0x49   :  { %p10401_p6 = pnand %p10399_p5, %p10396_p4 }
  0x4b   :  { %10404 = shalt.err (!%p10401_p6)
}
  0x4c   :  { %s10405_s25 = scalar_lea.vmem %s67_s9, 64  ;;  %p10410_p8 = scmp.lt.s32.totalorder %s67_s9, %s67_s9 }
  0x4d   :  { %p10406_p7 = scmp.ne.s32.totalorder %s67_s9, %s10405_s25  ;;  %p10411_p9 = scmp.lt.s32.totalorder %s10405_s25, %s10405_s25 }
  0x4f   :  { %p10412_p10 = por %p10411_p9, %p10410_p8 }
  0x51   :  { %p10413_p11 = pnand %p10412_p10, %p10406_p7 }
  0x53   :  { %10416 = shalt.err (!%p10413_p11)
}
  0x54   :  { %69 = dma.hbm_to_vmem [thread:$0]  %s10937_s4, 64, %s67_s9, [#allocation9]  }
  0x55   :  { %10439 = dma.done.wait [#allocation3], 1024  }
  0x56   :  { %10440 = vsyncadd [#allocation3], 4294966272 }
  0x57   :  { %10441 = dma.done.wait [#allocation6], 65792  }
  0x58   :  { %10442 = vsyncadd [#allocation6], 4294901504 }
  0x59   :  { %10443 = dma.done.wait [#allocation9], 65600  }
  0x5a   :  { %10444 = vsyncadd [#allocation9], 4294901696  ;;  %v93_v0 = vld [vmem:[#allocation5] sm:$0xff]  ;;  %v94_v2 = vld [vmem:[#allocation5 + $0x8] sm:$0xff]  ;;  %s10456_s4 = smov [#allocation11]  }
  0x5b   :  { %v101_v1 = vld [vmem:[#allocation5 + $0x40] sm:$0xff]  ;;  %v102_v4 = vld [vmem:[#allocation5 + $0x48] sm:$0xff]  ;;  %s8196_s27 = sshll.u32 %s10456_s4, 4  ;;  %s8197_s27 = int_to_ptr.vmem [resolvable:$true] %s8196_s27 }
  0x5c   :  { %v8219_v3 = vcombine.high %v93_v0, %v101_v1  ;;  %v8218_v5 = vcombine.low %v93_v0, %v101_v1  ;;  %v109_v6 = vld [vmem:[#allocation5 + $0x80] sm:$0xff]  ;;  %v8221_v8 = vcombine.high %v94_v2, %v102_v4  ;;  %v8220_v9 = vcombine.low %v94_v2, %v102_v4  ;;  %v110_v11 = vld [vmem:[#allocation5 + $0x88] sm:$0xff]  ;;  %s10417_s28 = scalar_lea.vmem %s8197_s27, 2048  ;;  %p10422_p13 = scmp.lt.s32.totalorder %s8197_s27, %s8197_s27 }
  0x5d   :  { %v117_v7 = vld [vmem:[#allocation5 + $0xc0] sm:$0xff]  ;;  %v118_v12 = vld [vmem:[#allocation5 + $0xc8] sm:$0xff]  ;;  %p10418_p12 = scmp.ne.s32.totalorder %s8197_s27, %s10417_s28  ;;  %p10423_p0 = scmp.lt.s32.totalorder %s10417_s28, %s10417_s28 }
  0x5e   :  { %v8235_v10 = vcombine.high %v109_v6, %v117_v7  ;;  %v125_v13 = vld [vmem:[#allocation5 + $0x100] sm:$0xff]  ;;  %3289 = vmatprep.subr.bf16.mxu0 %v8219_v3  ;;  %v8237_v14 = vcombine.high %v110_v11, %v118_v12  ;;  %v126_v16 = vld [vmem:[#allocation5 + $0x108] sm:$0xff]  ;;  %3395 = vmatprep.subr.bf16.mxu1 %v8221_v8  ;;  %v8234_v18 = vcombine.low %v109_v6, %v117_v7 }
  0x5f   :  { %v133_v15 = vld [vmem:[#allocation5 + $0x140] sm:$0xff]  ;;  %v134_v17 = vld [vmem:[#allocation5 + $0x148] sm:$0xff]  ;;  %3290 = vmatpush1.bf16.msra.mxu0 %v8218_v5  ;;  %3396 = vmatpush1.bf16.msra.mxu1 %v8220_v9  ;;  %v8236_v19 = vcombine.low %v110_v11, %v118_v12  ;;  %p10424_p1 = por %p10423_p0, %p10422_p13 }
  0x60   :  { %3291 = vmatprep.subr.bf16.mxu0 %v8235_v10  ;;  %v8251_v20 = vcombine.high %v125_v13, %v133_v15  ;;  %3397 = vmatprep.subr.bf16.mxu1 %v8237_v14  ;;  %v8253_v21 = vcombine.high %v126_v16, %v134_v17  ;;  %v141_v22 = vld [vmem:[#allocation5 + $0x180] sm:$0xff]  ;;  %v142_v24 = vld [vmem:[#allocation5 + $0x188] sm:$0xff]  ;;  %v8250_v26 = vcombine.low %v125_v13, %v133_v15 }
  0x61   :  { %v149_v23 = vld [vmem:[#allocation5 + $0x1c0] sm:$0xff]  ;;  %v150_v25 = vld [vmem:[#allocation5 + $0x1c8] sm:$0xff]  ;;  %v8252_v27 = vcombine.low %v126_v16, %v134_v17  ;;  %p10425_p2 = pnand %p10424_p1, %p10418_p12 }
  0x62   :  { %v8267_v28 = vcombine.high %v141_v22, %v149_v23  ;;  %v8269_v29 = vcombine.high %v142_v24, %v150_v25  ;;  %v157_v30 = vld [vmem:[#allocation5 + $0x200] sm:$0xff]  ;;  %v158_v32 = vld [vmem:[#allocation5 + $0x208] sm:$0xff]  ;;  %v8266_v34 = vcombine.low %v141_v22, %v149_v23  ;;  %v8268_v35 = vcombine.low %v142_v24, %v150_v25 }
  0x63   :  { %3292 = vmatpush1.bf16.msra.mxu0 %v8234_v18  ;;  %3398 = vmatpush1.bf16.msra.mxu1 %v8236_v19  ;;  %v165_v31 = vld [vmem:[#allocation5 + $0x240] sm:$0xff]  ;;  %v166_v33 = vld [vmem:[#allocation5 + $0x248] sm:$0xff] }
  0x64   :  { %3293 = vmatprep.subr.bf16.mxu0 %v8251_v20  ;;  %3399 = vmatprep.subr.bf16.mxu1 %v8253_v21  ;;  %v8283_v36 = vcombine.high %v157_v30, %v165_v31  ;;  %v8285_v37 = vcombine.high %v158_v32, %v166_v33  ;;  %v173_v38 = vld [vmem:[#allocation5 + $0x280] sm:$0xff]  ;;  %v174_v40 = vld [vmem:[#allocation5 + $0x288] sm:$0xff]  ;;  %v8282_v42 = vcombine.low %v157_v30, %v165_v31 }
  0x65   :  { %v181_v39 = vld [vmem:[#allocation5 + $0x2c0] sm:$0xff]  ;;  %v182_v41 = vld [vmem:[#allocation5 + $0x2c8] sm:$0xff]  ;;  %v8284_v43 = vcombine.low %v158_v32, %v166_v33 }
  0x66   :  { %v8299_v44 = vcombine.high %v173_v38, %v181_v39  ;;  %v8301_v45 = vcombine.high %v174_v40, %v182_v41  ;;  %v189_v46 = vld [vmem:[#allocation5 + $0x300] sm:$0xff]  ;;  %v190_v48 = vld [vmem:[#allocation5 + $0x308] sm:$0xff]  ;;  %v8298_v50 = vcombine.low %v173_v38, %v181_v39  ;;  %v8300_v51 = vcombine.low %v174_v40, %v182_v41 }
  0x67   :  { %3294 = vmatpush1.bf16.msra.mxu0 %v8250_v26  ;;  %3400 = vmatpush1.bf16.msra.mxu1 %v8252_v27  ;;  %v197_v47 = vld [vmem:[#allocation5 + $0x340] sm:$0xff]  ;;  %v198_v49 = vld [vmem:[#allocation5 + $0x348] sm:$0xff] }
  0x68   :  { %3295 = vmatprep.subr.bf16.mxu0 %v8267_v28  ;;  %3401 = vmatprep.subr.bf16.mxu1 %v8269_v29  ;;  %v8315_v52 = vcombine.high %v189_v46, %v197_v47  ;;  %v8317_v53 = vcombine.high %v190_v48, %v198_v49  ;;  %v205_v54 = vld [vmem:[#allocation5 + $0x380] sm:$0xff]  ;;  %v206_v57 = vld [vmem:[#allocation5 + $0x388] sm:$0xff]  ;;  %v8314_v59 = vcombine.low %v189_v46, %v197_v47 }
  0x69   :  { %v213_v55 = vld [vmem:[#allocation5 + $0x3c0] sm:$0xff]  ;;  %v214_v58 = vld [vmem:[#allocation5 + $0x3c8] sm:$0xff]  ;;  %v8316_v60 = vcombine.low %v190_v48, %v198_v49 }
  0x6a   :  { %v9510_v56 = vld [vmem:[#allocation2 + $0x4] ss:$16 sps:$4 sm:$0xff]   ;;  %v8331_v61 = vcombine.high %v205_v54, %v213_v55  ;;  %v8333_v62 = vcombine.high %v206_v57, %v214_v58  ;;  %v222_v1 = vld [vmem:[#allocation5 + $0x408] sm:$0xff]  ;;  %v8330_v3 = vcombine.low %v205_v54, %v213_v55  ;;  %v8332_v4 = vcombine.low %v206_v57, %v214_v58 }
  0x6b   :  { %3296 = vmatpush1.bf16.msra.mxu0 %v8266_v34  ;;  %3402 = vmatpush1.bf16.msra.mxu1 %v8268_v35  ;;  %v221_v63 = vld [vmem:[#allocation5 + $0x400] sm:$0xff]  ;;  %v230_v2 = vld [vmem:[#allocation5 + $0x448] sm:$0xff] }
  0x6c   :  { %3297 = vmatprep.subr.bf16.mxu0 %v8283_v36  ;;  %3403 = vmatprep.subr.bf16.mxu1 %v8285_v37  ;;  %v229_v0 = vld [vmem:[#allocation5 + $0x440] sm:$0xff]  ;;  %v8349_v6 = vcombine.high %v222_v1, %v230_v2  ;;  %v238_v9 = vld [vmem:[#allocation5 + $0x488] sm:$0xff]  ;;  %v8348_v12 = vcombine.low %v222_v1, %v230_v2 }
  0x6d   :  { %3321 = vmatprep.mubr.bf16.mxu0 %v9510_v56  ;;  %3427 = vmatprep.mubr.bf16.mxu1 %v9510_v56  ;;  %v8347_v5 = vcombine.high %v221_v63, %v229_v0  ;;  %v237_v7 = vld [vmem:[#allocation5 + $0x480] sm:$0xff]  ;;  %v246_v10 = vld [vmem:[#allocation5 + $0x4c8] sm:$0xff]  ;;  %v8346_v11 = vcombine.low %v221_v63, %v229_v0 }
  0x6e   :  { %v245_v8 = vld [vmem:[#allocation5 + $0x4c0] sm:$0xff]  ;;  %v8365_v14 = vcombine.high %v238_v9, %v246_v10  ;;  %v254_v17 = vld [vmem:[#allocation5 + $0x508] sm:$0xff]  ;;  %v8364_v20 = vcombine.low %v238_v9, %v246_v10 }
  0x6f   :  { %3298 = vmatpush1.bf16.msra.mxu0 %v8282_v42  ;;  %3404 = vmatpush1.bf16.msra.mxu1 %v8284_v43  ;;  %v8363_v13 = vcombine.high %v237_v7, %v245_v8  ;;  %v253_v15 = vld [vmem:[#allocation5 + $0x500] sm:$0xff]  ;;  %v262_v18 = vld [vmem:[#allocation5 + $0x548] sm:$0xff]  ;;  %v8362_v19 = vcombine.low %v237_v7, %v245_v8 }
  0x70   :  { %3299 = vmatprep.subr.bf16.mxu0 %v8299_v44  ;;  %3405 = vmatprep.subr.bf16.mxu1 %v8301_v45  ;;  %v261_v16 = vld [vmem:[#allocation5 + $0x540] sm:$0xff]  ;;  %v8381_v22 = vcombine.high %v254_v17, %v262_v18  ;;  %v270_v25 = vld [vmem:[#allocation5 + $0x588] sm:$0xff]  ;;  %v8380_v28 = vcombine.low %v254_v17, %v262_v18 }
  0x71   :  { %v8379_v21 = vcombine.high %v253_v15, %v261_v16  ;;  %v269_v23 = vld [vmem:[#allocation5 + $0x580] sm:$0xff]  ;;  %v278_v26 = vld [vmem:[#allocation5 + $0x5c8] sm:$0xff]  ;;  %v8378_v27 = vcombine.low %v253_v15, %v261_v16 }
  0x72   :  { %v277_v24 = vld [vmem:[#allocation5 + $0x5c0] sm:$0xff]  ;;  %v8397_v30 = vcombine.high %v270_v25, %v278_v26  ;;  %v286_v33 = vld [vmem:[#allocation5 + $0x608] sm:$0xff]  ;;  %v8396_v36 = vcombine.low %v270_v25, %v278_v26 }
  0x73   :  { %3300 = vmatpush1.bf16.msra.mxu0 %v8298_v50  ;;  %3406 = vmatpush1.bf16.msra.mxu1 %v8300_v51  ;;  %v8395_v29 = vcombine.high %v269_v23, %v277_v24  ;;  %v285_v31 = vld [vmem:[#allocation5 + $0x600] sm:$0xff]  ;;  %v294_v34 = vld [vmem:[#allocation5 + $0x648] sm:$0xff]  ;;  %v8394_v35 = vcombine.low %v269_v23, %v277_v24 }
  0x74   :  { %3301 = vmatprep.subr.bf16.mxu0 %v8315_v52  ;;  %3407 = vmatprep.subr.bf16.mxu1 %v8317_v53  ;;  %v293_v32 = vld [vmem:[#allocation5 + $0x640] sm:$0xff]  ;;  %v8413_v38 = vcombine.high %v286_v33, %v294_v34  ;;  %v302_v41 = vld [vmem:[#allocation5 + $0x688] sm:$0xff]  ;;  %v8412_v44 = vcombine.low %v286_v33, %v294_v34 }
  0x75   :  { %v8411_v37 = vcombine.high %v285_v31, %v293_v32  ;;  %v301_v39 = vld [vmem:[#allocation5 + $0x680] sm:$0xff]  ;;  %v310_v42 = vld [vmem:[#allocation5 + $0x6c8] sm:$0xff]  ;;  %v8410_v43 = vcombine.low %v285_v31, %v293_v32 }
  0x76   :  { %v309_v40 = vld [vmem:[#allocation5 + $0x6c0] sm:$0xff]  ;;  %v8429_v46 = vcombine.high %v302_v41, %v310_v42  ;;  %v318_v49 = vld [vmem:[#allocation5 + $0x708] sm:$0xff]  ;;  %v8428_v52 = vcombine.low %v302_v41, %v310_v42 }
  0x77   :  { %3302 = vmatpush1.bf16.msra.mxu0 %v8314_v59  ;;  %3408 = vmatpush1.bf16.msra.mxu1 %v8316_v60  ;;  %v8427_v45 = vcombine.high %v301_v39, %v309_v40  ;;  %v317_v47 = vld [vmem:[#allocation5 + $0x700] sm:$0xff]  ;;  %v326_v50 = vld [vmem:[#allocation5 + $0x748] sm:$0xff]  ;;  %v8426_v51 = vcombine.low %v301_v39, %v309_v40 }
  0x78   :  { %3303 = vmatprep.subr.bf16.mxu0 %v8331_v61  ;;  %3409 = vmatprep.subr.bf16.mxu1 %v8333_v62  ;;  %v325_v48 = vld [vmem:[#allocation5 + $0x740] sm:$0xff]  ;;  %v8445_v54 = vcombine.high %v318_v49, %v326_v50  ;;  %v334_v57 = vld [vmem:[#allocation5 + $0x788] sm:$0xff]  ;;  %v8444_v60 = vcombine.low %v318_v49, %v326_v50 }
  0x79   :  { %v8443_v53 = vcombine.high %v317_v47, %v325_v48  ;;  %v333_v55 = vld [vmem:[#allocation5 + $0x780] sm:$0xff]  ;;  %v342_v58 = vld [vmem:[#allocation5 + $0x7c8] sm:$0xff]  ;;  %v8442_v59 = vcombine.low %v317_v47, %v325_v48 }
  0x7a   :  { %v341_v56 = vld [vmem:[#allocation5 + $0x7c0] sm:$0xff]  ;;  %v8461_v62 = vcombine.high %v334_v57, %v342_v58  ;;  %v350_v1 = vld [vmem:[#allocation5 + $0x808] sm:$0xff] }
  0x7b   :  { %3304 = vmatpush1.bf16.msra.mxu0 %v8330_v3  ;;  %3410 = vmatpush1.bf16.msra.mxu1 %v8332_v4  ;;  %v8459_v61 = vcombine.high %v333_v55, %v341_v56  ;;  %v349_v63 = vld [vmem:[#allocation5 + $0x800] sm:$0xff]  ;;  %v358_v2 = vld [vmem:[#allocation5 + $0x848] sm:$0xff]  ;;  %v8458_v3 = vcombine.low %v333_v55, %v341_v56  ;;  %v8460_v4 = vcombine.low %v334_v57, %v342_v58 }
  0x7c   :  { %3305 = vmatprep.subr.bf16.mxu0 %v8347_v5  ;;  %3411 = vmatprep.subr.bf16.mxu1 %v8349_v6  ;;  %v357_v0 = vld [vmem:[#allocation5 + $0x840] sm:$0xff]  ;;  %v8477_v6 = vcombine.high %v350_v1, %v358_v2  ;;  %v366_v10 = vld [vmem:[#allocation5 + $0x888] sm:$0xff] }
  0x7d   :  { %v8475_v5 = vcombine.high %v349_v63, %v357_v0  ;;  %v365_v7 = vld [vmem:[#allocation5 + $0x880] sm:$0xff] }
  0x7e   :  { %v373_v8 = vld [vmem:[#allocation5 + $0x8c0] sm:$0xff] }
  0x7f   :  { %3306 = vmatpush1.bf16.msra.mxu0 %v8346_v11  ;;  %3412 = vmatpush1.bf16.msra.mxu1 %v8348_v12  ;;  %v9512_v9 = vld [vmem:[#allocation2] ss:$16 sps:$4 sm:$0xff]   ;;  %v374_v11 = vld [vmem:[#allocation5 + $0x8c8] sm:$0xff]  ;;  %v8474_v12 = vcombine.low %v349_v63, %v357_v0  ;;  %v9513_v18 = vld [vmem:[#allocation2 + $0x24] ss:$16 sps:$4 sm:$0xff]  }
  0x80   :  { %3307 = vmatprep.subr.bf16.mxu0 %v8363_v13  ;;  %3413 = vmatprep.subr.bf16.mxu1 %v8365_v14  ;;  %v8476_v13 = vcombine.low %v350_v1, %v358_v2  ;;  %v8491_v14 = vcombine.high %v365_v7, %v373_v8  ;;  %v8493_v15 = vcombine.high %v366_v10, %v374_v11  ;;  %v381_v16 = vld [vmem:[#allocation5 + $0x900] sm:$0xff] }
  0x81   :  { %v389_v17 = vld [vmem:[#allocation5 + $0x940] sm:$0xff] }
  0x82   :  { %v8507_v23 = vcombine.high %v381_v16, %v389_v17  ;;  %v397_v25 = vld [vmem:[#allocation5 + $0x980] sm:$0xff] }
  0x83   :  { %3308 = vmatpush1.bf16.msra.mxu0 %v8362_v19  ;;  %3414 = vmatpush1.bf16.msra.mxu1 %v8364_v20  ;;  %v382_v19 = vld [vmem:[#allocation5 + $0x908] sm:$0xff]  ;;  %v405_v26 = vld [vmem:[#allocation5 + $0x9c0] sm:$0xff] }
  0x84   :  { %3309 = vmatprep.subr.bf16.mxu0 %v8379_v21  ;;  %3415 = vmatprep.subr.bf16.mxu1 %v8381_v22  ;;  %v390_v20 = vld [vmem:[#allocation5 + $0x948] sm:$0xff]  ;;  %v8490_v21 = vcombine.low %v365_v7, %v373_v8  ;;  %v8492_v22 = vcombine.low %v366_v10, %v374_v11  ;;  %v413_v31 = vld [vmem:[#allocation5 + $0xa00] sm:$0xff]  ;;  %v8523_v33 = vcombine.high %v397_v25, %v405_v26 }
  0x85   :  { %v8509_v24 = vcombine.high %v382_v19, %v390_v20  ;;  %v8508_v32 = vcombine.low %v382_v19, %v390_v20  ;;  %v421_v34 = vld [vmem:[#allocation5 + $0xa40] sm:$0xff]  ;;  %v8522_v39 = vcombine.low %v397_v25, %v405_v26  ;;  %v510_v20 = vld [vmem:[#allocation5 + $0xd08] sm:$0xff] }
  0x86   :  { %v8539_v41 = vcombine.high %v413_v31, %v421_v34  ;;  %v429_v42 = vld [vmem:[#allocation5 + $0xa80] sm:$0xff]  ;;  %v8538_v47 = vcombine.low %v413_v31, %v421_v34 }
  0x87   :  { %3310 = vmatpush1.bf16.msra.mxu0 %v8378_v27  ;;  %3416 = vmatpush1.bf16.msra.mxu1 %v8380_v28  ;;  %v398_v27 = vld [vmem:[#allocation5 + $0x988] sm:$0xff]  ;;  %v445_v50 = vld [vmem:[#allocation5 + $0xb00] sm:$0xff] }
  0x88   :  { %3311 = vmatprep.subr.bf16.mxu0 %v8395_v29  ;;  %3417 = vmatprep.subr.bf16.mxu1 %v8397_v30  ;;  %v406_v28 = vld [vmem:[#allocation5 + $0x9c8] sm:$0xff]  ;;  %v9515_v29 = vld [vmem:[#allocation2 + $0x20] ss:$16 sps:$4 sm:$0xff]   ;;  %v8506_v30 = vcombine.low %v381_v16, %v389_v17 }
  0x89   :  { %v8524_v40 = vcombine.low %v398_v27, %v406_v28  ;;  %v461_v58 = vld [vmem:[#allocation5 + $0xb80] sm:$0xff] }
  0x8a   :  { %v477_v2 = vld [vmem:[#allocation5 + $0xc00] sm:$0xff] }
  0x8b   :  { %3312 = vmatpush1.bf16.msra.mxu0 %v8394_v35  ;;  %3418 = vmatpush1.bf16.msra.mxu1 %v8396_v36  ;;  %v414_v35 = vld [vmem:[#allocation5 + $0xa08] sm:$0xff]  ;;  %v493_v10 = vld [vmem:[#allocation5 + $0xc80] sm:$0xff] }
  0x8c   :  { %3313 = vmatprep.subr.bf16.mxu0 %v8411_v37  ;;  %3419 = vmatprep.subr.bf16.mxu1 %v8413_v38  ;;  %v422_v36 = vld [vmem:[#allocation5 + $0xa48] sm:$0xff]  ;;  %v8525_v37 = vcombine.high %v398_v27, %v406_v28  ;;  %v501_v11 = vld [vmem:[#allocation5 + $0xcc0] sm:$0xff] }
  0x8d   :  { %v9516_v38 = vld [vmem:[#allocation2 + $0xc] ss:$16 sps:$4 sm:$0xff]   ;;  %v8540_v48 = vcombine.low %v414_v35, %v422_v36  ;;  %v8619_v17 = vcombine.high %v493_v10, %v501_v11  ;;  %v517_v19 = vld [vmem:[#allocation5 + $0xd40] sm:$0xff] }
  0x8e   :  { %v525_v26 = vld [vmem:[#allocation5 + $0xd80] sm:$0xff]  ;;  %v526_v28 = vld [vmem:[#allocation5 + $0xd88] sm:$0xff] }
  0x8f   :  { %3314 = vmatpush1.bf16.msra.mxu0 %v8410_v43  ;;  %3420 = vmatpush1.bf16.msra.mxu1 %v8412_v44  ;;  %v437_v43 = vld [vmem:[#allocation5 + $0xac0] sm:$0xff]  ;;  %v430_v44 = vld [vmem:[#allocation5 + $0xa88] sm:$0xff] }
  0x90   :  { %3315 = vmatprep.subr.bf16.mxu0 %v8427_v45  ;;  %3421 = vmatprep.subr.bf16.mxu1 %v8429_v46  ;;  %v8541_v45 = vcombine.high %v414_v35, %v422_v36  ;;  %v438_v46 = vld [vmem:[#allocation5 + $0xac8] sm:$0xff]  ;;  %v8555_v49 = vcombine.high %v429_v42, %v437_v43  ;;  %v8554_v55 = vcombine.low %v429_v42, %v437_v43  ;;  %v533_v27 = vld [vmem:[#allocation5 + $0xdc0] sm:$0xff] }
  0x91   :  { %v8556_v56 = vcombine.low %v430_v44, %v438_v46  ;;  %v541_v34 = vld [vmem:[#allocation5 + $0xe00] sm:$0xff]  ;;  %v542_v36 = vld [vmem:[#allocation5 + $0xe08] sm:$0xff] }
  0x92   :  { %v549_v35 = vld [vmem:[#allocation5 + $0xe40] sm:$0xff] }
  0x93   :  { %3316 = vmatpush1.bf16.msra.mxu0 %v8426_v51  ;;  %3422 = vmatpush1.bf16.msra.mxu1 %v8428_v52  ;;  %v453_v51 = vld [vmem:[#allocation5 + $0xb40] sm:$0xff]  ;;  %v446_v52 = vld [vmem:[#allocation5 + $0xb08] sm:$0xff] }
  0x94   :  { %3317 = vmatprep.subr.bf16.mxu0 %v8443_v53  ;;  %3423 = vmatprep.subr.bf16.mxu1 %v8445_v54  ;;  %v8557_v53 = vcombine.high %v430_v44, %v438_v46  ;;  %v454_v54 = vld [vmem:[#allocation5 + $0xb48] sm:$0xff]  ;;  %v8571_v57 = vcombine.high %v445_v50, %v453_v51  ;;  %v8570_v63 = vcombine.low %v445_v50, %v453_v51  ;;  %v557_v42 = vld [vmem:[#allocation5 + $0xe80] sm:$0xff] }
  0x95   :  { %v8572_v0 = vcombine.low %v446_v52, %v454_v54  ;;  %v565_v43 = vld [vmem:[#allocation5 + $0xec0] sm:$0xff]  ;;  %v558_v44 = vld [vmem:[#allocation5 + $0xe88] sm:$0xff] }
  0x96   :  { %v566_v46 = vld [vmem:[#allocation5 + $0xec8] sm:$0xff]  ;;  %v573_v50 = vld [vmem:[#allocation5 + $0xf00] sm:$0xff] }
  0x97   :  { %3318 = vmatpush1.bf16.msra.mxu0 %v8442_v59  ;;  %3424 = vmatpush1.bf16.msra.mxu1 %v8444_v60  ;;  %v469_v59 = vld [vmem:[#allocation5 + $0xbc0] sm:$0xff]  ;;  %v462_v60 = vld [vmem:[#allocation5 + $0xb88] sm:$0xff] }
  0x98   :  { %3319 = vmatprep.subr.bf16.mxu0 %v8459_v61  ;;  %3425 = vmatprep.subr.bf16.mxu1 %v8461_v62  ;;  %v8573_v61 = vcombine.high %v446_v52, %v454_v54  ;;  %v470_v62 = vld [vmem:[#allocation5 + $0xbc8] sm:$0xff]  ;;  %v8587_v1 = vcombine.high %v461_v58, %v469_v59  ;;  %v8586_v7 = vcombine.low %v461_v58, %v469_v59  ;;  %v581_v51 = vld [vmem:[#allocation5 + $0xf40] sm:$0xff] }
  0x99   :  { %v8588_v8 = vcombine.low %v462_v60, %v470_v62  ;;  %v574_v52 = vld [vmem:[#allocation5 + $0xf08] sm:$0xff]  ;;  %v589_v58 = vld [vmem:[#allocation5 + $0xf80] sm:$0xff] }
  0x9a   :  { %v582_v54 = vld [vmem:[#allocation5 + $0xf48] sm:$0xff]  ;;  %v597_v59 = vld [vmem:[#allocation5 + $0xfc0] sm:$0xff] }
  0x9b   :  { %3320 = vmatpush1.bf16.msra.mxu0 %v8458_v3  ;;  %3426 = vmatpush1.bf16.msra.mxu1 %v8460_v4  ;;  %v485_v3 = vld [vmem:[#allocation5 + $0xc40] sm:$0xff]  ;;  %v478_v4 = vld [vmem:[#allocation5 + $0xc08] sm:$0xff] }
  0x9c   :  { %3342 = vmatprep.subr.bf16.mxu0 %v8475_v5  ;;  %3448 = vmatprep.subr.bf16.mxu1 %v8477_v6  ;;  %v8589_v5 = vcombine.high %v462_v60, %v470_v62  ;;  %v486_v6 = vld [vmem:[#allocation5 + $0xc48] sm:$0xff] }
  0x9d   :  { %v8604_v16 = vcombine.low %v478_v4, %v486_v6  ;;  %v590_v60 = vld [vmem:[#allocation5 + $0xf88] sm:$0xff] }
  0x9e   :  { %3322 = vmatmul.mubr.bf16.vlgmr.msra.gmra.mrb[0].mxu0 %v9512_v9  ;;  %3428 = vmatmul.mubr.bf16.vlgmr.msra.gmra.mrb[0].mxu1 %v9512_v9  ;;  %v8603_v9 = vcombine.high %v477_v2, %v485_v3  ;;  %v598_v62 = vld [vmem:[#allocation5 + $0xfc8] sm:$0xff] }
  0x9f   :  { %3343 = vmatpush1.bf16.msra.mxu0 %v8474_v12  ;;  %3449 = vmatpush1.bf16.msra.mxu1 %v8476_v13  ;;  %v494_v12 = vld [vmem:[#allocation5 + $0xc88] sm:$0xff]  ;;  %v8605_v13 = vcombine.high %v478_v4, %v486_v6  ;;  %v96_v4 = vld [vmem:[#allocation5 + $0x18] sm:$0xff] }
  0xa0   :  { %3344 = vmatprep.subr.bf16.mxu0 %v8491_v14  ;;  %3450 = vmatprep.subr.bf16.mxu1 %v8493_v15  ;;  %v502_v14 = vld [vmem:[#allocation5 + $0xcc8] sm:$0xff]  ;;  %v8602_v15 = vcombine.low %v477_v2, %v485_v3  ;;  %v95_v2 = vld [vmem:[#allocation5 + $0x10] sm:$0xff]  ;;  %v104_v6 = vld [vmem:[#allocation5 + $0x58] sm:$0xff] }
  0xa1   :  { %3331 = vmatprep.mubr.bf16.mxu0 %v9513_v18  ;;  %3437 = vmatprep.mubr.bf16.mxu1 %v9513_v18  ;;  %v509_v18 = vld [vmem:[#allocation5 + $0xd00] sm:$0xff]  ;;  %v103_v3 = vld [vmem:[#allocation5 + $0x50] sm:$0xff] }
  0xa2   :  { %v8635_v25 = vcombine.high %v509_v18, %v517_v19  ;;  %v8634_v31 = vcombine.low %v509_v18, %v517_v19  ;;  %v8224_v18 = vcombine.low %v96_v4, %v104_v6 }
  0xa3   :  { %3345 = vmatpush1.bf16.msra.mxu0 %v8490_v21  ;;  %3451 = vmatpush1.bf16.msra.mxu1 %v8492_v22  ;;  %v8621_v21 = vcombine.high %v494_v12, %v502_v14  ;;  %v518_v22 = vld [vmem:[#allocation5 + $0xd48] sm:$0xff] }
  0xa4   :  { %3346 = vmatprep.subr.bf16.mxu0 %v8507_v23  ;;  %3452 = vmatprep.subr.bf16.mxu1 %v8509_v24  ;;  %v8618_v23 = vcombine.low %v493_v10, %v501_v11  ;;  %v8620_v24 = vcombine.low %v494_v12, %v502_v14  ;;  %v8223_v10 = vcombine.high %v95_v2, %v103_v3  ;;  %v111_v11 = vld [vmem:[#allocation5 + $0x90] sm:$0xff] }
  0xa5   :  { %v119_v12 = vld [vmem:[#allocation5 + $0xd0] sm:$0xff]  ;;  %v8225_v14 = vcombine.high %v96_v4, %v104_v6 }
  0xa6   :  { %3332 = vmatmul.mubr.bf16.gmra.mrb[4].mxu0 %v9515_v29  ;;  %3438 = vmatmul.mubr.bf16.gmra.mrb[4].mxu1 %v9515_v29  ;;  %v8637_v29 = vcombine.high %v510_v20, %v518_v22  ;;  %v8239_v19 = vcombine.high %v111_v11, %v119_v12  ;;  %v223_v6 = vld [vmem:[#allocation5 + $0x410] sm:$0xff] }
  0xa7   :  { %3347 = vmatpush1.bf16.msra.mxu0 %v8506_v30  ;;  %3453 = vmatpush1.bf16.msra.mxu1 %v8508_v32  ;;  %v534_v30 = vld [vmem:[#allocation5 + $0xdc8] sm:$0xff]  ;;  %v8636_v32 = vcombine.low %v510_v20, %v518_v22  ;;  %v127_v20 = vld [vmem:[#allocation5 + $0x110] sm:$0xff]  ;;  %v128_v22 = vld [vmem:[#allocation5 + $0x118] sm:$0xff] }
  0xa8   :  { %3348 = vmatprep.subr.bf16.mxu0 %v8523_v33  ;;  %3454 = vmatprep.subr.bf16.mxu1 %v8525_v37  ;;  %v8651_v33 = vcombine.high %v525_v26, %v533_v27  ;;  %v8653_v37 = vcombine.high %v526_v28, %v534_v30 }
  0xa9   :  { %3374 = vmatprep.mubr.bf16.mxu0 %v9516_v38  ;;  %3480 = vmatprep.mubr.bf16.mxu1 %v9516_v38  ;;  %v550_v38 = vld [vmem:[#allocation5 + $0xe48] sm:$0xff] }
  0xab   :  { %3349 = vmatpush1.bf16.msra.mxu0 %v8522_v39  ;;  %3455 = vmatpush1.bf16.msra.mxu1 %v8524_v40  ;;  %v8650_v39 = vcombine.low %v525_v26, %v533_v27  ;;  %v8652_v40 = vcombine.low %v526_v28, %v534_v30  ;;  %v9521_v27 = vld [vmem:[#allocation2 + $0x28] ss:$16 sps:$4 sm:$0xff]   ;;  %v151_v30 = vld [vmem:[#allocation5 + $0x1d0] sm:$0xff] }
  0xac   :  { %3350 = vmatprep.subr.bf16.mxu0 %v8539_v41  ;;  %3456 = vmatprep.subr.bf16.mxu1 %v8541_v45  ;;  %v8667_v41 = vcombine.high %v541_v34, %v549_v35  ;;  %v8669_v45 = vcombine.high %v542_v36, %v550_v38 }
  0xaf   :  { %3351 = vmatpush1.bf16.msra.mxu0 %v8538_v47  ;;  %3457 = vmatpush1.bf16.msra.mxu1 %v8540_v48  ;;  %v8666_v47 = vcombine.low %v541_v34, %v549_v35  ;;  %v8668_v48 = vcombine.low %v542_v36, %v550_v38  ;;  %v167_v38 = vld [vmem:[#allocation5 + $0x250] sm:$0xff] }
  0xb0   :  { %3352 = vmatprep.subr.bf16.mxu0 %v8555_v49  ;;  %3458 = vmatprep.subr.bf16.mxu1 %v8557_v53  ;;  %v8683_v49 = vcombine.high %v557_v42, %v565_v43  ;;  %v8685_v53 = vcombine.high %v558_v44, %v566_v46 }
  0xb3   :  { %3353 = vmatpush1.bf16.msra.mxu0 %v8554_v55  ;;  %3459 = vmatpush1.bf16.msra.mxu1 %v8556_v56  ;;  %v8682_v55 = vcombine.low %v557_v42, %v565_v43  ;;  %v8684_v56 = vcombine.low %v558_v44, %v566_v46  ;;  %v183_v46 = vld [vmem:[#allocation5 + $0x2d0] sm:$0xff] }
  0xb4   :  { %3354 = vmatprep.subr.bf16.mxu0 %v8571_v57  ;;  %3460 = vmatprep.subr.bf16.mxu1 %v8573_v61  ;;  %v8699_v57 = vcombine.high %v573_v50, %v581_v51  ;;  %v8701_v61 = vcombine.high %v574_v52, %v582_v54 }
  0xb7   :  { %3355 = vmatpush1.bf16.msra.mxu0 %v8570_v63  ;;  %3461 = vmatpush1.bf16.msra.mxu1 %v8572_v0  ;;  %v8698_v63 = vcombine.low %v573_v50, %v581_v51  ;;  %v8700_v0 = vcombine.low %v574_v52, %v582_v54  ;;  %v10290_v50 = vld [vmem:[#allocation2 + $0x4] ss:$16 sps:$4 sm:$0xff]  }
  0xb8   :  { %3356 = vmatprep.subr.bf16.mxu0 %v8587_v1  ;;  %3462 = vmatprep.subr.bf16.mxu1 %v8589_v5  ;;  %v8715_v1 = vcombine.high %v589_v58, %v597_v59  ;;  %v8717_v5 = vcombine.high %v590_v60, %v598_v62  ;;  %v191_v54 = vld [vmem:[#allocation5 + $0x310] sm:$0xff] }
  0xbb   :  { %3357 = vmatpush1.bf16.msra.mxu0 %v8586_v7  ;;  %3463 = vmatpush1.bf16.msra.mxu1 %v8588_v8  ;;  %v8714_v7 = vcombine.low %v589_v58, %v597_v59  ;;  %v8716_v8 = vcombine.low %v590_v60, %v598_v62  ;;  %v200_v58 = vld [vmem:[#allocation5 + $0x358] sm:$0xff]  ;;  %v207_v62 = vld [vmem:[#allocation5 + $0x390] sm:$0xff] }
  0xbc   :  { %3358 = vmatprep.subr.bf16.mxu0 %v8603_v9  ;;  %3464 = vmatprep.subr.bf16.mxu1 %v8605_v13  ;;  %v9518_v9 = vld [vmem:[#allocation2 + $0x8] ss:$16 sps:$4 sm:$0xff]  }
  0xbd   :  { %v112_v13 = vld [vmem:[#allocation5 + $0x98] sm:$0xff] }
  0xbf   :  { %3359 = vmatpush1.bf16.msra.mxu0 %v8602_v15  ;;  %3465 = vmatpush1.bf16.msra.mxu1 %v8604_v16  ;;  %v120_v15 = vld [vmem:[#allocation5 + $0xd8] sm:$0xff]  ;;  %v8222_v16 = vcombine.low %v95_v2, %v103_v3 }
  0xc0   :  { %3360 = vmatprep.subr.bf16.mxu0 %v8619_v17  ;;  %3466 = vmatprep.subr.bf16.mxu1 %v8621_v21  ;;  %v9519_v17 = vld [vmem:[#allocation2 + $0x2c] ss:$16 sps:$4 sm:$0xff]   ;;  %v135_v21 = vld [vmem:[#allocation5 + $0x150] sm:$0xff]  ;;  %v8240_v26 = vcombine.low %v112_v13, %v120_v15 }
  0xc1   :  { %v8255_v28 = vcombine.high %v127_v20, %v135_v21  ;;  %v8254_v34 = vcombine.low %v127_v20, %v135_v21  ;;  %v216_v2 = vld [vmem:[#allocation5 + $0x3d8] sm:$0xff] }
  0xc3   :  { %3361 = vmatpush1.bf16.msra.mxu0 %v8618_v23  ;;  %3467 = vmatpush1.bf16.msra.mxu1 %v8620_v24  ;;  %v8241_v23 = vcombine.high %v112_v13, %v120_v15  ;;  %v136_v24 = vld [vmem:[#allocation5 + $0x158] sm:$0xff]  ;;  %v247_v15 = vld [vmem:[#allocation5 + $0x4d0] sm:$0xff] }
  0xc4   :  { %3362 = vmatprep.subr.bf16.mxu0 %v8635_v25  ;;  %3468 = vmatprep.subr.bf16.mxu1 %v8637_v29  ;;  %v8238_v25 = vcombine.low %v111_v11, %v119_v12  ;;  %v143_v29 = vld [vmem:[#allocation5 + $0x190] sm:$0xff]  ;;  %v8256_v35 = vcombine.low %v128_v22, %v136_v24 }
  0xc5   :  { %v8271_v36 = vcombine.high %v143_v29, %v151_v30  ;;  %v8270_v42 = vcombine.low %v143_v29, %v151_v30  ;;  %v271_v30 = vld [vmem:[#allocation5 + $0x590] sm:$0xff] }
  0xc7   :  { %3363 = vmatpush1.bf16.msra.mxu0 %v8634_v31  ;;  %3469 = vmatpush1.bf16.msra.mxu1 %v8636_v32  ;;  %v144_v31 = vld [vmem:[#allocation5 + $0x198] sm:$0xff]  ;;  %v8257_v32 = vcombine.high %v128_v22, %v136_v24  ;;  %v255_v22 = vld [vmem:[#allocation5 + $0x510] sm:$0xff] }
  0xc8   :  { %3364 = vmatprep.subr.bf16.mxu0 %v8651_v33  ;;  %3470 = vmatprep.subr.bf16.mxu1 %v8653_v37  ;;  %v152_v33 = vld [vmem:[#allocation5 + $0x1d8] sm:$0xff]  ;;  %v159_v37 = vld [vmem:[#allocation5 + $0x210] sm:$0xff] }
  0xc9   :  { %v8272_v43 = vcombine.low %v144_v31, %v152_v33  ;;  %v8287_v44 = vcombine.high %v159_v37, %v167_v38  ;;  %v8286_v51 = vcombine.low %v159_v37, %v167_v38  ;;  %v256_v24 = vld [vmem:[#allocation5 + $0x518] sm:$0xff]  ;;  %v287_v38 = vld [vmem:[#allocation5 + $0x610] sm:$0xff] }
  0xcb   :  { %3365 = vmatpush1.bf16.msra.mxu0 %v8650_v39  ;;  %3471 = vmatpush1.bf16.msra.mxu1 %v8652_v40  ;;  %v160_v39 = vld [vmem:[#allocation5 + $0x218] sm:$0xff]  ;;  %v8273_v40 = vcombine.high %v144_v31, %v152_v33  ;;  %v279_v31 = vld [vmem:[#allocation5 + $0x5d0] sm:$0xff] }
  0xcc   :  { %3366 = vmatprep.subr.bf16.mxu0 %v8667_v41  ;;  %3472 = vmatprep.subr.bf16.mxu1 %v8669_v45  ;;  %v168_v41 = vld [vmem:[#allocation5 + $0x258] sm:$0xff]  ;;  %v175_v45 = vld [vmem:[#allocation5 + $0x290] sm:$0xff]  ;;  %v8399_v37 = vcombine.high %v271_v30, %v279_v31 }
  0xcd   :  { %v8288_v52 = vcombine.low %v160_v39, %v168_v41  ;;  %v8302_v59 = vcombine.low %v175_v45, %v183_v46 }
  0xcf   :  { %3367 = vmatpush1.bf16.msra.mxu0 %v8666_v47  ;;  %3473 = vmatpush1.bf16.msra.mxu1 %v8668_v48  ;;  %v176_v47 = vld [vmem:[#allocation5 + $0x298] sm:$0xff]  ;;  %v8289_v48 = vcombine.high %v160_v39, %v168_v41  ;;  %v295_v39 = vld [vmem:[#allocation5 + $0x650] sm:$0xff] }
  0xd0   :  { %3368 = vmatprep.subr.bf16.mxu0 %v8683_v49  ;;  %3474 = vmatprep.subr.bf16.mxu1 %v8685_v53  ;;  %v184_v49 = vld [vmem:[#allocation5 + $0x2d8] sm:$0xff]  ;;  %v8303_v53 = vcombine.high %v175_v45, %v183_v46  ;;  %v8415_v45 = vcombine.high %v287_v38, %v295_v39  ;;  %v303_v46 = vld [vmem:[#allocation5 + $0x690] sm:$0xff] }
  0xd1   :  { %v8304_v60 = vcombine.low %v176_v47, %v184_v49 }
  0xd3   :  { %3369 = vmatpush1.bf16.msra.mxu0 %v8682_v55  ;;  %3475 = vmatpush1.bf16.msra.mxu1 %v8684_v56  ;;  %v199_v55 = vld [vmem:[#allocation5 + $0x350] sm:$0xff]  ;;  %v192_v56 = vld [vmem:[#allocation5 + $0x318] sm:$0xff] }
  0xd4   :  { %3370 = vmatprep.subr.bf16.mxu0 %v8699_v57  ;;  %3476 = vmatprep.subr.bf16.mxu1 %v8701_v61  ;;  %v8305_v57 = vcombine.high %v176_v47, %v184_v49  ;;  %v8319_v61 = vcombine.high %v191_v54, %v199_v55  ;;  %v8318_v3 = vcombine.low %v191_v54, %v199_v55  ;;  %v311_v47 = vld [vmem:[#allocation5 + $0x6d0] sm:$0xff] }
  0xd5   :  { %v8320_v4 = vcombine.low %v192_v56, %v200_v58  ;;  %v319_v54 = vld [vmem:[#allocation5 + $0x710] sm:$0xff] }
  0xd6   :  { %v327_v55 = vld [vmem:[#allocation5 + $0x750] sm:$0xff] }
  0xd7   :  { %3371 = vmatpush1.bf16.msra.mxu0 %v8698_v63  ;;  %3477 = vmatpush1.bf16.msra.mxu1 %v8700_v0  ;;  %v215_v63 = vld [vmem:[#allocation5 + $0x3d0] sm:$0xff]  ;;  %v208_v0 = vld [vmem:[#allocation5 + $0x398] sm:$0xff] }
  0xd8   :  { %3372 = vmatprep.subr.bf16.mxu0 %v8715_v1  ;;  %3478 = vmatprep.subr.bf16.mxu1 %v8717_v5  ;;  %v8321_v1 = vcombine.high %v192_v56, %v200_v58  ;;  %v8335_v5 = vcombine.high %v207_v62, %v215_v63  ;;  %v8334_v11 = vcombine.low %v207_v62, %v215_v63  ;;  %v320_v56 = vld [vmem:[#allocation5 + $0x718] sm:$0xff]  ;;  %v335_v62 = vld [vmem:[#allocation5 + $0x790] sm:$0xff] }
  0xd9   :  { %v8336_v12 = vcombine.low %v208_v0, %v216_v2  ;;  %v328_v58 = vld [vmem:[#allocation5 + $0x758] sm:$0xff]  ;;  %v343_v63 = vld [vmem:[#allocation5 + $0x7d0] sm:$0xff] }
  0xdb   :  { %3373 = vmatpush1.bf16.msra.mxu0 %v8714_v7  ;;  %3479 = vmatpush1.bf16.msra.mxu1 %v8716_v8  ;;  %v231_v7 = vld [vmem:[#allocation5 + $0x450] sm:$0xff]  ;;  %v224_v8 = vld [vmem:[#allocation5 + $0x418] sm:$0xff] }
  0xdc   :  { %3501 = vmatprep.subr.bf16.mxu0 %v8223_v10  ;;  %3607 = vmatprep.subr.bf16.mxu1 %v8225_v14  ;;  %v232_v10 = vld [vmem:[#allocation5 + $0x458] sm:$0xff]  ;;  %v8351_v13 = vcombine.high %v223_v6, %v231_v7  ;;  %v239_v14 = vld [vmem:[#allocation5 + $0x490] sm:$0xff] }
  0xdd   :  { %v8352_v20 = vcombine.low %v224_v8, %v232_v10  ;;  %v8367_v21 = vcombine.high %v239_v14, %v247_v15 }
  0xde   :  { %3375 = vmatmul.mubr.bf16.vlgmr.msra.gmra.mrb[0].mxu0 %v9518_v9  ;;  %3481 = vmatmul.mubr.bf16.vlgmr.msra.gmra.mrb[0].mxu1 %v9518_v9  ;;  %v8337_v9 = vcombine.high %v208_v0, %v216_v2  ;;  %v336_v0 = vld [vmem:[#allocation5 + $0x798] sm:$0xff] }
  0xdf   :  { %3502 = vmatpush1.bf16.msra.mxu0 %v8222_v16  ;;  %3608 = vmatpush1.bf16.msra.mxu1 %v8224_v18  ;;  %v240_v16 = vld [vmem:[#allocation5 + $0x498] sm:$0xff] }
  0xe0   :  { %3503 = vmatprep.subr.bf16.mxu0 %v8239_v19  ;;  %3609 = vmatprep.subr.bf16.mxu1 %v8241_v23  ;;  %v248_v18 = vld [vmem:[#allocation5 + $0x4d8] sm:$0xff]  ;;  %v8350_v19 = vcombine.low %v223_v6, %v231_v7  ;;  %v263_v23 = vld [vmem:[#allocation5 + $0x550] sm:$0xff] }
  0xe1   :  { %3384 = vmatprep.mubr.bf16.mxu0 %v9519_v17  ;;  %3490 = vmatprep.mubr.bf16.mxu1 %v9519_v17  ;;  %v8353_v17 = vcombine.high %v224_v8, %v232_v10  ;;  %v8383_v29 = vcombine.high %v255_v22, %v263_v23  ;;  %v344_v2 = vld [vmem:[#allocation5 + $0x7d8] sm:$0xff]  ;;  %v351_v6 = vld [vmem:[#allocation5 + $0x810] sm:$0xff] }
  0xe2   :  { %v359_v7 = vld [vmem:[#allocation5 + $0x850] sm:$0xff]  ;;  %v352_v8 = vld [vmem:[#allocation5 + $0x818] sm:$0xff] }
  0xe3   :  { %3504 = vmatpush1.bf16.msra.mxu0 %v8238_v25  ;;  %3610 = vmatpush1.bf16.msra.mxu1 %v8240_v26  ;;  %v8369_v25 = vcombine.high %v240_v16, %v248_v18  ;;  %v264_v26 = vld [vmem:[#allocation5 + $0x558] sm:$0xff] }
  0xe4   :  { %3505 = vmatprep.subr.bf16.mxu0 %v8255_v28  ;;  %3611 = vmatprep.subr.bf16.mxu1 %v8257_v32  ;;  %v8368_v28 = vcombine.low %v240_v16, %v248_v18  ;;  %v272_v32 = vld [vmem:[#allocation5 + $0x598] sm:$0xff]  ;;  %v8385_v33 = vcombine.high %v256_v24, %v264_v26 }
  0xe5   :  { %v360_v10 = vld [vmem:[#allocation5 + $0x858] sm:$0xff] }
  0xe6   :  { %3385 = vmatmul.mubr.bf16.gmra.mrb[4].mxu0 %v9521_v27  ;;  %3491 = vmatmul.mubr.bf16.gmra.mrb[4].mxu1 %v9521_v27  ;;  %v8366_v27 = vcombine.low %v239_v14, %v247_v15  ;;  %v367_v14 = vld [vmem:[#allocation5 + $0x890] sm:$0xff]  ;;  %v368_v16 = vld [vmem:[#allocation5 + $0x898] sm:$0xff] }
  0xe7   :  { %3506 = vmatpush1.bf16.msra.mxu0 %v8254_v34  ;;  %3612 = vmatpush1.bf16.msra.mxu1 %v8256_v35  ;;  %v280_v34 = vld [vmem:[#allocation5 + $0x5d8] sm:$0xff]  ;;  %v8382_v35 = vcombine.low %v255_v22, %v263_v23  ;;  %v375_v15 = vld [vmem:[#allocation5 + $0x8d0] sm:$0xff] }
  0xe8   :  { %3507 = vmatprep.subr.bf16.mxu0 %v8271_v36  ;;  %3613 = vmatprep.subr.bf16.mxu1 %v8273_v40  ;;  %v8384_v36 = vcombine.low %v256_v24, %v264_v26  ;;  %v288_v40 = vld [vmem:[#allocation5 + $0x618] sm:$0xff]  ;;  %v8401_v41 = vcombine.high %v272_v32, %v280_v34  ;;  %v383_v22 = vld [vmem:[#allocation5 + $0x910] sm:$0xff] }
  0xe9   :  { %3533 = vmatprep.mubr.bf16.mxu0 %v10290_v50  ;;  %3639 = vmatprep.mubr.bf16.mxu1 %v10290_v50  ;;  %v312_v50 = vld [vmem:[#allocation5 + $0x6d8] sm:$0xff]  ;;  %v391_v23 = vld [vmem:[#allocation5 + $0x950] sm:$0xff] }
  0xea   :  { %v376_v18 = vld [vmem:[#allocation5 + $0x8d8] sm:$0xff] }
  0xeb   :  { %3508 = vmatpush1.bf16.msra.mxu0 %v8270_v42  ;;  %3614 = vmatpush1.bf16.msra.mxu1 %v8272_v43  ;;  %v296_v42 = vld [vmem:[#allocation5 + $0x658] sm:$0xff]  ;;  %v8398_v43 = vcombine.low %v271_v30, %v279_v31  ;;  %v8511_v30 = vcombine.high %v383_v22, %v391_v23  ;;  %v399_v31 = vld [vmem:[#allocation5 + $0x990] sm:$0xff] }
  0xec   :  { %3509 = vmatprep.subr.bf16.mxu0 %v8287_v44  ;;  %3615 = vmatprep.subr.bf16.mxu1 %v8289_v48  ;;  %v8400_v44 = vcombine.low %v272_v32, %v280_v34  ;;  %v304_v48 = vld [vmem:[#allocation5 + $0x698] sm:$0xff]  ;;  %v8417_v49 = vcombine.high %v288_v40, %v296_v42  ;;  %v407_v32 = vld [vmem:[#allocation5 + $0x9d0] sm:$0xff] }
  0xed   :  { %v384_v24 = vld [vmem:[#allocation5 + $0x918] sm:$0xff] }
  0xee   :  { %v392_v26 = vld [vmem:[#allocation5 + $0x958] sm:$0xff] }
  0xef   :  { %3510 = vmatpush1.bf16.msra.mxu0 %v8286_v51  ;;  %3616 = vmatpush1.bf16.msra.mxu1 %v8288_v52  ;;  %v8414_v51 = vcombine.low %v287_v38, %v295_v39  ;;  %v8416_v52 = vcombine.low %v288_v40, %v296_v42  ;;  %v8513_v34 = vcombine.high %v384_v24, %v392_v26  ;;  %v415_v40 = vld [vmem:[#allocation5 + $0xa10] sm:$0xff]  ;;  %v416_v42 = vld [vmem:[#allocation5 + $0xa18] sm:$0xff] }
  0xf0   :  { %3511 = vmatprep.subr.bf16.mxu0 %v8303_v53  ;;  %3617 = vmatprep.subr.bf16.mxu1 %v8305_v57  ;;  %v8431_v53 = vcombine.high %v303_v46, %v311_v47  ;;  %v8433_v57 = vcombine.high %v304_v48, %v312_v50  ;;  %v8512_v38 = vcombine.low %v384_v24, %v392_v26  ;;  %v511_v26 = vld [vmem:[#allocation5 + $0xd10] sm:$0xff] }
  0xf1   :  { %v8527_v39 = vcombine.high %v399_v31, %v407_v32 }
  0xf3   :  { %3512 = vmatpush1.bf16.msra.mxu0 %v8302_v59  ;;  %3618 = vmatpush1.bf16.msra.mxu1 %v8304_v60  ;;  %v8430_v59 = vcombine.low %v303_v46, %v311_v47  ;;  %v8432_v60 = vcombine.low %v304_v48, %v312_v50  ;;  %v8526_v46 = vcombine.low %v399_v31, %v407_v32  ;;  %v439_v50 = vld [vmem:[#allocation5 + $0xad0] sm:$0xff] }
  0xf4   :  { %3513 = vmatprep.subr.bf16.mxu0 %v8319_v61  ;;  %3619 = vmatprep.subr.bf16.mxu1 %v8321_v1  ;;  %v8447_v61 = vcombine.high %v319_v54, %v327_v55  ;;  %v8449_v1 = vcombine.high %v320_v56, %v328_v58 }
  0xf7   :  { %3514 = vmatpush1.bf16.msra.mxu0 %v8318_v3  ;;  %3620 = vmatpush1.bf16.msra.mxu1 %v8320_v4  ;;  %v8446_v3 = vcombine.low %v319_v54, %v327_v55  ;;  %v8448_v4 = vcombine.low %v320_v56, %v328_v58  ;;  %v10294_v54 = vld [vmem:[#allocation2 + $0xc] ss:$16 sps:$4 sm:$0xff]   ;;  %v447_v58 = vld [vmem:[#allocation5 + $0xb10] sm:$0xff] }
  0xf8   :  { %3515 = vmatprep.subr.bf16.mxu0 %v8335_v5  ;;  %3621 = vmatprep.subr.bf16.mxu1 %v8337_v9  ;;  %v8463_v5 = vcombine.high %v335_v62, %v343_v63  ;;  %v8465_v9 = vcombine.high %v336_v0, %v344_v2 }
  0xfb   :  { %3516 = vmatpush1.bf16.msra.mxu0 %v8334_v11  ;;  %3622 = vmatpush1.bf16.msra.mxu1 %v8336_v12  ;;  %v8462_v11 = vcombine.low %v335_v62, %v343_v63  ;;  %v8464_v12 = vcombine.low %v336_v0, %v344_v2  ;;  %v456_v62 = vld [vmem:[#allocation5 + $0xb58] sm:$0xff]  ;;  %v463_v2 = vld [vmem:[#allocation5 + $0xb90] sm:$0xff] }
  0xfc   :  { %3517 = vmatprep.subr.bf16.mxu0 %v8351_v13  ;;  %3623 = vmatprep.subr.bf16.mxu1 %v8353_v17  ;;  %v8479_v13 = vcombine.high %v351_v6, %v359_v7  ;;  %v8481_v17 = vcombine.high %v352_v8, %v360_v10 }
  0xff   :  { %3518 = vmatpush1.bf16.msra.mxu0 %v8350_v19  ;;  %3624 = vmatpush1.bf16.msra.mxu1 %v8352_v20  ;;  %v8478_v19 = vcombine.low %v351_v6, %v359_v7  ;;  %v8480_v20 = vcombine.low %v352_v8, %v360_v10  ;;  %v472_v6 = vld [vmem:[#allocation5 + $0xbd8] sm:$0xff]  ;;  %v479_v10 = vld [vmem:[#allocation5 + $0xc10] sm:$0xff] }
 0x100   :  { %3519 = vmatprep.subr.bf16.mxu0 %v8367_v21  ;;  %3625 = vmatprep.subr.bf16.mxu1 %v8369_v25  ;;  %v8495_v21 = vcombine.high %v367_v14, %v375_v15  ;;  %v8497_v25 = vcombine.high %v368_v16, %v376_v18 }
 0x103   :  { %3520 = vmatpush1.bf16.msra.mxu0 %v8366_v27  ;;  %3626 = vmatpush1.bf16.msra.mxu1 %v8368_v28  ;;  %v10291_v27 = vld [vmem:[#allocation2] ss:$16 sps:$4 sm:$0xff]   ;;  %v8494_v28 = vcombine.low %v367_v14, %v375_v15  ;;  %v488_v14 = vld [vmem:[#allocation5 + $0xc58] sm:$0xff] }
 0x104   :  { %3521 = vmatprep.subr.bf16.mxu0 %v8383_v29  ;;  %3627 = vmatprep.subr.bf16.mxu1 %v8385_v33  ;;  %v8496_v29 = vcombine.low %v368_v16, %v376_v18  ;;  %v400_v33 = vld [vmem:[#allocation5 + $0x998] sm:$0xff]  ;;  %v495_v18 = vld [vmem:[#allocation5 + $0xc90] sm:$0xff] }
 0x107   :  { %3522 = vmatpush1.bf16.msra.mxu0 %v8382_v35  ;;  %3628 = vmatpush1.bf16.msra.mxu1 %v8384_v36  ;;  %v408_v35 = vld [vmem:[#allocation5 + $0x9d8] sm:$0xff]  ;;  %v10292_v36 = vld [vmem:[#allocation2 + $0x24] ss:$16 sps:$4 sm:$0xff]  }
 0x108   :  { %3523 = vmatprep.subr.bf16.mxu0 %v8399_v37  ;;  %3629 = vmatprep.subr.bf16.mxu1 %v8401_v41  ;;  %v8510_v37 = vcombine.low %v383_v22, %v391_v23  ;;  %v423_v41 = vld [vmem:[#allocation5 + $0xa50] sm:$0xff]  ;;  %v8528_v47 = vcombine.low %v400_v33, %v408_v35  ;;  %v504_v22 = vld [vmem:[#allocation5 + $0xcd8] sm:$0xff] }
 0x109   :  { %v8543_v48 = vcombine.high %v415_v40, %v423_v41  ;;  %v8542_v55 = vcombine.low %v415_v40, %v423_v41 }
 0x10b   :  { %3524 = vmatpush1.bf16.msra.mxu0 %v8398_v43  ;;  %3630 = vmatpush1.bf16.msra.mxu1 %v8400_v44  ;;  %v8529_v43 = vcombine.high %v400_v33, %v408_v35  ;;  %v424_v44 = vld [vmem:[#allocation5 + $0xa58] sm:$0xff]  ;;  %v535_v35 = vld [vmem:[#allocation5 + $0xdd0] sm:$0xff] }
 0x10c   :  { %3525 = vmatprep.subr.bf16.mxu0 %v8415_v45  ;;  %3631 = vmatprep.subr.bf16.mxu1 %v8417_v49  ;;  %v10293_v45 = vld [vmem:[#allocation2 + $0x20] ss:$16 sps:$4 sm:$0xff]   ;;  %v8544_v56 = vcombine.low %v416_v42, %v424_v44 }
 0x10d   :  { %v431_v49 = vld [vmem:[#allocation5 + $0xa90] sm:$0xff] }
 0x10e   :  { %v8558_v63 = vcombine.low %v431_v49, %v439_v50 }
 0x10f   :  { %3526 = vmatpush1.bf16.msra.mxu0 %v8414_v51  ;;  %3632 = vmatpush1.bf16.msra.mxu1 %v8416_v52  ;;  %v432_v51 = vld [vmem:[#allocation5 + $0xa98] sm:$0xff]  ;;  %v8545_v52 = vcombine.high %v416_v42, %v424_v44  ;;  %v543_v42 = vld [vmem:[#allocation5 + $0xe10] sm:$0xff] }
 0x110   :  { %3527 = vmatprep.subr.bf16.mxu0 %v8431_v53  ;;  %3633 = vmatprep.subr.bf16.mxu1 %v8433_v57  ;;  %v440_v53 = vld [vmem:[#allocation5 + $0xad8] sm:$0xff]  ;;  %v8559_v57 = vcombine.high %v431_v49, %v439_v50  ;;  %v559_v50 = vld [vmem:[#allocation5 + $0xe90] sm:$0xff] }
 0x111   :  { %v8560_v0 = vcombine.low %v432_v51, %v440_v53  ;;  %v544_v44 = vld [vmem:[#allocation5 + $0xe18] sm:$0xff] }
 0x113   :  { %3528 = vmatpush1.bf16.msra.mxu0 %v8430_v59  ;;  %3634 = vmatpush1.bf16.msra.mxu1 %v8432_v60  ;;  %v455_v59 = vld [vmem:[#allocation5 + $0xb50] sm:$0xff]  ;;  %v448_v60 = vld [vmem:[#allocation5 + $0xb18] sm:$0xff] }
 0x114   :  { %3529 = vmatprep.subr.bf16.mxu0 %v8447_v61  ;;  %3635 = vmatprep.subr.bf16.mxu1 %v8449_v1  ;;  %v8561_v61 = vcombine.high %v432_v51, %v440_v53  ;;  %v8575_v1 = vcombine.high %v447_v58, %v455_v59  ;;  %v8574_v7 = vcombine.low %v447_v58, %v455_v59  ;;  %v567_v51 = vld [vmem:[#allocation5 + $0xed0] sm:$0xff] }
 0x115   :  { %v8576_v8 = vcombine.low %v448_v60, %v456_v62  ;;  %v575_v58 = vld [vmem:[#allocation5 + $0xf10] sm:$0xff] }
 0x116   :  { %v583_v59 = vld [vmem:[#allocation5 + $0xf50] sm:$0xff] }
 0x117   :  { %3530 = vmatpush1.bf16.msra.mxu0 %v8446_v3  ;;  %3636 = vmatpush1.bf16.msra.mxu1 %v8448_v4  ;;  %v471_v3 = vld [vmem:[#allocation5 + $0xbd0] sm:$0xff]  ;;  %v8577_v4 = vcombine.high %v448_v60, %v456_v62  ;;  %v576_v60 = vld [vmem:[#allocation5 + $0xf18] sm:$0xff] }
 0x118   :  { %3531 = vmatprep.subr.bf16.mxu0 %v8463_v5  ;;  %3637 = vmatprep.subr.bf16.mxu1 %v8465_v9  ;;  %v464_v5 = vld [vmem:[#allocation5 + $0xb98] sm:$0xff]  ;;  %v8591_v9 = vcombine.high %v463_v2, %v471_v3  ;;  %v8590_v15 = vcombine.low %v463_v2, %v471_v3  ;;  %v591_v2 = vld [vmem:[#allocation5 + $0xf90] sm:$0xff] }
 0x119   :  { %v8592_v16 = vcombine.low %v464_v5, %v472_v6  ;;  %v584_v62 = vld [vmem:[#allocation5 + $0xf58] sm:$0xff]  ;;  %v599_v3 = vld [vmem:[#allocation5 + $0xfd0] sm:$0xff] }
 0x11b   :  { %3532 = vmatpush1.bf16.msra.mxu0 %v8462_v11  ;;  %3638 = vmatpush1.bf16.msra.mxu1 %v8464_v12  ;;  %v487_v11 = vld [vmem:[#allocation5 + $0xc50] sm:$0xff]  ;;  %v480_v12 = vld [vmem:[#allocation5 + $0xc18] sm:$0xff] }
 0x11c   :  { %3554 = vmatprep.subr.bf16.mxu0 %v8479_v13  ;;  %3660 = vmatprep.subr.bf16.mxu1 %v8481_v17  ;;  %v8593_v13 = vcombine.high %v464_v5, %v472_v6  ;;  %v8607_v17 = vcombine.high %v479_v10, %v487_v11  ;;  %v8606_v23 = vcombine.low %v479_v10, %v487_v11  ;;  %v600_v6 = vld [vmem:[#allocation5 + $0xfd8] sm:$0xff]  ;;  %v97_v10 = vld [vmem:[#allocation5 + $0x20] sm:$0xff] }
 0x11d   :  { %v8608_v24 = vcombine.low %v480_v12, %v488_v14  ;;  %v8705_v5 = vcombine.high %v576_v60, %v584_v62  ;;  %v105_v11 = vld [vmem:[#allocation5 + $0x60] sm:$0xff] }
 0x11e   :  { %3534 = vmatmul.mubr.bf16.vlgmr.msra.gmra.mrb[8].mxu0 %v10291_v27  ;;  %3640 = vmatmul.mubr.bf16.vlgmr.msra.gmra.mrb[8].mxu1 %v10291_v27  ;;  %v519_v27 = vld [vmem:[#allocation5 + $0xd50] sm:$0xff] }
 0x11f   :  { %3555 = vmatpush1.bf16.msra.mxu0 %v8478_v19  ;;  %3661 = vmatpush1.bf16.msra.mxu1 %v8480_v20  ;;  %v503_v19 = vld [vmem:[#allocation5 + $0xcd0] sm:$0xff]  ;;  %v496_v20 = vld [vmem:[#allocation5 + $0xc98] sm:$0xff]  ;;  %v8639_v33 = vcombine.high %v511_v26, %v519_v27 }
 0x120   :  { %3556 = vmatprep.subr.bf16.mxu0 %v8495_v21  ;;  %3662 = vmatprep.subr.bf16.mxu1 %v8497_v25  ;;  %v8609_v21 = vcombine.high %v480_v12, %v488_v14  ;;  %v8623_v25 = vcombine.high %v495_v18, %v503_v19  ;;  %v8622_v31 = vcombine.low %v495_v18, %v503_v19  ;;  %v98_v12 = vld [vmem:[#allocation5 + $0x28] sm:$0xff]  ;;  %v113_v18 = vld [vmem:[#allocation5 + $0xa0] sm:$0xff] }
 0x121   :  { %3543 = vmatprep.mubr.bf16.mxu0 %v10292_v36  ;;  %3649 = vmatprep.mubr.bf16.mxu1 %v10292_v36  ;;  %v8624_v32 = vcombine.low %v496_v20, %v504_v22  ;;  %v528_v36 = vld [vmem:[#allocation5 + $0xd98] sm:$0xff]  ;;  %v106_v14 = vld [vmem:[#allocation5 + $0x68] sm:$0xff]  ;;  %v121_v19 = vld [vmem:[#allocation5 + $0xe0] sm:$0xff] }
 0x123   :  { %3557 = vmatpush1.bf16.msra.mxu0 %v8494_v28  ;;  %3663 = vmatpush1.bf16.msra.mxu1 %v8496_v29  ;;  %v512_v28 = vld [vmem:[#allocation5 + $0xd18] sm:$0xff]  ;;  %v8625_v29 = vcombine.high %v496_v20, %v504_v22  ;;  %v114_v20 = vld [vmem:[#allocation5 + $0xa8] sm:$0xff] }
 0x124   :  { %3558 = vmatprep.subr.bf16.mxu0 %v8511_v30  ;;  %3664 = vmatprep.subr.bf16.mxu1 %v8513_v34  ;;  %v520_v30 = vld [vmem:[#allocation5 + $0xd58] sm:$0xff]  ;;  %v527_v34 = vld [vmem:[#allocation5 + $0xd90] sm:$0xff]  ;;  %v122_v22 = vld [vmem:[#allocation5 + $0xe8] sm:$0xff] }
 0x125   :  { %v8640_v40 = vcombine.low %v512_v28, %v520_v30  ;;  %v8655_v41 = vcombine.high %v527_v34, %v535_v35 }
 0x126   :  { %3544 = vmatmul.mubr.bf16.gmra.mrb[12].mxu0 %v10293_v45  ;;  %3650 = vmatmul.mubr.bf16.gmra.mrb[12].mxu1 %v10293_v45 }
 0x127   :  { %3559 = vmatpush1.bf16.msra.mxu0 %v8510_v37  ;;  %3665 = vmatpush1.bf16.msra.mxu1 %v8512_v38  ;;  %v8641_v37 = vcombine.high %v512_v28, %v520_v30  ;;  %v536_v38 = vld [vmem:[#allocation5 + $0xdd8] sm:$0xff]  ;;  %v130_v28 = vld [vmem:[#allocation5 + $0x128] sm:$0xff] }
 0x128   :  { %3560 = vmatprep.subr.bf16.mxu0 %v8527_v39  ;;  %3666 = vmatprep.subr.bf16.mxu1 %v8529_v43  ;;  %v8638_v39 = vcombine.low %v511_v26, %v519_v27  ;;  %v551_v43 = vld [vmem:[#allocation5 + $0xe50] sm:$0xff]  ;;  %v8657_v45 = vcombine.high %v528_v36, %v536_v38  ;;  %v129_v26 = vld [vmem:[#allocation5 + $0x120] sm:$0xff]  ;;  %v138_v30 = vld [vmem:[#allocation5 + $0x168] sm:$0xff] }
 0x129   :  { %3586 = vmatprep.mubr.bf16.mxu0 %v10294_v54  ;;  %3692 = vmatprep.mubr.bf16.mxu1 %v10294_v54  ;;  %v8671_v49 = vcombine.high %v543_v42, %v551_v43  ;;  %v568_v54 = vld [vmem:[#allocation5 + $0xed8] sm:$0xff]  ;;  %v137_v27 = vld [vmem:[#allocation5 + $0x160] sm:$0xff] }
 0x12b   :  { %3561 = vmatpush1.bf16.msra.mxu0 %v8526_v46  ;;  %3667 = vmatpush1.bf16.msra.mxu1 %v8528_v47  ;;  %v552_v46 = vld [vmem:[#allocation5 + $0xe58] sm:$0xff]  ;;  %v8654_v47 = vcombine.low %v527_v34, %v535_v35  ;;  %v8259_v34 = vcombine.high %v129_v26, %v137_v27  ;;  %v145_v35 = vld [vmem:[#allocation5 + $0x1a0] sm:$0xff] }
 0x12c   :  { %3562 = vmatprep.subr.bf16.mxu0 %v8543_v48  ;;  %3668 = vmatprep.subr.bf16.mxu1 %v8545_v52  ;;  %v8656_v48 = vcombine.low %v528_v36, %v536_v38  ;;  %v560_v52 = vld [vmem:[#allocation5 + $0xe98] sm:$0xff]  ;;  %v8673_v53 = vcombine.high %v544_v44, %v552_v46  ;;  %v153_v36 = vld [vmem:[#allocation5 + $0x1e0] sm:$0xff] }
 0x12d   :  { %v10296_v38 = vld [vmem:[#allocation2 + $0x2c] ss:$16 sps:$4 sm:$0xff]  }
 0x12f   :  { %3563 = vmatpush1.bf16.msra.mxu0 %v8542_v55  ;;  %3669 = vmatpush1.bf16.msra.mxu1 %v8544_v56  ;;  %v8670_v55 = vcombine.low %v543_v42, %v551_v43  ;;  %v8672_v56 = vcombine.low %v544_v44, %v552_v46  ;;  %v8260_v42 = vcombine.low %v130_v28, %v138_v30  ;;  %v161_v44 = vld [vmem:[#allocation5 + $0x220] sm:$0xff]  ;;  %v162_v46 = vld [vmem:[#allocation5 + $0x228] sm:$0xff] }
 0x130   :  { %3564 = vmatprep.subr.bf16.mxu0 %v8559_v57  ;;  %3670 = vmatprep.subr.bf16.mxu1 %v8561_v61  ;;  %v8687_v57 = vcombine.high %v559_v50, %v567_v51  ;;  %v8689_v61 = vcombine.high %v560_v52, %v568_v54  ;;  %v8275_v43 = vcombine.high %v145_v35, %v153_v36 }
 0x133   :  { %3565 = vmatpush1.bf16.msra.mxu0 %v8558_v63  ;;  %3671 = vmatpush1.bf16.msra.mxu1 %v8560_v0  ;;  %v8686_v63 = vcombine.low %v559_v50, %v567_v51  ;;  %v8688_v0 = vcombine.low %v560_v52, %v568_v54  ;;  %v8274_v50 = vcombine.low %v145_v35, %v153_v36  ;;  %v185_v54 = vld [vmem:[#allocation5 + $0x2e0] sm:$0xff] }
 0x134   :  { %3566 = vmatprep.subr.bf16.mxu0 %v8575_v1  ;;  %3672 = vmatprep.subr.bf16.mxu1 %v8577_v4  ;;  %v8703_v1 = vcombine.high %v575_v58, %v583_v59  ;;  %v592_v4 = vld [vmem:[#allocation5 + $0xf98] sm:$0xff] }
 0x137   :  { %3567 = vmatpush1.bf16.msra.mxu0 %v8574_v7  ;;  %3673 = vmatpush1.bf16.msra.mxu1 %v8576_v8  ;;  %v8702_v7 = vcombine.low %v575_v58, %v583_v59  ;;  %v8704_v8 = vcombine.low %v576_v60, %v584_v62  ;;  %v10298_v58 = vld [vmem:[#allocation2 + $0x4] ss:$16 sps:$4 sm:$0xff]  }
 0x138   :  { %3568 = vmatprep.subr.bf16.mxu0 %v8591_v9  ;;  %3674 = vmatprep.subr.bf16.mxu1 %v8593_v13  ;;  %v8719_v9 = vcombine.high %v591_v2, %v599_v3  ;;  %v8721_v13 = vcombine.high %v592_v4, %v600_v6  ;;  %v193_v62 = vld [vmem:[#allocation5 + $0x320] sm:$0xff] }
 0x13b   :  { %3569 = vmatpush1.bf16.msra.mxu0 %v8590_v15  ;;  %3675 = vmatpush1.bf16.msra.mxu1 %v8592_v16  ;;  %v8718_v15 = vcombine.low %v591_v2, %v599_v3  ;;  %v8720_v16 = vcombine.low %v592_v4, %v600_v6  ;;  %v202_v2 = vld [vmem:[#allocation5 + $0x368] sm:$0xff]  ;;  %v209_v6 = vld [vmem:[#allocation5 + $0x3a0] sm:$0xff] }
 0x13c   :  { %3570 = vmatprep.subr.bf16.mxu0 %v8607_v17  ;;  %3676 = vmatprep.subr.bf16.mxu1 %v8609_v21  ;;  %v8227_v17 = vcombine.high %v97_v10, %v105_v11  ;;  %v8229_v21 = vcombine.high %v98_v12, %v106_v14 }
 0x13f   :  { %3571 = vmatpush1.bf16.msra.mxu0 %v8606_v23  ;;  %3677 = vmatpush1.bf16.msra.mxu1 %v8608_v24  ;;  %v8226_v23 = vcombine.low %v97_v10, %v105_v11  ;;  %v8228_v24 = vcombine.low %v98_v12, %v106_v14  ;;  %v218_v10 = vld [vmem:[#allocation5 + $0x3e8] sm:$0xff]  ;;  %v225_v14 = vld [vmem:[#allocation5 + $0x420] sm:$0xff] }
 0x140   :  { %3572 = vmatprep.subr.bf16.mxu0 %v8623_v25  ;;  %3678 = vmatprep.subr.bf16.mxu1 %v8625_v29  ;;  %v8243_v25 = vcombine.high %v113_v18, %v121_v19  ;;  %v8245_v29 = vcombine.high %v114_v20, %v122_v22 }
 0x143   :  { %3573 = vmatpush1.bf16.msra.mxu0 %v8622_v31  ;;  %3679 = vmatpush1.bf16.msra.mxu1 %v8624_v32  ;;  %v10295_v31 = vld [vmem:[#allocation2 + $0x8] ss:$16 sps:$4 sm:$0xff]   ;;  %v8242_v32 = vcombine.low %v113_v18, %v121_v19 }
 0x144   :  { %3574 = vmatprep.subr.bf16.mxu0 %v8639_v33  ;;  %3680 = vmatprep.subr.bf16.mxu1 %v8641_v37  ;;  %v8244_v33 = vcombine.low %v114_v20, %v122_v22  ;;  %v146_v37 = vld [vmem:[#allocation5 + $0x1a8] sm:$0xff]  ;;  %v241_v22 = vld [vmem:[#allocation5 + $0x4a0] sm:$0xff] }
 0x145   :  { %v234_v18 = vld [vmem:[#allocation5 + $0x468] sm:$0xff] }
 0x147   :  { %3575 = vmatpush1.bf16.msra.mxu0 %v8638_v39  ;;  %3681 = vmatpush1.bf16.msra.mxu1 %v8640_v40  ;;  %v8261_v39 = vcombine.high %v130_v28, %v138_v30  ;;  %v154_v40 = vld [vmem:[#allocation5 + $0x1e8] sm:$0xff]  ;;  %v257_v30 = vld [vmem:[#allocation5 + $0x520] sm:$0xff] }
 0x148   :  { %3576 = vmatprep.subr.bf16.mxu0 %v8655_v41  ;;  %3682 = vmatprep.subr.bf16.mxu1 %v8657_v45  ;;  %v8258_v41 = vcombine.low %v129_v26, %v137_v27  ;;  %v169_v45 = vld [vmem:[#allocation5 + $0x260] sm:$0xff]  ;;  %v8276_v51 = vcombine.low %v146_v37, %v154_v40  ;;  %v250_v26 = vld [vmem:[#allocation5 + $0x4e8] sm:$0xff] }
 0x149   :  { %v8291_v52 = vcombine.high %v161_v44, %v169_v45  ;;  %v8290_v59 = vcombine.low %v161_v44, %v169_v45 }
 0x14b   :  { %3577 = vmatpush1.bf16.msra.mxu0 %v8654_v47  ;;  %3683 = vmatpush1.bf16.msra.mxu1 %v8656_v48  ;;  %v8277_v47 = vcombine.high %v146_v37, %v154_v40  ;;  %v170_v48 = vld [vmem:[#allocation5 + $0x268] sm:$0xff] }
 0x14c   :  { %3578 = vmatprep.subr.bf16.mxu0 %v8671_v49  ;;  %3684 = vmatprep.subr.bf16.mxu1 %v8673_v53  ;;  %v10297_v49 = vld [vmem:[#allocation2 + $0x28] ss:$16 sps:$4 sm:$0xff]   ;;  %v177_v53 = vld [vmem:[#allocation5 + $0x2a0] sm:$0xff]  ;;  %v8292_v60 = vcombine.low %v162_v46, %v170_v48 }
 0x14d   :  { %v8306_v3 = vcombine.low %v177_v53, %v185_v54  ;;  %v274_v40 = vld [vmem:[#allocation5 + $0x5a8] sm:$0xff] }
 0x14f   :  { %3579 = vmatpush1.bf16.msra.mxu0 %v8670_v55  ;;  %3685 = vmatpush1.bf16.msra.mxu1 %v8672_v56  ;;  %v178_v55 = vld [vmem:[#allocation5 + $0x2a8] sm:$0xff]  ;;  %v8293_v56 = vcombine.high %v162_v46, %v170_v48  ;;  %v289_v46 = vld [vmem:[#allocation5 + $0x620] sm:$0xff] }
 0x150   :  { %3580 = vmatprep.subr.bf16.mxu0 %v8687_v57  ;;  %3686 = vmatprep.subr.bf16.mxu1 %v8689_v61  ;;  %v186_v57 = vld [vmem:[#allocation5 + $0x2e8] sm:$0xff]  ;;  %v8307_v61 = vcombine.high %v177_v53, %v185_v54  ;;  %v305_v54 = vld [vmem:[#allocation5 + $0x6a0] sm:$0xff] }
 0x151   :  { %v8308_v4 = vcombine.low %v178_v55, %v186_v57  ;;  %v290_v48 = vld [vmem:[#allocation5 + $0x628] sm:$0xff] }
 0x153   :  { %3581 = vmatpush1.bf16.msra.mxu0 %v8686_v63  ;;  %3687 = vmatpush1.bf16.msra.mxu1 %v8688_v0  ;;  %v201_v63 = vld [vmem:[#allocation5 + $0x360] sm:$0xff]  ;;  %v194_v0 = vld [vmem:[#allocation5 + $0x328] sm:$0xff] }
 0x154   :  { %3582 = vmatprep.subr.bf16.mxu0 %v8703_v1  ;;  %3688 = vmatprep.subr.bf16.mxu1 %v8705_v5  ;;  %v8309_v1 = vcombine.high %v178_v55, %v186_v57  ;;  %v8323_v5 = vcombine.high %v193_v62, %v201_v63  ;;  %v8322_v11 = vcombine.low %v193_v62, %v201_v63  ;;  %v313_v55 = vld [vmem:[#allocation5 + $0x6e0] sm:$0xff] }
 0x155   :  { %v8324_v12 = vcombine.low %v194_v0, %v202_v2  ;;  %v321_v62 = vld [vmem:[#allocation5 + $0x720] sm:$0xff] }
 0x156   :  { %v329_v63 = vld [vmem:[#allocation5 + $0x760] sm:$0xff] }
 0x157   :  { %3583 = vmatpush1.bf16.msra.mxu0 %v8702_v7  ;;  %3689 = vmatpush1.bf16.msra.mxu1 %v8704_v8  ;;  %v217_v7 = vld [vmem:[#allocation5 + $0x3e0] sm:$0xff]  ;;  %v210_v8 = vld [vmem:[#allocation5 + $0x3a8] sm:$0xff] }
 0x158   :  { %3584 = vmatprep.subr.bf16.mxu0 %v8719_v9  ;;  %3690 = vmatprep.subr.bf16.mxu1 %v8721_v13  ;;  %v8325_v9 = vcombine.high %v194_v0, %v202_v2  ;;  %v8339_v13 = vcombine.high %v209_v6, %v217_v7  ;;  %v8338_v19 = vcombine.low %v209_v6, %v217_v7  ;;  %v322_v0 = vld [vmem:[#allocation5 + $0x728] sm:$0xff]  ;;  %v337_v6 = vld [vmem:[#allocation5 + $0x7a0] sm:$0xff] }
 0x159   :  { %v8340_v20 = vcombine.low %v210_v8, %v218_v10  ;;  %v330_v2 = vld [vmem:[#allocation5 + $0x768] sm:$0xff]  ;;  %v345_v7 = vld [vmem:[#allocation5 + $0x7e0] sm:$0xff] }
 0x15b   :  { %3585 = vmatpush1.bf16.msra.mxu0 %v8718_v15  ;;  %3691 = vmatpush1.bf16.msra.mxu1 %v8720_v16  ;;  %v233_v15 = vld [vmem:[#allocation5 + $0x460] sm:$0xff]  ;;  %v226_v16 = vld [vmem:[#allocation5 + $0x428] sm:$0xff] }
 0x15c   :  { %3713 = vmatprep.subr.bf16.mxu0 %v8227_v17  ;;  %3819 = vmatprep.subr.bf16.mxu1 %v8229_v21  ;;  %v8341_v17 = vcombine.high %v210_v8, %v218_v10  ;;  %v8355_v21 = vcombine.high %v225_v14, %v233_v15  ;;  %v8354_v27 = vcombine.low %v225_v14, %v233_v15  ;;  %v338_v8 = vld [vmem:[#allocation5 + $0x7a8] sm:$0xff]  ;;  %v353_v14 = vld [vmem:[#allocation5 + $0x820] sm:$0xff] }
 0x15d   :  { %v8356_v28 = vcombine.low %v226_v16, %v234_v18  ;;  %v346_v10 = vld [vmem:[#allocation5 + $0x7e8] sm:$0xff]  ;;  %v361_v15 = vld [vmem:[#allocation5 + $0x860] sm:$0xff] }
 0x15e   :  { %3587 = vmatmul.mubr.bf16.vlgmr.msra.gmra.mrb[8].mxu0 %v10295_v31  ;;  %3693 = vmatmul.mubr.bf16.vlgmr.msra.gmra.mrb[8].mxu1 %v10295_v31  ;;  %v265_v31 = vld [vmem:[#allocation5 + $0x560] sm:$0xff] }
 0x15f   :  { %3714 = vmatpush1.bf16.msra.mxu0 %v8226_v23  ;;  %3820 = vmatpush1.bf16.msra.mxu1 %v8228_v24  ;;  %v249_v23 = vld [vmem:[#allocation5 + $0x4e0] sm:$0xff]  ;;  %v242_v24 = vld [vmem:[#allocation5 + $0x4a8] sm:$0xff]  ;;  %v8387_v37 = vcombine.high %v257_v30, %v265_v31 }
 0x160   :  { %3715 = vmatprep.subr.bf16.mxu0 %v8243_v25  ;;  %3821 = vmatprep.subr.bf16.mxu1 %v8245_v29  ;;  %v8357_v25 = vcombine.high %v226_v16, %v234_v18  ;;  %v8371_v29 = vcombine.high %v241_v22, %v249_v23  ;;  %v8370_v35 = vcombine.low %v241_v22, %v249_v23  ;;  %v354_v16 = vld [vmem:[#allocation5 + $0x828] sm:$0xff]  ;;  %v369_v22 = vld [vmem:[#allocation5 + $0x8a0] sm:$0xff] }
 0x161   :  { %3596 = vmatprep.mubr.bf16.mxu0 %v10296_v38  ;;  %3702 = vmatprep.mubr.bf16.mxu1 %v10296_v38  ;;  %v8372_v36 = vcombine.low %v242_v24, %v250_v26  ;;  %v273_v38 = vld [vmem:[#allocation5 + $0x5a0] sm:$0xff]  ;;  %v362_v18 = vld [vmem:[#allocation5 + $0x868] sm:$0xff] }
 0x162   :  { %v377_v23 = vld [vmem:[#allocation5 + $0x8e0] sm:$0xff] }
 0x163   :  { %3716 = vmatpush1.bf16.msra.mxu0 %v8242_v32  ;;  %3822 = vmatpush1.bf16.msra.mxu1 %v8244_v33  ;;  %v258_v32 = vld [vmem:[#allocation5 + $0x528] sm:$0xff]  ;;  %v8373_v33 = vcombine.high %v242_v24, %v250_v26 }
 0x164   :  { %3717 = vmatprep.subr.bf16.mxu0 %v8259_v34  ;;  %3823 = vmatprep.subr.bf16.mxu1 %v8261_v39  ;;  %v266_v34 = vld [vmem:[#allocation5 + $0x568] sm:$0xff]  ;;  %v281_v39 = vld [vmem:[#allocation5 + $0x5e0] sm:$0xff] }
 0x165   :  { %v8388_v44 = vcombine.low %v258_v32, %v266_v34  ;;  %v8403_v45 = vcombine.high %v273_v38, %v281_v39  ;;  %v370_v24 = vld [vmem:[#allocation5 + $0x8a8] sm:$0xff] }
 0x166   :  { %3597 = vmatmul.mubr.bf16.gmra.mrb[12].mxu0 %v10297_v49  ;;  %3703 = vmatmul.mubr.bf16.gmra.mrb[12].mxu1 %v10297_v49  ;;  %v378_v26 = vld [vmem:[#allocation5 + $0x8e8] sm:$0xff] }
 0x167   :  { %3718 = vmatpush1.bf16.msra.mxu0 %v8258_v41  ;;  %3824 = vmatpush1.bf16.msra.mxu1 %v8260_v42  ;;  %v8389_v41 = vcombine.high %v258_v32, %v266_v34  ;;  %v282_v42 = vld [vmem:[#allocation5 + $0x5e8] sm:$0xff] }
 0x168   :  { %3719 = vmatprep.subr.bf16.mxu0 %v8275_v43  ;;  %3825 = vmatprep.subr.bf16.mxu1 %v8277_v47  ;;  %v8386_v43 = vcombine.low %v257_v30, %v265_v31  ;;  %v297_v47 = vld [vmem:[#allocation5 + $0x660] sm:$0xff]  ;;  %v8405_v49 = vcombine.high %v274_v40, %v282_v42  ;;  %v386_v32 = vld [vmem:[#allocation5 + $0x928] sm:$0xff] }
 0x169   :  { %3745 = vmatprep.mubr.bf16.mxu0 %v10298_v58  ;;  %3851 = vmatprep.mubr.bf16.mxu1 %v10298_v58  ;;  %v8419_v53 = vcombine.high %v289_v46, %v297_v47  ;;  %v314_v58 = vld [vmem:[#allocation5 + $0x6e8] sm:$0xff]  ;;  %v385_v30 = vld [vmem:[#allocation5 + $0x920] sm:$0xff] }
 0x16a   :  { %v393_v31 = vld [vmem:[#allocation5 + $0x960] sm:$0xff]  ;;  %v394_v34 = vld [vmem:[#allocation5 + $0x968] sm:$0xff] }
 0x16b   :  { %3720 = vmatpush1.bf16.msra.mxu0 %v8274_v50  ;;  %3826 = vmatpush1.bf16.msra.mxu1 %v8276_v51  ;;  %v298_v50 = vld [vmem:[#allocation5 + $0x668] sm:$0xff]  ;;  %v8402_v51 = vcombine.low %v273_v38, %v281_v39  ;;  %v8515_v38 = vcombine.high %v385_v30, %v393_v31  ;;  %v401_v39 = vld [vmem:[#allocation5 + $0x9a0] sm:$0xff] }
 0x16c   :  { %3721 = vmatprep.subr.bf16.mxu0 %v8291_v52  ;;  %3827 = vmatprep.subr.bf16.mxu1 %v8293_v56  ;;  %v8404_v52 = vcombine.low %v274_v40, %v282_v42  ;;  %v306_v56 = vld [vmem:[#allocation5 + $0x6a8] sm:$0xff]  ;;  %v8421_v57 = vcombine.high %v290_v48, %v298_v50  ;;  %v409_v40 = vld [vmem:[#allocation5 + $0x9e0] sm:$0xff]  ;;  %v8517_v42 = vcombine.high %v386_v32, %v394_v34 }
 0x16f   :  { %3722 = vmatpush1.bf16.msra.mxu0 %v8290_v59  ;;  %3828 = vmatpush1.bf16.msra.mxu1 %v8292_v60  ;;  %v8418_v59 = vcombine.low %v289_v46, %v297_v47  ;;  %v8420_v60 = vcombine.low %v290_v48, %v298_v50  ;;  %v8514_v46 = vcombine.low %v385_v30, %v393_v31  ;;  %v417_v50 = vld [vmem:[#allocation5 + $0xa20] sm:$0xff] }
 0x170   :  { %3723 = vmatprep.subr.bf16.mxu0 %v8307_v61  ;;  %3829 = vmatprep.subr.bf16.mxu1 %v8309_v1  ;;  %v8435_v61 = vcombine.high %v305_v54, %v313_v55  ;;  %v8437_v1 = vcombine.high %v306_v56, %v314_v58  ;;  %v8516_v47 = vcombine.low %v386_v32, %v394_v34 }
 0x171   :  { %v8531_v48 = vcombine.high %v401_v39, %v409_v40 }
 0x173   :  { %3724 = vmatpush1.bf16.msra.mxu0 %v8306_v3  ;;  %3830 = vmatpush1.bf16.msra.mxu1 %v8308_v4  ;;  %v8434_v3 = vcombine.low %v305_v54, %v313_v55  ;;  %v8436_v4 = vcombine.low %v306_v56, %v314_v58  ;;  %v10559_v55 = vld [vmem:[#allocation2 + $0x20] ss:$16 sps:$4 sm:$0xff]   ;;  %v8530_v56 = vcombine.low %v401_v39, %v409_v40 }
 0x174   :  { %3725 = vmatprep.subr.bf16.mxu0 %v8323_v5  ;;  %3831 = vmatprep.subr.bf16.mxu1 %v8325_v9  ;;  %v8451_v5 = vcombine.high %v321_v62, %v329_v63  ;;  %v8453_v9 = vcombine.high %v322_v0, %v330_v2 }
 0x177   :  { %3726 = vmatpush1.bf16.msra.mxu0 %v8322_v11  ;;  %3832 = vmatpush1.bf16.msra.mxu1 %v8324_v12  ;;  %v8450_v11 = vcombine.low %v321_v62, %v329_v63  ;;  %v8452_v12 = vcombine.low %v322_v0, %v330_v2  ;;  %v10563_v62 = vld [vmem:[#allocation2 + $0xc] ss:$16 sps:$4 sm:$0xff]  }
 0x178   :  { %3727 = vmatprep.subr.bf16.mxu0 %v8339_v13  ;;  %3833 = vmatprep.subr.bf16.mxu1 %v8341_v17  ;;  %v8467_v13 = vcombine.high %v337_v6, %v345_v7  ;;  %v8469_v17 = vcombine.high %v338_v8, %v346_v10  ;;  %v434_v0 = vld [vmem:[#allocation5 + $0xaa8] sm:$0xff] }
 0x17b   :  { %3728 = vmatpush1.bf16.msra.mxu0 %v8338_v19  ;;  %3834 = vmatpush1.bf16.msra.mxu1 %v8340_v20  ;;  %v8466_v19 = vcombine.low %v337_v6, %v345_v7  ;;  %v8468_v20 = vcombine.low %v338_v8, %v346_v10  ;;  %v449_v10 = vld [vmem:[#allocation5 + $0xb20] sm:$0xff] }
 0x17c   :  { %3729 = vmatprep.subr.bf16.mxu0 %v8355_v21  ;;  %3835 = vmatprep.subr.bf16.mxu1 %v8357_v25  ;;  %v8483_v21 = vcombine.high %v353_v14, %v361_v15  ;;  %v8485_v25 = vcombine.high %v354_v16, %v362_v18 }
 0x17f   :  { %3730 = vmatpush1.bf16.msra.mxu0 %v8354_v27  ;;  %3836 = vmatpush1.bf16.msra.mxu1 %v8356_v28  ;;  %v8482_v27 = vcombine.low %v353_v14, %v361_v15  ;;  %v8484_v28 = vcombine.low %v354_v16, %v362_v18  ;;  %v458_v14 = vld [vmem:[#allocation5 + $0xb68] sm:$0xff] }
 0x180   :  { %3731 = vmatprep.subr.bf16.mxu0 %v8371_v29  ;;  %3837 = vmatprep.subr.bf16.mxu1 %v8373_v33  ;;  %v8499_v29 = vcombine.high %v369_v22, %v377_v23  ;;  %v8501_v33 = vcombine.high %v370_v24, %v378_v26 }
 0x183   :  { %3732 = vmatpush1.bf16.msra.mxu0 %v8370_v35  ;;  %3838 = vmatpush1.bf16.msra.mxu1 %v8372_v36  ;;  %v10549_v35 = vld [vmem:[#allocation2] ss:$16 sps:$4 sm:$0xff]   ;;  %v8498_v36 = vcombine.low %v369_v22, %v377_v23 }
 0x184   :  { %3733 = vmatprep.subr.bf16.mxu0 %v8387_v37  ;;  %3839 = vmatprep.subr.bf16.mxu1 %v8389_v41  ;;  %v8500_v37 = vcombine.low %v370_v24, %v378_v26  ;;  %v402_v41 = vld [vmem:[#allocation5 + $0x9a8] sm:$0xff]  ;;  %v10597_v23 = vld [vmem:[#allocation5 + $0xba0] sm:$0xff] }
 0x185   :  { %v473_v24 = vld [vmem:[#allocation5 + $0xbe0] sm:$0xff] }
 0x187   :  { %3734 = vmatpush1.bf16.msra.mxu0 %v8386_v43  ;;  %3840 = vmatpush1.bf16.msra.mxu1 %v8388_v44  ;;  %v410_v43 = vld [vmem:[#allocation5 + $0x9e8] sm:$0xff]  ;;  %v10553_v44 = vld [vmem:[#allocation2 + $0x24] ss:$16 sps:$4 sm:$0xff]  }
 0x188   :  { %3735 = vmatprep.subr.bf16.mxu0 %v8403_v45  ;;  %3841 = vmatprep.subr.bf16.mxu1 %v8405_v49  ;;  %v609_v45 = vlaneseq  ;;  %v8533_v49 = vcombine.high %v402_v41, %v410_v43 }
 0x18a   :  { %v10557_v54 = vshrl.u32 %v609_v45, 7 }
 0x18b   :  { %3736 = vmatpush1.bf16.msra.mxu0 %v8402_v51  ;;  %3842 = vmatpush1.bf16.msra.mxu1 %v8404_v52  ;;  %v425_v51 = vld [vmem:[#allocation5 + $0xa60] sm:$0xff]  ;;  %v418_v52 = vld [vmem:[#allocation5 + $0xa28] sm:$0xff] }
 0x18c   :  { %3737 = vmatprep.subr.bf16.mxu0 %v8419_v53  ;;  %3843 = vmatprep.subr.bf16.mxu1 %v8421_v57  ;;  %v426_v53 = vld [vmem:[#allocation5 + $0xa68] sm:$0xff]  ;;  %v8532_v57 = vcombine.low %v402_v41, %v410_v43  ;;  %v8547_v58 = vcombine.high %v417_v50, %v425_v51  ;;  %v10567_v63 = vsub.s32 0, %v10557_v54  ;;  %v8546_v2 = vcombine.low %v417_v50, %v425_v51 }
 0x18d   :  { %v8548_v6 = vcombine.low %v418_v52, %v426_v53  ;;  %v10579_v7 = vsub.s32 3, %v10557_v54  ;;  %v8595_v41 = vcombine.high %v10597_v23, %v473_v24 }
 0x18f   :  { %3738 = vmatpush1.bf16.msra.mxu0 %v8418_v59  ;;  %3844 = vmatpush1.bf16.msra.mxu1 %v8420_v60  ;;  %v8549_v59 = vcombine.high %v418_v52, %v426_v53  ;;  %v433_v60 = vld [vmem:[#allocation5 + $0xaa0] sm:$0xff] }
 0x190   :  { %3739 = vmatprep.subr.bf16.mxu0 %v8435_v61  ;;  %3845 = vmatprep.subr.bf16.mxu1 %v8437_v1  ;;  %v441_v61 = vld [vmem:[#allocation5 + $0xae0] sm:$0xff]  ;;  %v442_v1 = vld [vmem:[#allocation5 + $0xae8] sm:$0xff] }
 0x191   :  { %v8563_v8 = vcombine.high %v433_v60, %v441_v61 }
 0x193   :  { %3740 = vmatpush1.bf16.msra.mxu0 %v8434_v3  ;;  %3846 = vmatpush1.bf16.msra.mxu1 %v8436_v4  ;;  %v10570_v3 = vld [vmem:[#allocation7] sm:$0xff]  ;;  %v10573_v4 = vsub.s32 2, %v10557_v54 }
 0x194   :  { %3741 = vmatprep.subr.bf16.mxu0 %v8451_v5  ;;  %3847 = vmatprep.subr.bf16.mxu1 %v8453_v9  ;;  %v10576_v5 = vsub.s32 1, %v10557_v54  ;;  %v8565_v9 = vcombine.high %v434_v0, %v442_v1  ;;  %v10595_v18 = vrot.slane %v10570_v3, %v10579_v7 }
 0x195   :  { %v10587_v15 = vrot.slane %v10570_v3, %v10573_v4 }
 0x196   :  { %v10591_v16 = vrot.slane %v10570_v3, %v10576_v5 }
 0x197   :  { %3742 = vmatpush1.bf16.msra.mxu0 %v8450_v11  ;;  %3848 = vmatpush1.bf16.msra.mxu1 %v8452_v12  ;;  %v457_v11 = vld [vmem:[#allocation5 + $0xb60] sm:$0xff]  ;;  %v10583_v12 = vrot.slane %v10570_v3, %v10567_v63 }
 0x198   :  { %3743 = vmatprep.subr.bf16.mxu0 %v8467_v13  ;;  %3849 = vmatprep.subr.bf16.mxu1 %v8469_v17  ;;  %v450_v13 = vld [vmem:[#allocation5 + $0xb28] sm:$0xff]  ;;  %v8562_v17 = vcombine.low %v433_v60, %v441_v61  ;;  %v8578_v34 = vcombine.low %v449_v10, %v457_v11 }
 0x199   :  { %v8581_v22 = vcombine.high %v450_v13, %v458_v14 }
 0x19b   :  { %3744 = vmatpush1.bf16.msra.mxu0 %v8466_v19  ;;  %3850 = vmatpush1.bf16.msra.mxu1 %v8468_v20  ;;  %v8564_v19 = vcombine.low %v434_v0, %v442_v1  ;;  %v8579_v20 = vcombine.high %v449_v10, %v457_v11 }
 0x19c   :  { %3766 = vmatprep.subr.bf16.mxu0 %v8483_v21  ;;  %3872 = vmatprep.subr.bf16.mxu1 %v8485_v25 }
 0x19e   :  { %3746 = vmatmul.mubr.bf16.vlgmr.msra.gmra.mrb[16].mxu0 %v10549_v35  ;;  %3852 = vmatmul.mubr.bf16.vlgmr.msra.gmra.mrb[16].mxu1 %v10549_v35 }
 0x19f   :  { %3767 = vmatpush1.bf16.msra.mxu0 %v8482_v27  ;;  %3873 = vmatpush1.bf16.msra.mxu1 %v8484_v28  ;;  %v10600_v28 = vld [vmem:[#allocation5 + $0xba8] sm:$0xff] }
 0x1a0   :  { %3768 = vmatprep.subr.bf16.mxu0 %v8499_v29  ;;  %3874 = vmatprep.subr.bf16.mxu1 %v8501_v33  ;;  %v10602_v29 = vld [vmem:[#allocation5 + $0xbe8] sm:$0xff] }
 0x1a1   :  { %3755 = vmatprep.mubr.bf16.mxu0 %v10553_v44  ;;  %3861 = vmatprep.mubr.bf16.mxu1 %v10553_v44  ;;  %v8596_v53 = vcombine.low %v10600_v28, %v10602_v29 }
 0x1a3   :  { %3769 = vmatpush1.bf16.msra.mxu0 %v8498_v36  ;;  %3875 = vmatpush1.bf16.msra.mxu1 %v8500_v37  ;;  %v8580_v36 = vcombine.low %v450_v13, %v458_v14  ;;  %v497_v13 = vld [vmem:[#allocation5 + $0xca0] sm:$0xff] }
 0x1a4   :  { %3770 = vmatprep.subr.bf16.mxu0 %v8515_v38  ;;  %3876 = vmatprep.subr.bf16.mxu1 %v8517_v42  ;;  %v505_v14 = vld [vmem:[#allocation5 + $0xce0] sm:$0xff] }
 0x1a6   :  { %3756 = vmatmul.mubr.bf16.gmra.mrb[20].mxu0 %v10559_v55  ;;  %3862 = vmatmul.mubr.bf16.gmra.mrb[20].mxu1 %v10559_v55 }
 0x1a7   :  { %3771 = vmatpush1.bf16.msra.mxu0 %v8514_v46  ;;  %3877 = vmatpush1.bf16.msra.mxu1 %v8516_v47  ;;  %v8594_v46 = vcombine.low %v10597_v23, %v473_v24  ;;  %v8597_v47 = vcombine.high %v10600_v28, %v10602_v29  ;;  %v506_v23 = vld [vmem:[#allocation5 + $0xce8] sm:$0xff] }
 0x1a8   :  { %3772 = vmatprep.subr.bf16.mxu0 %v8531_v48  ;;  %3878 = vmatprep.subr.bf16.mxu1 %v8533_v49  ;;  %v10614_v48 = vld [vmem:[#allocation5 + $0xc20] sm:$0xff] }
 0x1a9   :  { %3798 = vmatprep.mubr.bf16.mxu0 %v10563_v62  ;;  %3904 = vmatprep.mubr.bf16.mxu1 %v10563_v62  ;;  %v10616_v49 = vld [vmem:[#allocation5 + $0xc60] sm:$0xff] }
 0x1aa   :  { %v8610_v28 = vcombine.low %v10614_v48, %v10616_v49 }
 0x1ab   :  { %3773 = vmatpush1.bf16.msra.mxu0 %v8530_v56  ;;  %3879 = vmatpush1.bf16.msra.mxu1 %v8532_v57  ;;  %v482_v56 = vld [vmem:[#allocation5 + $0xc28] sm:$0xff] }
 0x1ac   :  { %3774 = vmatprep.subr.bf16.mxu0 %v8547_v58  ;;  %3880 = vmatprep.subr.bf16.mxu1 %v8549_v59  ;;  %v490_v57 = vld [vmem:[#allocation5 + $0xc68] sm:$0xff] }
 0x1ad   :  { %v8613_v11 = vcombine.high %v482_v56, %v490_v57  ;;  %v8612_v29 = vcombine.low %v482_v56, %v490_v57 }
 0x1af   :  { %3775 = vmatpush1.bf16.msra.mxu0 %v8546_v2  ;;  %3881 = vmatpush1.bf16.msra.mxu1 %v8548_v6  ;;  %v8611_v6 = vcombine.high %v10614_v48, %v10616_v49  ;;  %v522_v48 = vld [vmem:[#allocation5 + $0xd68] sm:$0xff] }
 0x1b0   :  { %3776 = vmatprep.subr.bf16.mxu0 %v8563_v8  ;;  %3882 = vmatprep.subr.bf16.mxu1 %v8565_v9 }
 0x1b1   :  { %v3376_v21 = vpop.f32.mrb[0].mxu0  ;;  %v3482_v26 = vpop.f32.mrb[0].mxu1 }
 0x1b2   :  { %v9242_v25 = vadd.f32 %v3376_v21, %v10583_v12  ;;  %v3378_v27 = vpop.f32.mrb[1].mxu0  ;;  %v9250_v30 = vadd.f32 %v3482_v26, %v10587_v15  ;;  %v3484_v32 = vpop.f32.mrb[1].mxu1 }
 0x1b3   :  { %v9243_v31 = vadd.f32 %v3378_v27, %v10591_v16  ;;  %v3380_v33 = vpop.f32.mrb[2].mxu0  ;;  %3777 = vmatpush1.bf16.msra.mxu0 %v8562_v17  ;;  %v9251_v37 = vadd.f32 %v3484_v32, %v10595_v18  ;;  %v3486_v39 = vpop.f32.mrb[2].mxu1  ;;  %3883 = vmatpush1.bf16.msra.mxu1 %v8564_v19 }
 0x1b4   :  { %v9244_v38 = vadd.f32 %v3380_v33, %v10583_v12  ;;  %v3382_v40 = vpop.f32.mrb[3].mxu0  ;;  %3778 = vmatprep.subr.bf16.mxu0 %v8579_v20  ;;  %v9252_v42 = vadd.f32 %v3486_v39, %v10587_v15  ;;  %v3488_v45 = vpop.f32.mrb[3].mxu1  ;;  %3884 = vmatprep.subr.bf16.mxu1 %v8581_v22  ;;  %v4137_v50 = vmax.f32 %v9242_v25, 0.0  ;;  %v4139_v58 = vmax.f32 %v9250_v30, 0.0  ;;  %v498_v22 = vld [vmem:[#allocation5 + $0xca8] sm:$0xff] }
 0x1b5   :  { %v9245_v43 = vadd.f32 %v3382_v40, %v10591_v16  ;;  %v9253_v52 = vadd.f32 %v3488_v45, %v10595_v18  ;;  %v4138_v59 = vmax.f32 %v9243_v31, 0.0  ;;  %v4140_v0 = vmax.f32 %v9251_v37, 0.0 }
 0x1b6   :  { %v4153_v51 = vmax.f32 %v9244_v38, 0.0  ;;  %v4155_v60 = vmax.f32 %v9252_v42, 0.0  ;;  %v8626_v39 = vcombine.low %v497_v13, %v505_v14  ;;  %v8629_v40 = vcombine.high %v498_v22, %v506_v23  ;;  %v521_v42 = vld [vmem:[#allocation5 + $0xd60] sm:$0xff] }
 0x1b7   :  { %v4154_v61 = vmax.f32 %v9245_v43, 0.0  ;;  %3779 = vmatpush1.bf16.msra.mxu0 %v8578_v34  ;;  %v4156_v2 = vmax.f32 %v9253_v52, 0.0  ;;  %3885 = vmatpush1.bf16.msra.mxu1 %v8580_v36  ;;  %v8627_v34 = vcombine.high %v497_v13, %v505_v14  ;;  %v545_v14 = vld [vmem:[#allocation5 + $0xe20] sm:$0xff] }
 0x1b8   :  { %v10621_v1 = vpack.c.bf16 %v4153_v51, %v4137_v50  ;;  %3780 = vmatprep.subr.bf16.mxu0 %v8595_v41  ;;  %v10625_v8 = vpack.c.bf16 %v4155_v60, %v4139_v58  ;;  %3886 = vmatprep.subr.bf16.mxu1 %v8597_v47  ;;  %v513_v41 = vld [vmem:[#allocation5 + $0xd20] sm:$0xff]  ;;  %v514_v47 = vld [vmem:[#allocation5 + $0xd28] sm:$0xff] }
 0x1b9   :  { %v10627_v9 = vpack.c.bf16 %v4154_v61, %v4138_v59  ;;  %v3386_v10 = vpop.f32.mrb[4].mxu0  ;;  %v10629_v17 = vpack.c.bf16 %v4156_v2, %v4140_v0  ;;  %v3492_v20 = vpop.f32.mrb[4].mxu1  ;;  %v8643_v56 = vcombine.high %v513_v41, %v521_v42  ;;  %v529_v59 = vld [vmem:[#allocation5 + $0xda0] sm:$0xff]  ;;  %v530_v0 = vld [vmem:[#allocation5 + $0xda8] sm:$0xff] }
 0x1ba   :  { %v9246_v19 = vadd.f32 %v3386_v10, %v10583_v12  ;;  %v3388_v21 = vpop.f32.mrb[5].mxu0  ;;  %v9254_v24 = vadd.f32 %v3492_v20, %v10587_v15  ;;  %v3494_v26 = vpop.f32.mrb[5].mxu1  ;;  %v537_v60 = vld [vmem:[#allocation5 + $0xde0] sm:$0xff]  ;;  %v538_v2 = vld [vmem:[#allocation5 + $0xde8] sm:$0xff]  ;;  %v8644_v10 = vcombine.low %v514_v47, %v522_v48 }
 0x1bb   :  { %v9247_v25 = vadd.f32 %v3388_v21, %v10591_v16  ;;  %v3390_v27 = vpop.f32.mrb[6].mxu0  ;;  %3781 = vmatpush1.bf16.msra.mxu0 %v8594_v46  ;;  %v9255_v30 = vadd.f32 %v3494_v26, %v10595_v18  ;;  %v3496_v32 = vpop.f32.mrb[6].mxu1  ;;  %3887 = vmatpush1.bf16.msra.mxu1 %v8596_v53  ;;  %v8661_v13 = vcombine.high %v530_v0, %v538_v2  ;;  %v546_v20 = vld [vmem:[#allocation5 + $0xe28] sm:$0xff]  ;;  %v561_v26 = vld [vmem:[#allocation5 + $0xea0] sm:$0xff] }
 0x1bc   :  { %v9248_v31 = vadd.f32 %v3390_v27, %v10583_v12  ;;  %v3392_v33 = vpop.f32.mrb[7].mxu0  ;;  %3782 = vmatprep.subr.bf16.mxu0 %v8611_v6  ;;  %v9256_v36 = vadd.f32 %v3496_v32, %v10587_v15  ;;  %v3498_v38 = vpop.f32.mrb[7].mxu1  ;;  %3888 = vmatprep.subr.bf16.mxu1 %v8613_v11  ;;  %v4169_v43 = vmax.f32 %v9246_v19, 0.0  ;;  %v8628_v12 = vcombine.low %v498_v22, %v506_v23  ;;  %v553_v19 = vld [vmem:[#allocation5 + $0xe60] sm:$0xff]  ;;  %v554_v21 = vld [vmem:[#allocation5 + $0xe68] sm:$0xff] }
 0x1bd   :  { %v9249_v37 = vadd.f32 %v3392_v33, %v10591_v16  ;;  %v9257_v46 = vadd.f32 %v3498_v38, %v10595_v18  ;;  %v4171_v49 = vmax.f32 %v9254_v24, 0.0  ;;  %v4170_v50 = vmax.f32 %v9247_v25, 0.0  ;;  %v569_v27 = vld [vmem:[#allocation5 + $0xee0] sm:$0xff]  ;;  %v586_v38 = vld [vmem:[#allocation5 + $0xf68] sm:$0xff] }
 0x1be   :  { %v4185_v45 = vmax.f32 %v9248_v31, 0.0  ;;  %v4187_v51 = vmax.f32 %v9256_v36, 0.0  ;;  %v4172_v15 = vmax.f32 %v9255_v30, 0.0  ;;  %v8645_v18 = vcombine.high %v514_v47, %v522_v48  ;;  %v585_v36 = vld [vmem:[#allocation5 + $0xf60] sm:$0xff] }
 0x1bf   :  { %v4186_v52 = vmax.f32 %v9249_v37, 0.0  ;;  %3783 = vmatpush1.bf16.msra.mxu0 %v8610_v28  ;;  %v4188_v53 = vmax.f32 %v9257_v46, 0.0  ;;  %3889 = vmatpush1.bf16.msra.mxu1 %v8612_v29  ;;  %v8642_v6 = vcombine.low %v513_v41, %v521_v42  ;;  %v8659_v11 = vcombine.high %v529_v59, %v537_v60  ;;  %v562_v28 = vld [vmem:[#allocation5 + $0xea8] sm:$0xff] }
 0x1c0   :  { %v10641_v16 = vpack.c.bf16 %v4185_v45, %v4169_v43  ;;  %3784 = vmatprep.subr.bf16.mxu0 %v8627_v34  ;;  %v10643_v57 = vpack.c.bf16 %v4187_v51, %v4171_v49  ;;  %3890 = vmatprep.subr.bf16.mxu1 %v8629_v40  ;;  %v8658_v22 = vcombine.low %v529_v59, %v537_v60  ;;  %v570_v29 = vld [vmem:[#allocation5 + $0xee8] sm:$0xff]  ;;  %v577_v34 = vld [vmem:[#allocation5 + $0xf20] sm:$0xff]  ;;  %v99_v51 = vld [vmem:[#allocation5 + $0x30] sm:$0xff] }
 0x1c1   :  { %v10645_v58 = vpack.c.bf16 %v4186_v52, %v4170_v50  ;;  %v10647_v61 = vpack.c.bf16 %v4188_v53, %v4172_v15  ;;  %v8660_v23 = vcombine.low %v530_v0, %v538_v2  ;;  %v8675_v24 = vcombine.high %v545_v14, %v553_v19  ;;  %v578_v37 = vld [vmem:[#allocation5 + $0xf28] sm:$0xff]  ;;  %v593_v43 = vld [vmem:[#allocation5 + $0xfa0] sm:$0xff]  ;;  %v107_v52 = vld [vmem:[#allocation5 + $0x70] sm:$0xff] }
 0x1c2   :  { %v8677_v25 = vcombine.high %v546_v20, %v554_v21  ;;  %v8674_v30 = vcombine.low %v545_v14, %v553_v19  ;;  %v8676_v31 = vcombine.low %v546_v20, %v554_v21  ;;  %v8691_v32 = vcombine.high %v561_v26, %v569_v27  ;;  %v601_v45 = vld [vmem:[#allocation5 + $0xfe0] sm:$0xff]  ;;  %v594_v46 = vld [vmem:[#allocation5 + $0xfa8] sm:$0xff]  ;;  %v100_v15 = vld [vmem:[#allocation5 + $0x38] sm:$0xff] }
 0x1c3   :  { %3785 = vmatpush1.bf16.msra.mxu0 %v8626_v39  ;;  %3891 = vmatpush1.bf16.msra.mxu1 %v8628_v12  ;;  %v8693_v33 = vcombine.high %v562_v28, %v570_v29  ;;  %v8690_v39 = vcombine.low %v561_v26, %v569_v27  ;;  %v8692_v40 = vcombine.low %v562_v28, %v570_v29  ;;  %v602_v12 = vld [vmem:[#allocation5 + $0xfe8] sm:$0xff]  ;;  %v108_v53 = vld [vmem:[#allocation5 + $0x78] sm:$0xff]  ;;  %v115_v0 = vld [vmem:[#allocation5 + $0xb0] sm:$0xff] }
 0x1c4   :  { %3786 = vmatprep.subr.bf16.mxu0 %v8643_v56  ;;  %3892 = vmatprep.subr.bf16.mxu1 %v8645_v18  ;;  %v8707_v41 = vcombine.high %v577_v34, %v585_v36  ;;  %v8709_v42 = vcombine.high %v578_v37, %v586_v38  ;;  %v8706_v47 = vcombine.low %v577_v34, %v585_v36  ;;  %v123_v2 = vld [vmem:[#allocation5 + $0xf0] sm:$0xff]  ;;  %v10653_v28 = vld [vmem:[#allocation2 + $0x2c] ss:$16 sps:$4 sm:$0xff]  }
 0x1c5   :  { %v8708_v48 = vcombine.low %v578_v37, %v586_v38  ;;  %v8723_v49 = vcombine.high %v593_v43, %v601_v45  ;;  %v8725_v50 = vcombine.high %v594_v46, %v602_v12  ;;  %v8722_v56 = vcombine.low %v593_v43, %v601_v45  ;;  %v131_v20 = vld [vmem:[#allocation5 + $0x130] sm:$0xff]  ;;  %v172_v43 = vld [vmem:[#allocation5 + $0x278] sm:$0xff] }
 0x1c6   :  { %v8724_v18 = vcombine.low %v594_v46, %v602_v12  ;;  %v8231_v59 = vcombine.high %v99_v51, %v107_v52  ;;  %v8233_v60 = vcombine.high %v100_v15, %v108_v53  ;;  %v8247_v14 = vcombine.high %v115_v0, %v123_v2  ;;  %v139_v21 = vld [vmem:[#allocation5 + $0x170] sm:$0xff] }
 0x1c7   :  { %3787 = vmatpush1.bf16.msra.mxu0 %v8642_v6  ;;  %3893 = vmatpush1.bf16.msra.mxu1 %v8644_v10  ;;  %v116_v6 = vld [vmem:[#allocation5 + $0xb8] sm:$0xff]  ;;  %v8263_v27 = vcombine.high %v131_v20, %v139_v21  ;;  %v8262_v34 = vcombine.low %v131_v20, %v139_v21 }
 0x1c8   :  { %3788 = vmatprep.subr.bf16.mxu0 %v8659_v11  ;;  %3894 = vmatprep.subr.bf16.mxu1 %v8661_v13  ;;  %v124_v10 = vld [vmem:[#allocation5 + $0xf8] sm:$0xff]  ;;  %v8230_v11 = vcombine.low %v99_v51, %v107_v52  ;;  %v8232_v13 = vcombine.low %v100_v15, %v108_v53 }
 0x1c9   :  { %v8249_v19 = vcombine.high %v116_v6, %v124_v10  ;;  %v8248_v26 = vcombine.low %v116_v6, %v124_v10  ;;  %v180_v51 = vld [vmem:[#allocation5 + $0x2b8] sm:$0xff] }
 0x1ca   :  { %v188_v52 = vld [vmem:[#allocation5 + $0x2f8] sm:$0xff] }
 0x1cb   :  { %3789 = vmatpush1.bf16.msra.mxu0 %v8658_v22  ;;  %3895 = vmatpush1.bf16.msra.mxu1 %v8660_v23  ;;  %v10649_v22 = vld [vmem:[#allocation2 + $0x8] ss:$16 sps:$4 sm:$0xff]   ;;  %v8312_v10 = vcombine.low %v180_v51, %v188_v52 }
 0x1cc   :  { %3790 = vmatprep.subr.bf16.mxu0 %v8675_v24  ;;  %3896 = vmatprep.subr.bf16.mxu1 %v8677_v25  ;;  %v132_v23 = vld [vmem:[#allocation5 + $0x138] sm:$0xff]  ;;  %v8246_v25 = vcombine.low %v115_v0, %v123_v2 }
 0x1cd   :  { %v140_v24 = vld [vmem:[#allocation5 + $0x178] sm:$0xff] }
 0x1ce   :  { %v8265_v29 = vcombine.high %v132_v23, %v140_v24  ;;  %v8264_v36 = vcombine.low %v132_v23, %v140_v24  ;;  %v196_v0 = vld [vmem:[#allocation5 + $0x338] sm:$0xff] }
 0x1cf   :  { %3791 = vmatpush1.bf16.msra.mxu0 %v8674_v30  ;;  %3897 = vmatpush1.bf16.msra.mxu1 %v8676_v31  ;;  %v147_v30 = vld [vmem:[#allocation5 + $0x1b0] sm:$0xff]  ;;  %v204_v2 = vld [vmem:[#allocation5 + $0x378] sm:$0xff] }
 0x1d0   :  { %3792 = vmatprep.subr.bf16.mxu0 %v8691_v32  ;;  %3898 = vmatprep.subr.bf16.mxu1 %v8693_v33  ;;  %v155_v31 = vld [vmem:[#allocation5 + $0x1f0] sm:$0xff]  ;;  %v148_v32 = vld [vmem:[#allocation5 + $0x1b8] sm:$0xff]  ;;  %v8328_v24 = vcombine.low %v196_v0, %v204_v2 }
 0x1d1   :  { %v156_v33 = vld [vmem:[#allocation5 + $0x1f8] sm:$0xff]  ;;  %v8279_v37 = vcombine.high %v147_v30, %v155_v31  ;;  %v8278_v45 = vcombine.low %v147_v30, %v155_v31 }
 0x1d2   :  { %v8281_v38 = vcombine.high %v148_v32, %v156_v33  ;;  %v8280_v46 = vcombine.low %v148_v32, %v156_v33  ;;  %v212_v20 = vld [vmem:[#allocation5 + $0x3b8] sm:$0xff] }
 0x1d3   :  { %3793 = vmatpush1.bf16.msra.mxu0 %v8690_v39  ;;  %3899 = vmatpush1.bf16.msra.mxu1 %v8692_v40  ;;  %v163_v39 = vld [vmem:[#allocation5 + $0x230] sm:$0xff]  ;;  %v220_v21 = vld [vmem:[#allocation5 + $0x3f8] sm:$0xff] }
 0x1d4   :  { %3794 = vmatprep.subr.bf16.mxu0 %v8707_v41  ;;  %3900 = vmatprep.subr.bf16.mxu1 %v8709_v42  ;;  %v171_v40 = vld [vmem:[#allocation5 + $0x270] sm:$0xff]  ;;  %v10657_v41 = vld [vmem:[#allocation2 + $0x28] ss:$16 sps:$4 sm:$0xff]   ;;  %v8344_v33 = vcombine.low %v212_v20, %v220_v21 }
 0x1d5   :  { %v164_v42 = vld [vmem:[#allocation5 + $0x238] sm:$0xff]  ;;  %v8295_v12 = vcombine.high %v163_v39, %v171_v40  ;;  %v8294_v15 = vcombine.low %v163_v39, %v171_v40 }
 0x1d6   :  { %v8296_v53 = vcombine.low %v164_v42, %v172_v43  ;;  %v228_v30 = vld [vmem:[#allocation5 + $0x438] sm:$0xff] }
 0x1d7   :  { %3795 = vmatpush1.bf16.msra.mxu0 %v8706_v47  ;;  %3901 = vmatpush1.bf16.msra.mxu1 %v8708_v48  ;;  %v8297_v47 = vcombine.high %v164_v42, %v172_v43  ;;  %v179_v48 = vld [vmem:[#allocation5 + $0x2b0] sm:$0xff]  ;;  %v236_v31 = vld [vmem:[#allocation5 + $0x478] sm:$0xff] }
 0x1d8   :  { %3796 = vmatprep.subr.bf16.mxu0 %v8723_v49  ;;  %3902 = vmatprep.subr.bf16.mxu1 %v8725_v50  ;;  %v187_v49 = vld [vmem:[#allocation5 + $0x2f0] sm:$0xff]  ;;  %v244_v39 = vld [vmem:[#allocation5 + $0x4b8] sm:$0xff]  ;;  %v8360_v43 = vcombine.low %v228_v30, %v236_v31 }
 0x1d9   :  { %v10306_v50 = vld [vmem:[#allocation2 + $0x4] ss:$16 sps:$4 sm:$0xff]   ;;  %v8310_v6 = vcombine.low %v179_v48, %v187_v49  ;;  %v252_v40 = vld [vmem:[#allocation5 + $0x4f8] sm:$0xff] }
 0x1db   :  { %3797 = vmatpush1.bf16.msra.mxu0 %v8722_v56  ;;  %3903 = vmatpush1.bf16.msra.mxu1 %v8724_v18  ;;  %v8311_v56 = vcombine.high %v179_v48, %v187_v49  ;;  %v8313_v18 = vcombine.high %v180_v51, %v188_v52  ;;  %v260_v48 = vld [vmem:[#allocation5 + $0x538] sm:$0xff]  ;;  %v8376_v51 = vcombine.low %v244_v39, %v252_v40 }
 0x1dc   :  { %3925 = vmatprep.subr.bf16.mxu0 %v8231_v59  ;;  %4031 = vmatprep.subr.bf16.mxu1 %v8233_v60  ;;  %v195_v59 = vld [vmem:[#allocation5 + $0x330] sm:$0xff]  ;;  %v268_v49 = vld [vmem:[#allocation5 + $0x578] sm:$0xff] }
 0x1dd   :  { %v203_v60 = vld [vmem:[#allocation5 + $0x370] sm:$0xff] }
 0x1de   :  { %3799 = vmatmul.mubr.bf16.vlgmr.msra.gmra.mrb[16].mxu0 %v10649_v22  ;;  %3905 = vmatmul.mubr.bf16.vlgmr.msra.gmra.mrb[16].mxu1 %v10649_v22  ;;  %v8326_v23 = vcombine.low %v195_v59, %v203_v60 }
 0x1df   :  { %3926 = vmatpush1.bf16.msra.mxu0 %v8230_v11  ;;  %4032 = vmatpush1.bf16.msra.mxu1 %v8232_v13  ;;  %v8327_v11 = vcombine.high %v195_v59, %v203_v60  ;;  %v8329_v13 = vcombine.high %v196_v0, %v204_v2  ;;  %v284_v59 = vld [vmem:[#allocation5 + $0x5f8] sm:$0xff]  ;;  %v8392_v0 = vcombine.low %v260_v48, %v268_v49 }
 0x1e0   :  { %3927 = vmatprep.subr.bf16.mxu0 %v8247_v14  ;;  %4033 = vmatprep.subr.bf16.mxu1 %v8249_v19  ;;  %v211_v14 = vld [vmem:[#allocation5 + $0x3b0] sm:$0xff] }
 0x1e1   :  { %3808 = vmatprep.mubr.bf16.mxu0 %v10653_v28  ;;  %3914 = vmatprep.mubr.bf16.mxu1 %v10653_v28  ;;  %v219_v19 = vld [vmem:[#allocation5 + $0x3f0] sm:$0xff] }
 0x1e2   :  { %v8342_v32 = vcombine.low %v211_v14, %v219_v19 }
 0x1e3   :  { %3928 = vmatpush1.bf16.msra.mxu0 %v8246_v25  ;;  %4034 = vmatpush1.bf16.msra.mxu1 %v8248_v26  ;;  %v8343_v25 = vcombine.high %v211_v14, %v219_v19  ;;  %v8345_v26 = vcombine.high %v212_v20, %v220_v21  ;;  %v300_v14 = vld [vmem:[#allocation5 + $0x678] sm:$0xff] }
 0x1e4   :  { %3929 = vmatprep.subr.bf16.mxu0 %v8263_v27  ;;  %4035 = vmatprep.subr.bf16.mxu1 %v8265_v29  ;;  %v227_v27 = vld [vmem:[#allocation5 + $0x430] sm:$0xff] }
 0x1e5   :  { %v235_v29 = vld [vmem:[#allocation5 + $0x470] sm:$0xff] }
 0x1e6   :  { %3809 = vmatmul.mubr.bf16.gmra.mrb[20].mxu0 %v10657_v41  ;;  %3915 = vmatmul.mubr.bf16.gmra.mrb[20].mxu1 %v10657_v41  ;;  %v8358_v42 = vcombine.low %v227_v27, %v235_v29 }
 0x1e7   :  { %3930 = vmatpush1.bf16.msra.mxu0 %v8262_v34  ;;  %4036 = vmatpush1.bf16.msra.mxu1 %v8264_v36  ;;  %v8359_v34 = vcombine.high %v227_v27, %v235_v29  ;;  %v8361_v36 = vcombine.high %v228_v30, %v236_v31  ;;  %v316_v27 = vld [vmem:[#allocation5 + $0x6f8] sm:$0xff] }
 0x1e8   :  { %3931 = vmatprep.subr.bf16.mxu0 %v8279_v37  ;;  %4037 = vmatprep.subr.bf16.mxu1 %v8281_v38  ;;  %v243_v37 = vld [vmem:[#allocation5 + $0x4b0] sm:$0xff] }
 0x1e9   :  { %3957 = vmatprep.mubr.bf16.mxu0 %v10306_v50  ;;  %4063 = vmatprep.mubr.bf16.mxu1 %v10306_v50  ;;  %v251_v38 = vld [vmem:[#allocation5 + $0x4f0] sm:$0xff] }
 0x1ea   :  { %v8374_v50 = vcombine.low %v243_v37, %v251_v38 }
 0x1eb   :  { %3932 = vmatpush1.bf16.msra.mxu0 %v8278_v45  ;;  %4038 = vmatpush1.bf16.msra.mxu1 %v8280_v46  ;;  %v8375_v45 = vcombine.high %v243_v37, %v251_v38  ;;  %v8377_v46 = vcombine.high %v244_v39, %v252_v40  ;;  %v332_v37 = vld [vmem:[#allocation5 + $0x778] sm:$0xff] }
 0x1ec   :  { %3933 = vmatprep.subr.bf16.mxu0 %v8295_v12  ;;  %4039 = vmatprep.subr.bf16.mxu1 %v8297_v47  ;;  %v259_v12 = vld [vmem:[#allocation5 + $0x530] sm:$0xff] }
 0x1ed   :  { %v267_v47 = vld [vmem:[#allocation5 + $0x570] sm:$0xff] }
 0x1ee   :  { %v8391_v52 = vcombine.high %v259_v12, %v267_v47  ;;  %v8390_v60 = vcombine.low %v259_v12, %v267_v47  ;;  %v348_v12 = vld [vmem:[#allocation5 + $0x7f8] sm:$0xff] }
 0x1ef   :  { %3934 = vmatpush1.bf16.msra.mxu0 %v8294_v15  ;;  %4040 = vmatpush1.bf16.msra.mxu1 %v8296_v53  ;;  %v8393_v15 = vcombine.high %v260_v48, %v268_v49  ;;  %v275_v53 = vld [vmem:[#allocation5 + $0x5b0] sm:$0xff] }
 0x1f0   :  { %3935 = vmatprep.subr.bf16.mxu0 %v8311_v56  ;;  %4041 = vmatprep.subr.bf16.mxu1 %v8313_v18  ;;  %v283_v56 = vld [vmem:[#allocation5 + $0x5f0] sm:$0xff]  ;;  %v276_v18 = vld [vmem:[#allocation5 + $0x5b8] sm:$0xff] }
 0x1f1   :  { %v8407_v2 = vcombine.high %v275_v53, %v283_v56  ;;  %v8406_v19 = vcombine.low %v275_v53, %v283_v56  ;;  %v8408_v20 = vcombine.low %v276_v18, %v284_v59  ;;  %v364_v53 = vld [vmem:[#allocation5 + $0x878] sm:$0xff] }
 0x1f3   :  { %3936 = vmatpush1.bf16.msra.mxu0 %v8310_v6  ;;  %4042 = vmatpush1.bf16.msra.mxu1 %v8312_v10  ;;  %v8409_v6 = vcombine.high %v276_v18, %v284_v59  ;;  %v291_v10 = vld [vmem:[#allocation5 + $0x630] sm:$0xff] }
 0x1f4   :  { %3937 = vmatprep.subr.bf16.mxu0 %v8327_v11  ;;  %4043 = vmatprep.subr.bf16.mxu1 %v8329_v13  ;;  %v299_v11 = vld [vmem:[#allocation5 + $0x670] sm:$0xff]  ;;  %v292_v13 = vld [vmem:[#allocation5 + $0x638] sm:$0xff] }
 0x1f5   :  { %v8423_v21 = vcombine.high %v291_v10, %v299_v11  ;;  %v8422_v29 = vcombine.low %v291_v10, %v299_v11  ;;  %v8424_v30 = vcombine.low %v292_v13, %v300_v14  ;;  %v380_v10 = vld [vmem:[#allocation5 + $0x8f8] sm:$0xff] }
 0x1f7   :  { %3938 = vmatpush1.bf16.msra.mxu0 %v8326_v23  ;;  %4044 = vmatpush1.bf16.msra.mxu1 %v8328_v24  ;;  %v8425_v23 = vcombine.high %v292_v13, %v300_v14  ;;  %v307_v24 = vld [vmem:[#allocation5 + $0x6b0] sm:$0xff] }
 0x1f8   :  { %3939 = vmatprep.subr.bf16.mxu0 %v8343_v25  ;;  %4045 = vmatprep.subr.bf16.mxu1 %v8345_v26  ;;  %v315_v25 = vld [vmem:[#allocation5 + $0x6f0] sm:$0xff]  ;;  %v308_v26 = vld [vmem:[#allocation5 + $0x6b8] sm:$0xff] }
 0x1f9   :  { %v8439_v31 = vcombine.high %v307_v24, %v315_v25  ;;  %v8438_v38 = vcombine.low %v307_v24, %v315_v25  ;;  %v8440_v39 = vcombine.low %v308_v26, %v316_v27  ;;  %v396_v24 = vld [vmem:[#allocation5 + $0x978] sm:$0xff] }
 0x1fb   :  { %3940 = vmatpush1.bf16.msra.mxu0 %v8342_v32  ;;  %4046 = vmatpush1.bf16.msra.mxu1 %v8344_v33  ;;  %v8441_v32 = vcombine.high %v308_v26, %v316_v27  ;;  %v323_v33 = vld [vmem:[#allocation5 + $0x730] sm:$0xff] }
 0x1fc   :  { %3941 = vmatprep.subr.bf16.mxu0 %v8359_v34  ;;  %4047 = vmatprep.subr.bf16.mxu1 %v8361_v36  ;;  %v331_v34 = vld [vmem:[#allocation5 + $0x770] sm:$0xff]  ;;  %v324_v36 = vld [vmem:[#allocation5 + $0x738] sm:$0xff] }
 0x1fd   :  { %v8455_v40 = vcombine.high %v323_v33, %v331_v34  ;;  %v8454_v47 = vcombine.low %v323_v33, %v331_v34  ;;  %v8456_v48 = vcombine.low %v324_v36, %v332_v37  ;;  %v412_v33 = vld [vmem:[#allocation5 + $0x9f8] sm:$0xff] }
 0x1ff   :  { %3942 = vmatpush1.bf16.msra.mxu0 %v8358_v42  ;;  %4048 = vmatpush1.bf16.msra.mxu1 %v8360_v43  ;;  %v8457_v42 = vcombine.high %v324_v36, %v332_v37  ;;  %v339_v43 = vld [vmem:[#allocation5 + $0x7b0] sm:$0xff] }
 0x200   :  { %3943 = vmatprep.subr.bf16.mxu0 %v8375_v45  ;;  %4049 = vmatprep.subr.bf16.mxu1 %v8377_v46  ;;  %v347_v45 = vld [vmem:[#allocation5 + $0x7f0] sm:$0xff]  ;;  %v340_v46 = vld [vmem:[#allocation5 + $0x7b8] sm:$0xff] }
 0x201   :  { %v8471_v49 = vcombine.high %v339_v43, %v347_v45  ;;  %v8470_v56 = vcombine.low %v339_v43, %v347_v45  ;;  %v8472_v18 = vcombine.low %v340_v46, %v348_v12 }
 0x203   :  { %3944 = vmatpush1.bf16.msra.mxu0 %v8374_v50  ;;  %4050 = vmatpush1.bf16.msra.mxu1 %v8376_v51  ;;  %v8473_v50 = vcombine.high %v340_v46, %v348_v12  ;;  %v355_v51 = vld [vmem:[#allocation5 + $0x830] sm:$0xff] }
 0x204   :  { %3945 = vmatprep.subr.bf16.mxu0 %v8391_v52  ;;  %4051 = vmatprep.subr.bf16.mxu1 %v8393_v15  ;;  %v363_v52 = vld [vmem:[#allocation5 + $0x870] sm:$0xff]  ;;  %v356_v15 = vld [vmem:[#allocation5 + $0x838] sm:$0xff] }
 0x205   :  { %v8487_v59 = vcombine.high %v355_v51, %v363_v52  ;;  %v8486_v11 = vcombine.low %v355_v51, %v363_v52  ;;  %v8488_v13 = vcombine.low %v356_v15, %v364_v53  ;;  %v435_v12 = vld [vmem:[#allocation5 + $0xab0] sm:$0xff]  ;;  %v631_v52 = vsub.s32 5, %v10557_v54 }
 0x207   :  { %3946 = vmatpush1.bf16.msra.mxu0 %v8390_v60  ;;  %4052 = vmatpush1.bf16.msra.mxu1 %v8392_v0  ;;  %v8489_v60 = vcombine.high %v356_v15, %v364_v53  ;;  %v371_v0 = vld [vmem:[#allocation5 + $0x8b0] sm:$0xff]  ;;  %v639_v53 = vsub.s32 7, %v10557_v54 }
 0x208   :  { %3947 = vmatprep.subr.bf16.mxu0 %v8407_v2  ;;  %4053 = vmatprep.subr.bf16.mxu1 %v8409_v6  ;;  %v379_v2 = vld [vmem:[#allocation5 + $0x8f0] sm:$0xff]  ;;  %v372_v6 = vld [vmem:[#allocation5 + $0x8b8] sm:$0xff] }
 0x209   :  { %v8503_v14 = vcombine.high %v371_v0, %v379_v2  ;;  %v8502_v25 = vcombine.low %v371_v0, %v379_v2  ;;  %v8504_v26 = vcombine.low %v372_v6, %v380_v10  ;;  %v452_v0 = vld [vmem:[#allocation5 + $0xb38] sm:$0xff] }
 0x20a   :  { %v460_v2 = vld [vmem:[#allocation5 + $0xb78] sm:$0xff] }
 0x20b   :  { %3948 = vmatpush1.bf16.msra.mxu0 %v8406_v19  ;;  %4054 = vmatpush1.bf16.msra.mxu1 %v8408_v20  ;;  %v8505_v19 = vcombine.high %v372_v6, %v380_v10  ;;  %v387_v20 = vld [vmem:[#allocation5 + $0x930] sm:$0xff]  ;;  %v10686_v10 = vrot.slane %v10570_v3, %v631_v52 }
 0x20c   :  { %3949 = vmatprep.subr.bf16.mxu0 %v8423_v21  ;;  %4055 = vmatprep.subr.bf16.mxu1 %v8425_v23  ;;  %v395_v21 = vld [vmem:[#allocation5 + $0x970] sm:$0xff]  ;;  %v388_v23 = vld [vmem:[#allocation5 + $0x938] sm:$0xff] }
 0x20d   :  { %v8519_v27 = vcombine.high %v387_v20, %v395_v21  ;;  %v8518_v34 = vcombine.low %v387_v20, %v395_v21  ;;  %v8585_v21 = vcombine.high %v452_v0, %v460_v2 }
 0x20f   :  { %3950 = vmatpush1.bf16.msra.mxu0 %v8422_v29  ;;  %4056 = vmatpush1.bf16.msra.mxu1 %v8424_v30  ;;  %v8521_v29 = vcombine.high %v388_v23, %v396_v24  ;;  %v403_v30 = vld [vmem:[#allocation5 + $0x9b0] sm:$0xff] }
 0x210   :  { %3951 = vmatprep.subr.bf16.mxu0 %v8439_v31  ;;  %4057 = vmatprep.subr.bf16.mxu1 %v8441_v32  ;;  %v411_v31 = vld [vmem:[#allocation5 + $0x9f0] sm:$0xff]  ;;  %v404_v32 = vld [vmem:[#allocation5 + $0x9b8] sm:$0xff] }
 0x211   :  { %v8535_v36 = vcombine.high %v403_v30, %v411_v31  ;;  %v8537_v37 = vcombine.high %v404_v32, %v412_v33  ;;  %v8534_v43 = vcombine.low %v403_v30, %v411_v31  ;;  %v10698_v30 = vld [vmem:[#allocation5 + $0xbf8] sm:$0xff] }
 0x213   :  { %3952 = vmatpush1.bf16.msra.mxu0 %v8438_v38  ;;  %4058 = vmatpush1.bf16.msra.mxu1 %v8440_v39  ;;  %v419_v38 = vld [vmem:[#allocation5 + $0xa30] sm:$0xff] }
 0x214   :  { %3953 = vmatprep.subr.bf16.mxu0 %v8455_v40  ;;  %4059 = vmatprep.subr.bf16.mxu1 %v8457_v42  ;;  %v427_v39 = vld [vmem:[#allocation5 + $0xa70] sm:$0xff]  ;;  %v420_v40 = vld [vmem:[#allocation5 + $0xa38] sm:$0xff] }
 0x215   :  { %v428_v42 = vld [vmem:[#allocation5 + $0xa78] sm:$0xff]  ;;  %v8551_v45 = vcombine.high %v419_v38, %v427_v39  ;;  %v8550_v51 = vcombine.low %v419_v38, %v427_v39 }
 0x216   :  { %v8553_v46 = vcombine.high %v420_v40, %v428_v42  ;;  %v8552_v15 = vcombine.low %v420_v40, %v428_v42 }
 0x217   :  { %3954 = vmatpush1.bf16.msra.mxu0 %v8454_v47  ;;  %4060 = vmatpush1.bf16.msra.mxu1 %v8456_v48  ;;  %v443_v47 = vld [vmem:[#allocation5 + $0xaf0] sm:$0xff]  ;;  %v627_v48 = vsub.s32 4, %v10557_v54 }
 0x218   :  { %3955 = vmatprep.subr.bf16.mxu0 %v8471_v49  ;;  %4061 = vmatprep.subr.bf16.mxu1 %v8473_v50  ;;  %v436_v49 = vld [vmem:[#allocation5 + $0xab8] sm:$0xff] }
 0x219   :  { %v444_v50 = vld [vmem:[#allocation5 + $0xaf8] sm:$0xff] }
 0x21b   :  { %3956 = vmatpush1.bf16.msra.mxu0 %v8470_v56  ;;  %4062 = vmatpush1.bf16.msra.mxu1 %v8472_v18  ;;  %v8567_v56 = vcombine.high %v435_v12, %v443_v47  ;;  %v8569_v18 = vcombine.high %v436_v49, %v444_v50 }
 0x21c   :  { %3978 = vmatprep.subr.bf16.mxu0 %v8487_v59  ;;  %4084 = vmatprep.subr.bf16.mxu1 %v8489_v60  ;;  %v451_v59 = vld [vmem:[#allocation5 + $0xb30] sm:$0xff] }
 0x21d   :  { %v459_v60 = vld [vmem:[#allocation5 + $0xb70] sm:$0xff] }
 0x21e   :  { %3958 = vmatmul.mubr.bf16.vlgmr.msra.gmra.mrb[24].mxu0 %v10549_v35  ;;  %4064 = vmatmul.mubr.bf16.vlgmr.msra.gmra.mrb[24].mxu1 %v10549_v35  ;;  %v8520_v35 = vcombine.low %v388_v23, %v396_v24  ;;  %v10693_v23 = vld [vmem:[#allocation5 + $0xbb0] sm:$0xff] }
 0x21f   :  { %3979 = vmatpush1.bf16.msra.mxu0 %v8486_v11  ;;  %4085 = vmatpush1.bf16.msra.mxu1 %v8488_v13  ;;  %v8566_v11 = vcombine.low %v435_v12, %v443_v47  ;;  %v10691_v13 = vrot.slane %v10570_v3, %v639_v53  ;;  %v475_v24 = vld [vmem:[#allocation5 + $0xbf0] sm:$0xff] }
 0x220   :  { %3980 = vmatprep.subr.bf16.mxu0 %v8503_v14  ;;  %4086 = vmatprep.subr.bf16.mxu1 %v8505_v19  ;;  %v8568_v14 = vcombine.low %v436_v49, %v444_v50  ;;  %v8583_v19 = vcombine.high %v451_v59, %v459_v60  ;;  %v8599_v40 = vcombine.high %v10693_v23, %v475_v24  ;;  %v10710_v12 = vld [vmem:[#allocation5 + $0xc30] sm:$0xff] }
 0x221   :  { %3967 = vmatprep.mubr.bf16.mxu0 %v10553_v44  ;;  %4073 = vmatprep.mubr.bf16.mxu1 %v10553_v44  ;;  %v8536_v44 = vcombine.low %v404_v32, %v412_v33  ;;  %v10712_v47 = vld [vmem:[#allocation5 + $0xc70] sm:$0xff] }
 0x223   :  { %3981 = vmatpush1.bf16.msra.mxu0 %v8502_v25  ;;  %4087 = vmatpush1.bf16.msra.mxu1 %v8504_v26 }
 0x224   :  { %3982 = vmatprep.subr.bf16.mxu0 %v8519_v27  ;;  %4088 = vmatprep.subr.bf16.mxu1 %v8521_v29  ;;  %v10696_v29 = vld [vmem:[#allocation5 + $0xbb8] sm:$0xff] }
 0x226   :  { %3968 = vmatmul.mubr.bf16.gmra.mrb[28].mxu0 %v10559_v55  ;;  %4074 = vmatmul.mubr.bf16.gmra.mrb[28].mxu1 %v10559_v55  ;;  %v635_v55 = vsub.s32 6, %v10557_v54 }
 0x227   :  { %3983 = vmatpush1.bf16.msra.mxu0 %v8518_v34  ;;  %4089 = vmatpush1.bf16.msra.mxu1 %v8520_v35  ;;  %v8582_v34 = vcombine.low %v451_v59, %v459_v60  ;;  %v8584_v35 = vcombine.low %v452_v0, %v460_v2 }
 0x228   :  { %3984 = vmatprep.subr.bf16.mxu0 %v8535_v36  ;;  %4090 = vmatprep.subr.bf16.mxu1 %v8537_v37  ;;  %v10681_v6 = vrot.slane %v10570_v3, %v635_v55 }
 0x229   :  { %4010 = vmatprep.mubr.bf16.mxu0 %v10563_v62  ;;  %4116 = vmatprep.mubr.bf16.mxu1 %v10563_v62  ;;  %v10676_v62 = vrot.slane %v10570_v3, %v627_v48 }
 0x22b   :  { %3985 = vmatpush1.bf16.msra.mxu0 %v8534_v43  ;;  %4091 = vmatpush1.bf16.msra.mxu1 %v8536_v44 }
 0x22c   :  { %3986 = vmatprep.subr.bf16.mxu0 %v8551_v45  ;;  %4092 = vmatprep.subr.bf16.mxu1 %v8553_v46  ;;  %v8598_v45 = vcombine.low %v10693_v23, %v475_v24  ;;  %v8601_v46 = vcombine.high %v10696_v29, %v10698_v30 }
 0x22f   :  { %3987 = vmatpush1.bf16.msra.mxu0 %v8550_v51  ;;  %4093 = vmatpush1.bf16.msra.mxu1 %v8552_v15  ;;  %v8600_v15 = vcombine.low %v10696_v29, %v10698_v30 }
 0x230   :  { %3988 = vmatprep.subr.bf16.mxu0 %v8567_v56  ;;  %4094 = vmatprep.subr.bf16.mxu1 %v8569_v18  ;;  %v484_v56 = vld [vmem:[#allocation5 + $0xc38] sm:$0xff] }
 0x231   :  { %v3588_v20 = vpop.f32.mrb[8].mxu0  ;;  %v3694_v26 = vpop.f32.mrb[8].mxu1  ;;  %v492_v18 = vld [vmem:[#allocation5 + $0xc78] sm:$0xff] }
 0x232   :  { %v9258_v25 = vadd.f32 %v3588_v20, %v10676_v62  ;;  %v3590_v27 = vpop.f32.mrb[9].mxu0  ;;  %v9266_v3 = vadd.f32 %v3694_v26, %v10681_v6  ;;  %v3696_v32 = vpop.f32.mrb[9].mxu1  ;;  %v8615_v20 = vcombine.high %v10710_v12, %v10712_v47  ;;  %v499_v26 = vld [vmem:[#allocation5 + $0xcb0] sm:$0xff] }
 0x233   :  { %v9259_v31 = vadd.f32 %v3590_v27, %v10686_v10  ;;  %v3592_v33 = vpop.f32.mrb[10].mxu0  ;;  %3989 = vmatpush1.bf16.msra.mxu0 %v8566_v11  ;;  %v9267_v36 = vadd.f32 %v3696_v32, %v10691_v13  ;;  %v3698_v38 = vpop.f32.mrb[10].mxu1  ;;  %4095 = vmatpush1.bf16.msra.mxu1 %v8568_v14  ;;  %v507_v27 = vld [vmem:[#allocation5 + $0xcf0] sm:$0xff]  ;;  %v500_v32 = vld [vmem:[#allocation5 + $0xcb8] sm:$0xff] }
 0x234   :  { %v9260_v37 = vadd.f32 %v3592_v33, %v10676_v62  ;;  %v3594_v39 = vpop.f32.mrb[11].mxu0  ;;  %3990 = vmatprep.subr.bf16.mxu0 %v8583_v19  ;;  %v9268_v42 = vadd.f32 %v3698_v38, %v10681_v6  ;;  %v3700_v44 = vpop.f32.mrb[11].mxu1  ;;  %4096 = vmatprep.subr.bf16.mxu1 %v8585_v21  ;;  %v4141_v49 = vmax.f32 %v9258_v25, 0.0  ;;  %v4143_v59 = vmax.f32 %v9266_v3, 0.0  ;;  %v508_v33 = vld [vmem:[#allocation5 + $0xcf8] sm:$0xff] }
 0x235   :  { %v9261_v43 = vadd.f32 %v3594_v39, %v10686_v10  ;;  %v9269_v51 = vadd.f32 %v3700_v44, %v10691_v13  ;;  %v4142_v60 = vmax.f32 %v9259_v31, 0.0  ;;  %v4144_v11 = vmax.f32 %v9267_v36, 0.0 }
 0x236   :  { %v4157_v50 = vmax.f32 %v9260_v37, 0.0  ;;  %v4159_v0 = vmax.f32 %v9268_v42, 0.0  ;;  %v8617_v25 = vcombine.high %v484_v56, %v492_v18  ;;  %v8614_v38 = vcombine.low %v10710_v12, %v10712_v47  ;;  %v523_v12 = vld [vmem:[#allocation5 + $0xd70] sm:$0xff] }
 0x237   :  { %v4158_v2 = vmax.f32 %v9261_v43, 0.0  ;;  %3991 = vmatpush1.bf16.msra.mxu0 %v8582_v34  ;;  %v4160_v19 = vmax.f32 %v9269_v51, 0.0  ;;  %4097 = vmatpush1.bf16.msra.mxu1 %v8584_v35  ;;  %v8616_v39 = vcombine.low %v484_v56, %v492_v18 }
 0x238   :  { %v10717_v14 = vpack.c.bf16 %v4157_v50, %v4141_v49  ;;  %3992 = vmatprep.subr.bf16.mxu0 %v8599_v40  ;;  %v10721_v21 = vpack.c.bf16 %v4159_v0, %v4143_v59  ;;  %4098 = vmatprep.subr.bf16.mxu1 %v8601_v46  ;;  %v8631_v46 = vcombine.high %v499_v26, %v507_v27  ;;  %v516_v0 = vld [vmem:[#allocation5 + $0xd38] sm:$0xff] }
 0x239   :  { %v10723_v23 = vpack.c.bf16 %v4158_v2, %v4142_v60  ;;  %v3598_v24 = vpop.f32.mrb[12].mxu0  ;;  %v10725_v29 = vpack.c.bf16 %v4160_v19, %v4144_v11  ;;  %v3704_v3 = vpop.f32.mrb[12].mxu1  ;;  %v8633_v59 = vcombine.high %v500_v32, %v508_v33  ;;  %v515_v60 = vld [vmem:[#allocation5 + $0xd30] sm:$0xff] }
 0x23a   :  { %v9262_v30 = vadd.f32 %v3598_v24, %v10676_v62  ;;  %v3600_v31 = vpop.f32.mrb[13].mxu0  ;;  %v9270_v34 = vadd.f32 %v3704_v3, %v10681_v6  ;;  %v3706_v36 = vpop.f32.mrb[13].mxu1  ;;  %v539_v3 = vld [vmem:[#allocation5 + $0xdf0] sm:$0xff] }
 0x23b   :  { %v9263_v35 = vadd.f32 %v3600_v31, %v10686_v10  ;;  %v3602_v37 = vpop.f32.mrb[14].mxu0  ;;  %3993 = vmatpush1.bf16.msra.mxu0 %v8598_v45  ;;  %v9271_v40 = vadd.f32 %v3706_v36, %v10691_v13  ;;  %v3708_v43 = vpop.f32.mrb[14].mxu1  ;;  %4099 = vmatpush1.bf16.msra.mxu1 %v8600_v15  ;;  %v8630_v45 = vcombine.low %v499_v26, %v507_v27  ;;  %v524_v15 = vld [vmem:[#allocation5 + $0xd78] sm:$0xff] }
 0x23c   :  { %v9264_v42 = vadd.f32 %v3602_v37, %v10676_v62  ;;  %v3604_v44 = vpop.f32.mrb[15].mxu0  ;;  %3994 = vmatprep.subr.bf16.mxu0 %v8615_v20  ;;  %v9272_v49 = vadd.f32 %v3708_v43, %v10681_v6  ;;  %v3710_v51 = vpop.f32.mrb[15].mxu1  ;;  %4100 = vmatprep.subr.bf16.mxu1 %v8617_v25  ;;  %v4173_v47 = vmax.f32 %v9262_v30, 0.0  ;;  %v8632_v62 = vcombine.low %v500_v32, %v508_v33  ;;  %v531_v30 = vld [vmem:[#allocation5 + $0xdb0] sm:$0xff]  ;;  %v532_v32 = vld [vmem:[#allocation5 + $0xdb8] sm:$0xff] }
 0x23d   :  { %v9265_v50 = vadd.f32 %v3604_v44, %v10686_v10  ;;  %v9273_v18 = vadd.f32 %v3710_v51, %v10691_v13  ;;  %v4175_v2 = vmax.f32 %v9270_v34, 0.0  ;;  %v4174_v11 = vmax.f32 %v9263_v35, 0.0  ;;  %v540_v33 = vld [vmem:[#allocation5 + $0xdf8] sm:$0xff]  ;;  %v571_v51 = vld [vmem:[#allocation5 + $0xef0] sm:$0xff] }
 0x23e   :  { %v4189_v56 = vmax.f32 %v9264_v42, 0.0  ;;  %v4191_v19 = vmax.f32 %v9272_v49, 0.0  ;;  %v4176_v6 = vmax.f32 %v9271_v40, 0.0  ;;  %v8647_v25 = vcombine.high %v515_v60, %v523_v12  ;;  %v548_v40 = vld [vmem:[#allocation5 + $0xe38] sm:$0xff] }
 0x23f   :  { %v4190_v20 = vmax.f32 %v9265_v50, 0.0  ;;  %3995 = vmatpush1.bf16.msra.mxu0 %v8614_v38  ;;  %v4192_v24 = vmax.f32 %v9273_v18, 0.0  ;;  %4101 = vmatpush1.bf16.msra.mxu1 %v8616_v39  ;;  %v8649_v13 = vcombine.high %v516_v0, %v524_v15  ;;  %v8646_v34 = vcombine.low %v515_v60, %v523_v12  ;;  %v547_v38 = vld [vmem:[#allocation5 + $0xe30] sm:$0xff]  ;;  %v556_v42 = vld [vmem:[#allocation5 + $0xe78] sm:$0xff] }
 0x240   :  { %v10737_v10 = vpack.c.bf16 %v4189_v56, %v4173_v47  ;;  %3996 = vmatprep.subr.bf16.mxu0 %v8631_v46  ;;  %v10739_v26 = vpack.c.bf16 %v4191_v19, %v4175_v2  ;;  %4102 = vmatprep.subr.bf16.mxu1 %v8633_v59  ;;  %v8648_v35 = vcombine.low %v516_v0, %v524_v15  ;;  %v555_v39 = vld [vmem:[#allocation5 + $0xe70] sm:$0xff]  ;;  %v572_v59 = vld [vmem:[#allocation5 + $0xef8] sm:$0xff] }
 0x241   :  { %v10741_v27 = vpack.c.bf16 %v4190_v20, %v4174_v11  ;;  %v10743_v31 = vpack.c.bf16 %v4192_v24, %v4176_v6  ;;  %v8663_v36 = vcombine.high %v531_v30, %v539_v3  ;;  %v8665_v37 = vcombine.high %v532_v32, %v540_v33  ;;  %v563_v50 = vld [vmem:[#allocation5 + $0xeb0] sm:$0xff]  ;;  %v580_v0 = vld [vmem:[#allocation5 + $0xf38] sm:$0xff] }
 0x242   :  { %v8662_v43 = vcombine.low %v531_v30, %v539_v3  ;;  %v8664_v44 = vcombine.low %v532_v32, %v540_v33  ;;  %v8679_v46 = vcombine.high %v547_v38, %v555_v39  ;;  %v8681_v49 = vcombine.high %v548_v40, %v556_v42  ;;  %v579_v18 = vld [vmem:[#allocation5 + $0xf30] sm:$0xff]  ;;  %v588_v15 = vld [vmem:[#allocation5 + $0xf78] sm:$0xff] }
 0x243   :  { %3997 = vmatpush1.bf16.msra.mxu0 %v8630_v45  ;;  %4103 = vmatpush1.bf16.msra.mxu1 %v8632_v62  ;;  %v564_v45 = vld [vmem:[#allocation5 + $0xeb8] sm:$0xff]  ;;  %v8678_v60 = vcombine.low %v547_v38, %v555_v39  ;;  %v8680_v12 = vcombine.low %v548_v40, %v556_v42  ;;  %v8695_v47 = vcombine.high %v563_v50, %v571_v51  ;;  %v587_v62 = vld [vmem:[#allocation5 + $0xf70] sm:$0xff] }
 0x244   :  { %3998 = vmatprep.subr.bf16.mxu0 %v8647_v25  ;;  %4104 = vmatprep.subr.bf16.mxu1 %v8649_v13  ;;  %v8697_v56 = vcombine.high %v564_v45, %v572_v59  ;;  %v8694_v2 = vcombine.low %v563_v50, %v571_v51  ;;  %v8696_v11 = vcombine.low %v564_v45, %v572_v59  ;;  %v595_v6 = vld [vmem:[#allocation5 + $0xfb0] sm:$0xff]  ;;  %v596_v25 = vld [vmem:[#allocation5 + $0xfb8] sm:$0xff] }
 0x245   :  { %v8711_v19 = vcombine.high %v579_v18, %v587_v62  ;;  %v8713_v20 = vcombine.high %v580_v0, %v588_v15  ;;  %v603_v24 = vld [vmem:[#allocation5 + $0xff0] sm:$0xff]  ;;  %v604_v13 = vld [vmem:[#allocation5 + $0xff8] sm:$0xff]  ;;  %v8710_v30 = vcombine.low %v579_v18, %v587_v62  ;;  %v8712_v3 = vcombine.low %v580_v0, %v588_v15 }
 0x246   :  { %v8727_v32 = vcombine.high %v595_v6, %v603_v24  ;;  %v8729_v33 = vcombine.high %v596_v25, %v604_v13  ;;  %v9522_v38 = vld [vmem:[#allocation8] ss:$16 sps:$4 sm:$0xff]   ;;  %v9525_v39 = vld [vmem:[#allocation8 + $0x8] ss:$16 sps:$4 sm:$0xff]   ;;  %v9530_v40 = vld [vmem:[#allocation8 + $0x24] ss:$16 sps:$4 sm:$0xff]  }
 0x247   :  { %3999 = vmatpush1.bf16.msra.mxu0 %v8646_v34  ;;  %4105 = vmatpush1.bf16.msra.mxu1 %v8648_v35  ;;  %v8726_v34 = vcombine.low %v595_v6, %v603_v24  ;;  %v8728_v35 = vcombine.low %v596_v25, %v604_v13  ;;  %v9533_v42 = vld [vmem:[#allocation8 + $0x2c] ss:$16 sps:$4 sm:$0xff]   ;;  %v9534_v50 = vld [vmem:[#allocation8 + $0x40] ss:$16 sps:$4 sm:$0xff]   ;;  %v9537_v51 = vld [vmem:[#allocation8 + $0x48] ss:$16 sps:$4 sm:$0xff]  }
 0x248   :  { %4000 = vmatprep.subr.bf16.mxu0 %v8663_v36  ;;  %4106 = vmatprep.subr.bf16.mxu1 %v8665_v37  ;;  %v9524_v36 = vld [vmem:[#allocation8 + $0x4] ss:$16 sps:$4 sm:$0xff]   ;;  %v9527_v37 = vld [vmem:[#allocation8 + $0xc] ss:$16 sps:$4 sm:$0xff]   ;;  %v9540_v59 = vld [vmem:[#allocation8 + $0x60] ss:$16 sps:$4 sm:$0xff]  }
 0x249   :  { %v9542_v45 = vld [vmem:[#allocation8 + $0x64] ss:$16 sps:$4 sm:$0xff]   ;;  %v9552_v62 = vld [vmem:[#allocation8 + $0xa0] ss:$16 sps:$4 sm:$0xff]   ;;  %v9555_v0 = vld [vmem:[#allocation8 + $0xa8] ss:$16 sps:$4 sm:$0xff]  }
 0x24a   :  { %v9554_v18 = vld [vmem:[#allocation8 + $0xa4] ss:$16 sps:$4 sm:$0xff]   ;;  %v9564_v6 = vld [vmem:[#allocation8 + $0xe0] ss:$16 sps:$4 sm:$0xff]   ;;  %v9567_v24 = vld [vmem:[#allocation8 + $0xe8] ss:$16 sps:$4 sm:$0xff]  }
 0x24b   :  { %4001 = vmatpush1.bf16.msra.mxu0 %v8662_v43  ;;  %4107 = vmatpush1.bf16.msra.mxu1 %v8664_v44  ;;  %v9528_v43 = vld [vmem:[#allocation8 + $0x20] ss:$16 sps:$4 sm:$0xff]   ;;  %v9531_v44 = vld [vmem:[#allocation8 + $0x28] ss:$16 sps:$4 sm:$0xff]   ;;  %v9560_v15 = vld [vmem:[#allocation8 + $0xc4] ss:$16 sps:$4 sm:$0xff]  }
 0x24c   :  { %4002 = vmatprep.subr.bf16.mxu0 %v8679_v46  ;;  %4108 = vmatprep.subr.bf16.mxu1 %v8681_v49  ;;  %v9536_v46 = vld [vmem:[#allocation8 + $0x44] ss:$16 sps:$4 sm:$0xff]   ;;  %v9539_v49 = vld [vmem:[#allocation8 + $0x4c] ss:$16 sps:$4 sm:$0xff]  }
 0x24d   :  { %v9572_v25 = vld [vmem:[#allocation8 + $0x104] ss:$16 sps:$4 sm:$0xff]   ;;  %v9575_v13 = vld [vmem:[#allocation8 + $0x10c] ss:$16 sps:$4 sm:$0xff]  }
 0x24f   :  { %4003 = vmatpush1.bf16.msra.mxu0 %v8678_v60  ;;  %4109 = vmatpush1.bf16.msra.mxu1 %v8680_v12  ;;  %v9543_v60 = vld [vmem:[#allocation8 + $0x68] ss:$16 sps:$4 sm:$0xff]   ;;  %v9548_v12 = vld [vmem:[#allocation8 + $0x84] ss:$16 sps:$4 sm:$0xff]  }
 0x250   :  { %4004 = vmatprep.subr.bf16.mxu0 %v8695_v47  ;;  %4110 = vmatprep.subr.bf16.mxu1 %v8697_v56  ;;  %v9546_v47 = vld [vmem:[#allocation8 + $0x80] ss:$16 sps:$4 sm:$0xff]   ;;  %v9549_v56 = vld [vmem:[#allocation8 + $0x88] ss:$16 sps:$4 sm:$0xff]  }
 0x253   :  { %4005 = vmatpush1.bf16.msra.mxu0 %v8694_v2  ;;  %4111 = vmatpush1.bf16.msra.mxu1 %v8696_v11  ;;  %v9563_v2 = vld [vmem:[#allocation8 + $0xcc] ss:$16 sps:$4 sm:$0xff]   ;;  %v9561_v11 = vld [vmem:[#allocation8 + $0xc8] ss:$16 sps:$4 sm:$0xff]  }
 0x254   :  { %4006 = vmatprep.subr.bf16.mxu0 %v8711_v19  ;;  %4112 = vmatprep.subr.bf16.mxu1 %v8713_v20  ;;  %v9566_v19 = vld [vmem:[#allocation8 + $0xe4] ss:$16 sps:$4 sm:$0xff]   ;;  %v9569_v20 = vld [vmem:[#allocation8 + $0xec] ss:$16 sps:$4 sm:$0xff]  }
 0x257   :  { %4007 = vmatpush1.bf16.msra.mxu0 %v8710_v30  ;;  %4113 = vmatpush1.bf16.msra.mxu1 %v8712_v3  ;;  %v9570_v30 = vld [vmem:[#allocation8 + $0x100] ss:$16 sps:$4 sm:$0xff]   ;;  %v9573_v3 = vld [vmem:[#allocation8 + $0x108] ss:$16 sps:$4 sm:$0xff]  }
 0x258   :  { %4008 = vmatprep.subr.bf16.mxu0 %v8727_v32  ;;  %4114 = vmatprep.subr.bf16.mxu1 %v8729_v33  ;;  %v9578_v32 = vld [vmem:[#allocation8 + $0x124] ss:$16 sps:$4 sm:$0xff]   ;;  %v9581_v33 = vld [vmem:[#allocation8 + $0x12c] ss:$16 sps:$4 sm:$0xff]  }
 0x25b   :  { %4009 = vmatpush1.bf16.msra.mxu0 %v8726_v34  ;;  %4115 = vmatpush1.bf16.msra.mxu1 %v8728_v35  ;;  %v9576_v34 = vld [vmem:[#allocation8 + $0x120] ss:$16 sps:$4 sm:$0xff]   ;;  %v9579_v35 = vld [vmem:[#allocation8 + $0x128] ss:$16 sps:$4 sm:$0xff]  }
 0x25c   :  { %7327 = vmatprep.subr.bf16.mxu0 %v9524_v36  ;;  %7751 = vmatprep.subr.bf16.mxu1 %v9527_v37  ;;  %v9584_v36 = vld [vmem:[#allocation8 + $0x144] ss:$16 sps:$4 sm:$0xff]   ;;  %v9587_v37 = vld [vmem:[#allocation8 + $0x14c] ss:$16 sps:$4 sm:$0xff]  }
 0x25e   :  { %4011 = vmatmul.mubr.bf16.vlgmr.msra.gmra.mrb[24].mxu0 %v10649_v22  ;;  %4117 = vmatmul.mubr.bf16.vlgmr.msra.gmra.mrb[24].mxu1 %v10649_v22  ;;  %v9545_v22 = vld [vmem:[#allocation8 + $0x6c] ss:$16 sps:$4 sm:$0xff]  }
 0x25f   :  { %7328 = vmatpush1.bf16.msra.mxu0 %v9522_v38  ;;  %7752 = vmatpush1.bf16.msra.mxu1 %v9525_v39  ;;  %v9582_v38 = vld [vmem:[#allocation8 + $0x140] ss:$16 sps:$4 sm:$0xff]   ;;  %v9585_v39 = vld [vmem:[#allocation8 + $0x148] ss:$16 sps:$4 sm:$0xff]  }
 0x260   :  { %7329 = vmatprep.subr.bf16.mxu0 %v9530_v40  ;;  %7753 = vmatprep.subr.bf16.mxu1 %v9533_v42  ;;  %v9590_v40 = vld [vmem:[#allocation8 + $0x164] ss:$16 sps:$4 sm:$0xff]   ;;  %v9593_v42 = vld [vmem:[#allocation8 + $0x16c] ss:$16 sps:$4 sm:$0xff]  }
 0x261   :  { %4020 = vmatprep.mubr.bf16.mxu0 %v10653_v28  ;;  %4126 = vmatprep.mubr.bf16.mxu1 %v10653_v28  ;;  %v9551_v28 = vld [vmem:[#allocation8 + $0x8c] ss:$16 sps:$4 sm:$0xff]  }
 0x263   :  { %7330 = vmatpush1.bf16.msra.mxu0 %v9528_v43  ;;  %7754 = vmatpush1.bf16.msra.mxu1 %v9531_v44  ;;  %v9588_v43 = vld [vmem:[#allocation8 + $0x160] ss:$16 sps:$4 sm:$0xff]   ;;  %v9591_v44 = vld [vmem:[#allocation8 + $0x168] ss:$16 sps:$4 sm:$0xff]  }
 0x264   :  { %7331 = vmatprep.subr.bf16.mxu0 %v9536_v46  ;;  %7755 = vmatprep.subr.bf16.mxu1 %v9539_v49  ;;  %v9596_v46 = vld [vmem:[#allocation8 + $0x184] ss:$16 sps:$4 sm:$0xff]   ;;  %v9599_v49 = vld [vmem:[#allocation8 + $0x18c] ss:$16 sps:$4 sm:$0xff]  }
 0x266   :  { %4021 = vmatmul.mubr.bf16.gmra.mrb[28].mxu0 %v10657_v41  ;;  %4127 = vmatmul.mubr.bf16.gmra.mrb[28].mxu1 %v10657_v41  ;;  %v9557_v41 = vld [vmem:[#allocation8 + $0xac] ss:$16 sps:$4 sm:$0xff]  }
 0x267   :  { %7332 = vmatpush1.bf16.msra.mxu0 %v9534_v50  ;;  %7359 = vmatprep.mubr.bf16.mxu0 %v10627_v9  ;;  %v9594_v50 = vld [vmem:[#allocation8 + $0x180] ss:$16 sps:$4 sm:$0xff]  }
 0x268   :  { %7756 = vmatpush1.bf16.msra.mxu1 %v9537_v51  ;;  %7783 = vmatprep.mubr.bf16.mxu1 %v10627_v9  ;;  %v9558_v9 = vld [vmem:[#allocation8 + $0xc0] ss:$16 sps:$4 sm:$0xff]   ;;  %v9597_v51 = vld [vmem:[#allocation8 + $0x188] ss:$16 sps:$4 sm:$0xff]  }
 0x269   :  { %7333 = vmatprep.subr.bf16.mxu0 %v9542_v45  ;;  %7757 = vmatprep.subr.bf16.mxu1 %v9545_v22  ;;  %v9602_v45 = vld [vmem:[#allocation8 + $0x1a4] ss:$16 sps:$4 sm:$0xff]   ;;  %v9605_v22 = vld [vmem:[#allocation8 + $0x1ac] ss:$16 sps:$4 sm:$0xff]  }
 0x26b   :  { %7334 = vmatpush1.bf16.msra.mxu0 %v9540_v59  ;;  %v9600_v59 = vld [vmem:[#allocation8 + $0x1a0] ss:$16 sps:$4 sm:$0xff]  }
 0x26c   :  { %7758 = vmatpush1.bf16.msra.mxu1 %v9543_v60  ;;  %7335 = vmatprep.subr.bf16.mxu0 %v9548_v12  ;;  %v9603_v60 = vld [vmem:[#allocation8 + $0x1a8] ss:$16 sps:$4 sm:$0xff]   ;;  %v9608_v12 = vld [vmem:[#allocation8 + $0x1c4] ss:$16 sps:$4 sm:$0xff]  }
 0x26d   :  { %7759 = vmatprep.subr.bf16.mxu1 %v9551_v28  ;;  %v9611_v28 = vld [vmem:[#allocation8 + $0x1cc] ss:$16 sps:$4 sm:$0xff]  }
 0x26f   :  { %7336 = vmatpush1.bf16.msra.mxu0 %v9546_v47  ;;  %v9606_v47 = vld [vmem:[#allocation8 + $0x1c0] ss:$16 sps:$4 sm:$0xff]  }
 0x270   :  { %7760 = vmatpush1.bf16.msra.mxu1 %v9549_v56  ;;  %7337 = vmatprep.subr.bf16.mxu0 %v9554_v18  ;;  %v9609_v56 = vld [vmem:[#allocation8 + $0x1c8] ss:$16 sps:$4 sm:$0xff]   ;;  %v9614_v18 = vld [vmem:[#allocation8 + $0x1e4] ss:$16 sps:$4 sm:$0xff]  }
 0x271   :  { %7761 = vmatprep.subr.bf16.mxu1 %v9557_v41  ;;  %v9617_v41 = vld [vmem:[#allocation8 + $0x1ec] ss:$16 sps:$4 sm:$0xff]  }
 0x273   :  { %7338 = vmatpush1.bf16.msra.mxu0 %v9552_v62  ;;  %v9612_v62 = vld [vmem:[#allocation8 + $0x1e0] ss:$16 sps:$4 sm:$0xff]  }
 0x274   :  { %7762 = vmatpush1.bf16.msra.mxu1 %v9555_v0  ;;  %7339 = vmatprep.subr.bf16.mxu0 %v9560_v15  ;;  %v9615_v0 = vld [vmem:[#allocation8 + $0x1e8] ss:$16 sps:$4 sm:$0xff]   ;;  %v9620_v15 = vld [vmem:[#allocation8 + $0x204] ss:$16 sps:$4 sm:$0xff]  }
 0x275   :  { %7763 = vmatprep.subr.bf16.mxu1 %v9563_v2  ;;  %v9623_v2 = vld [vmem:[#allocation8 + $0x20c] ss:$16 sps:$4 sm:$0xff]  }
 0x277   :  { %7340 = vmatpush1.bf16.msra.mxu0 %v9558_v9  ;;  %v9618_v9 = vld [vmem:[#allocation8 + $0x200] ss:$16 sps:$4 sm:$0xff]  }
 0x278   :  { %7764 = vmatpush1.bf16.msra.mxu1 %v9561_v11  ;;  %7341 = vmatprep.subr.bf16.mxu0 %v9566_v19  ;;  %v9621_v11 = vld [vmem:[#allocation8 + $0x208] ss:$16 sps:$4 sm:$0xff]   ;;  %v9626_v19 = vld [vmem:[#allocation8 + $0x224] ss:$16 sps:$4 sm:$0xff]  }
 0x279   :  { %7765 = vmatprep.subr.bf16.mxu1 %v9569_v20  ;;  %v9629_v20 = vld [vmem:[#allocation8 + $0x22c] ss:$16 sps:$4 sm:$0xff]  }
 0x27b   :  { %7342 = vmatpush1.bf16.msra.mxu0 %v9564_v6  ;;  %v9624_v6 = vld [vmem:[#allocation8 + $0x220] ss:$16 sps:$4 sm:$0xff]  }
 0x27c   :  { %7766 = vmatpush1.bf16.msra.mxu1 %v9567_v24  ;;  %7343 = vmatprep.subr.bf16.mxu0 %v9572_v25  ;;  %v9627_v24 = vld [vmem:[#allocation8 + $0x228] ss:$16 sps:$4 sm:$0xff]   ;;  %v9632_v25 = vld [vmem:[#allocation8 + $0x244] ss:$16 sps:$4 sm:$0xff]  }
 0x27d   :  { %7767 = vmatprep.subr.bf16.mxu1 %v9575_v13  ;;  %v9635_v13 = vld [vmem:[#allocation8 + $0x24c] ss:$16 sps:$4 sm:$0xff]  }
 0x27f   :  { %7344 = vmatpush1.bf16.msra.mxu0 %v9570_v30  ;;  %v9630_v30 = vld [vmem:[#allocation8 + $0x240] ss:$16 sps:$4 sm:$0xff]  }
 0x280   :  { %7768 = vmatpush1.bf16.msra.mxu1 %v9573_v3  ;;  %7345 = vmatprep.subr.bf16.mxu0 %v9578_v32  ;;  %v9633_v3 = vld [vmem:[#allocation8 + $0x248] ss:$16 sps:$4 sm:$0xff]   ;;  %v9638_v32 = vld [vmem:[#allocation8 + $0x264] ss:$16 sps:$4 sm:$0xff]  }
 0x281   :  { %7769 = vmatprep.subr.bf16.mxu1 %v9581_v33  ;;  %v9639_v33 = vld [vmem:[#allocation8 + $0x268] ss:$16 sps:$4 sm:$0xff]  }
 0x283   :  { %7346 = vmatpush1.bf16.msra.mxu0 %v9576_v34  ;;  %v9644_v34 = vld [vmem:[#allocation8 + $0x284] ss:$16 sps:$4 sm:$0xff]  }
 0x284   :  { %7770 = vmatpush1.bf16.msra.mxu1 %v9579_v35  ;;  %7347 = vmatprep.subr.bf16.mxu0 %v9584_v36  ;;  %v9647_v35 = vld [vmem:[#allocation8 + $0x28c] ss:$16 sps:$4 sm:$0xff]  }
 0x285   :  { %7771 = vmatprep.subr.bf16.mxu1 %v9587_v37  ;;  %v10761_v36 = vld [vmem:[#allocation7 + $0x8] sm:$0xff]  ;;  %v9642_v37 = vld [vmem:[#allocation8 + $0x280] ss:$16 sps:$4 sm:$0xff]  }
 0x287   :  { %7348 = vmatpush1.bf16.msra.mxu0 %v9582_v38  ;;  %v9645_v38 = vld [vmem:[#allocation8 + $0x288] ss:$16 sps:$4 sm:$0xff]  }
 0x288   :  { %7772 = vmatpush1.bf16.msra.mxu1 %v9585_v39  ;;  %7349 = vmatprep.subr.bf16.mxu0 %v9590_v40  ;;  %v10765_v39 = vrot.slane %v10761_v36, %v10567_v63  ;;  %v10769_v40 = vrot.slane %v10761_v36, %v10573_v4 }
 0x289   :  { %7773 = vmatprep.subr.bf16.mxu1 %v9593_v42  ;;  %v10773_v42 = vrot.slane %v10761_v36, %v10576_v5 }
 0x28b   :  { %7350 = vmatpush1.bf16.msra.mxu0 %v9588_v43  ;;  %v10777_v43 = vrot.slane %v10761_v36, %v10579_v7 }
 0x28c   :  { %7774 = vmatpush1.bf16.msra.mxu1 %v9591_v44  ;;  %7351 = vmatprep.subr.bf16.mxu0 %v9596_v46  ;;  %v9648_v44 = vld [vmem:[#allocation8 + $0x2a0] ss:$16 sps:$4 sm:$0xff]  }
 0x28d   :  { %7775 = vmatprep.subr.bf16.mxu1 %v9599_v49  ;;  %v9651_v49 = vld [vmem:[#allocation8 + $0x2a8] ss:$16 sps:$4 sm:$0xff]  }
 0x28f   :  { %7352 = vmatpush1.bf16.msra.mxu0 %v9594_v50  ;;  %v9656_v50 = vld [vmem:[#allocation8 + $0x2c4] ss:$16 sps:$4 sm:$0xff]  }
 0x290   :  { %7776 = vmatpush1.bf16.msra.mxu1 %v9597_v51  ;;  %7353 = vmatprep.subr.bf16.mxu0 %v9602_v45 }
 0x291   :  { %7777 = vmatprep.subr.bf16.mxu1 %v9605_v22 }
 0x293   :  { %7354 = vmatpush1.bf16.msra.mxu0 %v9600_v59  ;;  %v9659_v59 = vld [vmem:[#allocation8 + $0x2cc] ss:$16 sps:$4 sm:$0xff]  }
 0x294   :  { %7778 = vmatpush1.bf16.msra.mxu1 %v9603_v60  ;;  %7355 = vmatprep.subr.bf16.mxu0 %v9608_v12 }
 0x295   :  { %7779 = vmatprep.subr.bf16.mxu1 %v9611_v28 }
 0x297   :  { %7356 = vmatpush1.bf16.msra.mxu0 %v9606_v47 }
 0x298   :  { %7780 = vmatpush1.bf16.msra.mxu1 %v9609_v56  ;;  %7357 = vmatprep.subr.bf16.mxu0 %v9614_v18 }
 0x299   :  { %7781 = vmatprep.subr.bf16.mxu1 %v9617_v41 }
 0x29b   :  { %7358 = vmatpush1.bf16.msra.mxu0 %v9612_v62 }
 0x29c   :  { %7782 = vmatpush1.bf16.msra.mxu1 %v9615_v0  ;;  %7380 = vmatprep.subr.bf16.mxu0 %v9620_v15  ;;  %v9654_v0 = vld [vmem:[#allocation8 + $0x2c0] ss:$16 sps:$4 sm:$0xff]  }
 0x29d   :  { %7804 = vmatprep.subr.bf16.mxu1 %v9623_v2 }
 0x29e   :  { %7360 = vmatmul.mubr.bf16.vlgmr.msra.gmra.mrb[32].mxu0 %v10621_v1 }
 0x29f   :  { %7784 = vmatmul.mubr.bf16.vlgmr.msra.gmra.mrb[32].mxu1 %v10621_v1  ;;  %7369 = vmatprep.mubr.bf16.mxu0 %v10645_v58  ;;  %v9641_v1 = vld [vmem:[#allocation8 + $0x26c] ss:$16 sps:$4 sm:$0xff]  }
 0x2a0   :  { %7381 = vmatpush1.bf16.msra.mxu0 %v9618_v9  ;;  %7793 = vmatprep.mubr.bf16.mxu1 %v10645_v58  ;;  %v9636_v58 = vld [vmem:[#allocation8 + $0x260] ss:$16 sps:$4 sm:$0xff]  }
 0x2a1   :  { %7805 = vmatpush1.bf16.msra.mxu1 %v9621_v11  ;;  %7382 = vmatprep.subr.bf16.mxu0 %v9626_v19  ;;  %v9657_v11 = vld [vmem:[#allocation8 + $0x2c8] ss:$16 sps:$4 sm:$0xff]   ;;  %v9662_v19 = vld [vmem:[#allocation8 + $0x2e4] ss:$16 sps:$4 sm:$0xff]  }
 0x2a2   :  { %7806 = vmatprep.subr.bf16.mxu1 %v9629_v20 }
 0x2a4   :  { %7383 = vmatpush1.bf16.msra.mxu0 %v9624_v6 }
 0x2a5   :  { %7807 = vmatpush1.bf16.msra.mxu1 %v9627_v24  ;;  %7384 = vmatprep.subr.bf16.mxu0 %v9632_v25  ;;  %v9665_v25 = vld [vmem:[#allocation8 + $0x2ec] ss:$16 sps:$4 sm:$0xff]  }
 0x2a6   :  { %7370 = vmatmul.mubr.bf16.gmra.mrb[36].mxu0 %v10641_v16  ;;  %7808 = vmatprep.subr.bf16.mxu1 %v9635_v13 }
 0x2a7   :  { %7794 = vmatmul.mubr.bf16.gmra.mrb[36].mxu1 %v10641_v16  ;;  %7412 = vmatprep.mubr.bf16.mxu0 %v10629_v17  ;;  %v9650_v16 = vld [vmem:[#allocation8 + $0x2a4] ss:$16 sps:$4 sm:$0xff]  }
 0x2a8   :  { %7385 = vmatpush1.bf16.msra.mxu0 %v9630_v30  ;;  %7836 = vmatprep.mubr.bf16.mxu1 %v10629_v17  ;;  %v9653_v17 = vld [vmem:[#allocation8 + $0x2ac] ss:$16 sps:$4 sm:$0xff]  }
 0x2a9   :  { %7809 = vmatpush1.bf16.msra.mxu1 %v9633_v3  ;;  %7386 = vmatprep.subr.bf16.mxu0 %v9638_v32 }
 0x2aa   :  { %7810 = vmatprep.subr.bf16.mxu1 %v9641_v1 }
 0x2ac   :  { %7387 = vmatpush1.bf16.msra.mxu0 %v9636_v58 }
 0x2ad   :  { %7811 = vmatpush1.bf16.msra.mxu1 %v9639_v33  ;;  %7388 = vmatprep.subr.bf16.mxu0 %v9644_v34  ;;  %v9660_v34 = vld [vmem:[#allocation8 + $0x2e0] ss:$16 sps:$4 sm:$0xff]  }
 0x2ae   :  { %7812 = vmatprep.subr.bf16.mxu1 %v9647_v35 }
 0x2b0   :  { %7389 = vmatpush1.bf16.msra.mxu0 %v9642_v37 }
 0x2b1   :  { %7813 = vmatpush1.bf16.msra.mxu1 %v9645_v38  ;;  %v3800_v46 = vpop.f32.mrb[16].mxu0  ;;  %7390 = vmatprep.subr.bf16.mxu0 %v9650_v16  ;;  %v3906_v45 = vpop.f32.mrb[16].mxu1  ;;  %v9663_v16 = vld [vmem:[#allocation8 + $0x2e8] ss:$16 sps:$4 sm:$0xff]  }
 0x2b2   :  { %v9274_v51 = vadd.f32 %v3800_v46, %v10765_v39  ;;  %v3802_v22 = vpop.f32.mrb[17].mxu0  ;;  %7814 = vmatprep.subr.bf16.mxu1 %v9653_v17  ;;  %v9282_v60 = vadd.f32 %v3906_v45, %v10769_v40  ;;  %v3908_v28 = vpop.f32.mrb[17].mxu1  ;;  %v9668_v17 = vld [vmem:[#allocation8 + $0x304] ss:$16 sps:$4 sm:$0xff]  }
 0x2b3   :  { %v9275_v12 = vadd.f32 %v3802_v22, %v10773_v42  ;;  %v3804_v47 = vpop.f32.mrb[18].mxu0  ;;  %v9283_v56 = vadd.f32 %v3908_v28, %v10777_v43  ;;  %v3910_v41 = vpop.f32.mrb[18].mxu1 }
 0x2b4   :  { %v9276_v18 = vadd.f32 %v3804_v47, %v10765_v39  ;;  %7391 = vmatpush1.bf16.msra.mxu0 %v9648_v44  ;;  %v3806_v62 = vpop.f32.mrb[19].mxu0  ;;  %v9284_v15 = vadd.f32 %v3910_v41, %v10769_v40  ;;  %v3912_v9 = vpop.f32.mrb[19].mxu1  ;;  %v4145_v20 = vmax.f32 %v9274_v51, 0.0  ;;  %v4147_v13 = vmax.f32 %v9282_v60, 0.0  ;;  %v9671_v51 = vld [vmem:[#allocation8 + $0x30c] ss:$16 sps:$4 sm:$0xff]  }
 0x2b5   :  { %7815 = vmatpush1.bf16.msra.mxu1 %v9651_v49  ;;  %v9277_v2 = vadd.f32 %v3806_v62, %v10773_v42  ;;  %7392 = vmatprep.subr.bf16.mxu0 %v9656_v50  ;;  %v9285_v24 = vadd.f32 %v3912_v9, %v10777_v43  ;;  %v4146_v30 = vmax.f32 %v9275_v12, 0.0  ;;  %v4148_v1 = vmax.f32 %v9283_v56, 0.0 }
 0x2b6   :  { %v4161_v6 = vmax.f32 %v9276_v18, 0.0  ;;  %7816 = vmatprep.subr.bf16.mxu1 %v9659_v59  ;;  %v4163_v3 = vmax.f32 %v9284_v15, 0.0  ;;  %v9666_v18 = vld [vmem:[#allocation8 + $0x300] ss:$16 sps:$4 sm:$0xff]   ;;  %v9669_v15 = vld [vmem:[#allocation8 + $0x308] ss:$16 sps:$4 sm:$0xff]  }
 0x2b7   :  { %v4162_v32 = vmax.f32 %v9277_v2, 0.0  ;;  %v4164_v33 = vmax.f32 %v9285_v24, 0.0  ;;  %v9674_v2 = vld [vmem:[#allocation8 + $0x324] ss:$16 sps:$4 sm:$0xff]  }
 0x2b8   :  { %v10787_v58 = vpack.c.bf16 %v4161_v6, %v4145_v20  ;;  %7393 = vmatpush1.bf16.msra.mxu0 %v9654_v0  ;;  %v10789_v35 = vpack.c.bf16 %v4163_v3, %v4147_v13  ;;  %v9677_v20 = vld [vmem:[#allocation8 + $0x32c] ss:$16 sps:$4 sm:$0xff]  }
 0x2b9   :  { %v10791_v37 = vpack.c.bf16 %v4162_v32, %v4146_v30  ;;  %7817 = vmatpush1.bf16.msra.mxu1 %v9657_v11  ;;  %v3810_v38 = vpop.f32.mrb[20].mxu0  ;;  %7394 = vmatprep.subr.bf16.mxu0 %v9662_v19  ;;  %v10793_v44 = vpack.c.bf16 %v4164_v33, %v4148_v1  ;;  %v3916_v49 = vpop.f32.mrb[20].mxu1  ;;  %v9675_v1 = vld [vmem:[#allocation8 + $0x328] ss:$16 sps:$4 sm:$0xff]  }
 0x2ba   :  { %v9278_v46 = vadd.f32 %v3810_v38, %v10765_v39  ;;  %v3812_v50 = vpop.f32.mrb[21].mxu0  ;;  %7818 = vmatprep.subr.bf16.mxu1 %v9665_v25  ;;  %v9286_v45 = vadd.f32 %v3916_v49, %v10769_v40  ;;  %v3918_v59 = vpop.f32.mrb[21].mxu1  ;;  %v9678_v38 = vld [vmem:[#allocation8 + $0x340] ss:$16 sps:$4 sm:$0xff]  }
 0x2bb   :  { %v9279_v22 = vadd.f32 %v3812_v50, %v10773_v42  ;;  %v3814_v60 = vpop.f32.mrb[22].mxu0  ;;  %v9287_v12 = vadd.f32 %v3918_v59, %v10777_v43  ;;  %v3920_v47 = vpop.f32.mrb[22].mxu1  ;;  %v9684_v49 = vld [vmem:[#allocation8 + $0x360] ss:$16 sps:$4 sm:$0xff]   ;;  %v9687_v50 = vld [vmem:[#allocation8 + $0x368] ss:$16 sps:$4 sm:$0xff]  }
 0x2bc   :  { %v9280_v28 = vadd.f32 %v3814_v60, %v10765_v39  ;;  %7395 = vmatpush1.bf16.msra.mxu0 %v9660_v34  ;;  %v3816_v56 = vpop.f32.mrb[23].mxu0  ;;  %v9288_v41 = vadd.f32 %v3920_v47, %v10769_v40  ;;  %v3922_v0 = vpop.f32.mrb[23].mxu1  ;;  %v4177_v9 = vmax.f32 %v9278_v46, 0.0  ;;  %v4179_v39 = vmax.f32 %v9286_v45, 0.0  ;;  %v9683_v34 = vld [vmem:[#allocation8 + $0x34c] ss:$16 sps:$4 sm:$0xff]  }
 0x2bd   :  { %7819 = vmatpush1.bf16.msra.mxu1 %v9663_v16  ;;  %v9281_v62 = vadd.f32 %v3816_v56, %v10773_v42  ;;  %7396 = vmatprep.subr.bf16.mxu0 %v9668_v17  ;;  %v9289_v19 = vadd.f32 %v3922_v0, %v10777_v43  ;;  %v4178_v6 = vmax.f32 %v9279_v22, 0.0  ;;  %v4180_v13 = vmax.f32 %v9287_v12, 0.0  ;;  %v9672_v42 = vld [vmem:[#allocation8 + $0x320] ss:$16 sps:$4 sm:$0xff]   ;;  %v9680_v43 = vld [vmem:[#allocation8 + $0x344] ss:$16 sps:$4 sm:$0xff]  }
 0x2be   :  { %v4193_v11 = vmax.f32 %v9280_v28, 0.0  ;;  %7820 = vmatprep.subr.bf16.mxu1 %v9671_v51  ;;  %v4195_v24 = vmax.f32 %v9288_v41, 0.0  ;;  %v9681_v16 = vld [vmem:[#allocation8 + $0x348] ss:$16 sps:$4 sm:$0xff]   ;;  %v9686_v17 = vld [vmem:[#allocation8 + $0x364] ss:$16 sps:$4 sm:$0xff]  }
 0x2bf   :  { %v4194_v25 = vmax.f32 %v9281_v62, 0.0  ;;  %v4196_v40 = vmax.f32 %v9289_v19, 0.0  ;;  %v9689_v46 = vld [vmem:[#allocation8 + $0x36c] ss:$16 sps:$4 sm:$0xff]   ;;  %v9692_v51 = vld [vmem:[#allocation8 + $0x384] ss:$16 sps:$4 sm:$0xff]  }
 0x2c0   :  { %v10803_v30 = vpack.c.bf16 %v4193_v11, %v4177_v9  ;;  %7397 = vmatpush1.bf16.msra.mxu0 %v9666_v18  ;;  %v10805_v3 = vpack.c.bf16 %v4195_v24, %v4179_v39  ;;  %v9695_v45 = vld [vmem:[#allocation8 + $0x38c] ss:$16 sps:$4 sm:$0xff]   ;;  %v9690_v22 = vld [vmem:[#allocation8 + $0x380] ss:$16 sps:$4 sm:$0xff]   ;;  %v9693_v59 = vld [vmem:[#allocation8 + $0x388] ss:$16 sps:$4 sm:$0xff]  }
 0x2c1   :  { %v10807_v32 = vpack.c.bf16 %v4194_v25, %v4178_v6  ;;  %7821 = vmatpush1.bf16.msra.mxu1 %v9669_v15  ;;  %7398 = vmatprep.subr.bf16.mxu0 %v9674_v2  ;;  %v10809_v33 = vpack.c.bf16 %v4196_v40, %v4180_v13  ;;  %v9698_v60 = vld [vmem:[#allocation8 + $0x3a4] ss:$16 sps:$4 sm:$0xff]   ;;  %v9701_v12 = vld [vmem:[#allocation8 + $0x3ac] ss:$16 sps:$4 sm:$0xff]   ;;  %v9696_v28 = vld [vmem:[#allocation8 + $0x3a0] ss:$16 sps:$4 sm:$0xff]  }
 0x2c2   :  { %7822 = vmatprep.subr.bf16.mxu1 %v9677_v20  ;;  %v9699_v47 = vld [vmem:[#allocation8 + $0x3a8] ss:$16 sps:$4 sm:$0xff]   ;;  %v9704_v56 = vld [vmem:[#allocation8 + $0x3c4] ss:$16 sps:$4 sm:$0xff]   ;;  %v9707_v18 = vld [vmem:[#allocation8 + $0x3cc] ss:$16 sps:$4 sm:$0xff]  }
 0x2c3   :  { %v9702_v41 = vld [vmem:[#allocation8 + $0x3c0] ss:$16 sps:$4 sm:$0xff]   ;;  %v9705_v62 = vld [vmem:[#allocation8 + $0x3c8] ss:$16 sps:$4 sm:$0xff]   ;;  %v9710_v0 = vld [vmem:[#allocation8 + $0x3e4] ss:$16 sps:$4 sm:$0xff]  }
 0x2c4   :  { %7399 = vmatpush1.bf16.msra.mxu0 %v9672_v42  ;;  %v9713_v15 = vld [vmem:[#allocation8 + $0x3ec] ss:$16 sps:$4 sm:$0xff]   ;;  %v9708_v2 = vld [vmem:[#allocation8 + $0x3e0] ss:$16 sps:$4 sm:$0xff]   ;;  %v9711_v9 = vld [vmem:[#allocation8 + $0x3e8] ss:$16 sps:$4 sm:$0xff]  }
 0x2c5   :  { %7823 = vmatpush1.bf16.msra.mxu1 %v9675_v1  ;;  %7400 = vmatprep.subr.bf16.mxu0 %v9680_v43  ;;  %v9716_v11 = vld [vmem:[#allocation8 + $0x404] ss:$16 sps:$4 sm:$0xff]   ;;  %v9719_v19 = vld [vmem:[#allocation8 + $0x40c] ss:$16 sps:$4 sm:$0xff]   ;;  %v9714_v20 = vld [vmem:[#allocation8 + $0x400] ss:$16 sps:$4 sm:$0xff]  }
 0x2c6   :  { %7824 = vmatprep.subr.bf16.mxu1 %v9683_v34  ;;  %v9717_v39 = vld [vmem:[#allocation8 + $0x408] ss:$16 sps:$4 sm:$0xff]   ;;  %v9722_v6 = vld [vmem:[#allocation8 + $0x424] ss:$16 sps:$4 sm:$0xff]   ;;  %v9725_v24 = vld [vmem:[#allocation8 + $0x42c] ss:$16 sps:$4 sm:$0xff]  }
 0x2c7   :  { %v9720_v25 = vld [vmem:[#allocation8 + $0x420] ss:$16 sps:$4 sm:$0xff]   ;;  %v9723_v13 = vld [vmem:[#allocation8 + $0x428] ss:$16 sps:$4 sm:$0xff]   ;;  %v9728_v40 = vld [vmem:[#allocation8 + $0x444] ss:$16 sps:$4 sm:$0xff]  }
 0x2c8   :  { %7401 = vmatpush1.bf16.msra.mxu0 %v9678_v38  ;;  %v9731_v42 = vld [vmem:[#allocation8 + $0x44c] ss:$16 sps:$4 sm:$0xff]   ;;  %v9726_v1 = vld [vmem:[#allocation8 + $0x440] ss:$16 sps:$4 sm:$0xff]   ;;  %v9729_v43 = vld [vmem:[#allocation8 + $0x448] ss:$16 sps:$4 sm:$0xff]  }
 0x2c9   :  { %7825 = vmatpush1.bf16.msra.mxu1 %v9681_v16  ;;  %7402 = vmatprep.subr.bf16.mxu0 %v9686_v17  ;;  %v9734_v34 = vld [vmem:[#allocation8 + $0x464] ss:$16 sps:$4 sm:$0xff]   ;;  %v9735_v38 = vld [vmem:[#allocation8 + $0x468] ss:$16 sps:$4 sm:$0xff]   ;;  %v9743_v17 = vld [vmem:[#allocation8 + $0x48c] ss:$16 sps:$4 sm:$0xff]  }
 0x2ca   :  { %7826 = vmatprep.subr.bf16.mxu1 %v9689_v46  ;;  %v9740_v16 = vld [vmem:[#allocation8 + $0x484] ss:$16 sps:$4 sm:$0xff]   ;;  %v9738_v46 = vld [vmem:[#allocation8 + $0x480] ss:$16 sps:$4 sm:$0xff]  }
 0x2cc   :  { %7403 = vmatpush1.bf16.msra.mxu0 %v9684_v49  ;;  %v9741_v49 = vld [vmem:[#allocation8 + $0x488] ss:$16 sps:$4 sm:$0xff]  }
 0x2cd   :  { %7827 = vmatpush1.bf16.msra.mxu1 %v9687_v50  ;;  %7404 = vmatprep.subr.bf16.mxu0 %v9692_v51  ;;  %v9746_v50 = vld [vmem:[#allocation8 + $0x4a4] ss:$16 sps:$4 sm:$0xff]   ;;  %v9744_v51 = vld [vmem:[#allocation8 + $0x4a0] ss:$16 sps:$4 sm:$0xff]  }
 0x2ce   :  { %7828 = vmatprep.subr.bf16.mxu1 %v9695_v45  ;;  %v9752_v45 = vld [vmem:[#allocation8 + $0x4c4] ss:$16 sps:$4 sm:$0xff]  }
 0x2d0   :  { %7405 = vmatpush1.bf16.msra.mxu0 %v9690_v22  ;;  %v9755_v22 = vld [vmem:[#allocation8 + $0x4cc] ss:$16 sps:$4 sm:$0xff]  }
 0x2d1   :  { %7829 = vmatpush1.bf16.msra.mxu1 %v9693_v59  ;;  %7406 = vmatprep.subr.bf16.mxu0 %v9698_v60  ;;  %v9750_v59 = vld [vmem:[#allocation8 + $0x4c0] ss:$16 sps:$4 sm:$0xff]   ;;  %v9753_v60 = vld [vmem:[#allocation8 + $0x4c8] ss:$16 sps:$4 sm:$0xff]  }
 0x2d2   :  { %7830 = vmatprep.subr.bf16.mxu1 %v9701_v12  ;;  %v9758_v12 = vld [vmem:[#allocation8 + $0x4e4] ss:$16 sps:$4 sm:$0xff]  }
 0x2d4   :  { %7407 = vmatpush1.bf16.msra.mxu0 %v9696_v28  ;;  %v9761_v28 = vld [vmem:[#allocation8 + $0x4ec] ss:$16 sps:$4 sm:$0xff]  }
 0x2d5   :  { %7831 = vmatpush1.bf16.msra.mxu1 %v9699_v47  ;;  %7408 = vmatprep.subr.bf16.mxu0 %v9704_v56  ;;  %v9756_v47 = vld [vmem:[#allocation8 + $0x4e0] ss:$16 sps:$4 sm:$0xff]   ;;  %v9759_v56 = vld [vmem:[#allocation8 + $0x4e8] ss:$16 sps:$4 sm:$0xff]  }
 0x2d6   :  { %7832 = vmatprep.subr.bf16.mxu1 %v9707_v18  ;;  %v9764_v18 = vld [vmem:[#allocation8 + $0x504] ss:$16 sps:$4 sm:$0xff]  }
 0x2d8   :  { %7409 = vmatpush1.bf16.msra.mxu0 %v9702_v41  ;;  %v9767_v41 = vld [vmem:[#allocation8 + $0x50c] ss:$16 sps:$4 sm:$0xff]  }
 0x2d9   :  { %7833 = vmatpush1.bf16.msra.mxu1 %v9705_v62  ;;  %7410 = vmatprep.subr.bf16.mxu0 %v9710_v0  ;;  %v9762_v62 = vld [vmem:[#allocation8 + $0x500] ss:$16 sps:$4 sm:$0xff]   ;;  %v9765_v0 = vld [vmem:[#allocation8 + $0x508] ss:$16 sps:$4 sm:$0xff]  }
 0x2da   :  { %7834 = vmatprep.subr.bf16.mxu1 %v9713_v15  ;;  %v9770_v15 = vld [vmem:[#allocation8 + $0x524] ss:$16 sps:$4 sm:$0xff]  }
 0x2dc   :  { %7411 = vmatpush1.bf16.msra.mxu0 %v9708_v2  ;;  %v9773_v2 = vld [vmem:[#allocation8 + $0x52c] ss:$16 sps:$4 sm:$0xff]  }
 0x2dd   :  { %7835 = vmatpush1.bf16.msra.mxu1 %v9711_v9  ;;  %7433 = vmatprep.subr.bf16.mxu0 %v9716_v11  ;;  %v9768_v9 = vld [vmem:[#allocation8 + $0x520] ss:$16 sps:$4 sm:$0xff]   ;;  %v9771_v11 = vld [vmem:[#allocation8 + $0x528] ss:$16 sps:$4 sm:$0xff]  }
 0x2de   :  { %7857 = vmatprep.subr.bf16.mxu1 %v9719_v19  ;;  %v9776_v19 = vld [vmem:[#allocation8 + $0x544] ss:$16 sps:$4 sm:$0xff]  }
 0x2df   :  { %7413 = vmatmul.mubr.bf16.vlgmr.msra.gmra.mrb[32].mxu0 %v10625_v8 }
 0x2e0   :  { %7837 = vmatmul.mubr.bf16.vlgmr.msra.gmra.mrb[32].mxu1 %v10625_v8  ;;  %7422 = vmatprep.mubr.bf16.mxu0 %v10647_v61  ;;  %v9737_v8 = vld [vmem:[#allocation8 + $0x46c] ss:$16 sps:$4 sm:$0xff]  }
 0x2e1   :  { %7434 = vmatpush1.bf16.msra.mxu0 %v9714_v20  ;;  %7846 = vmatprep.mubr.bf16.mxu1 %v10647_v61  ;;  %v9732_v61 = vld [vmem:[#allocation8 + $0x460] ss:$16 sps:$4 sm:$0xff]   ;;  %v9779_v20 = vld [vmem:[#allocation8 + $0x54c] ss:$16 sps:$4 sm:$0xff]  }
 0x2e2   :  { %7858 = vmatpush1.bf16.msra.mxu1 %v9717_v39  ;;  %7435 = vmatprep.subr.bf16.mxu0 %v9722_v6  ;;  %v9774_v39 = vld [vmem:[#allocation8 + $0x540] ss:$16 sps:$4 sm:$0xff]   ;;  %v9777_v6 = vld [vmem:[#allocation8 + $0x548] ss:$16 sps:$4 sm:$0xff]  }
 0x2e3   :  { %7859 = vmatprep.subr.bf16.mxu1 %v9725_v24  ;;  %v9782_v24 = vld [vmem:[#allocation8 + $0x564] ss:$16 sps:$4 sm:$0xff]  }
 0x2e5   :  { %7436 = vmatpush1.bf16.msra.mxu0 %v9720_v25  ;;  %v9785_v25 = vld [vmem:[#allocation8 + $0x56c] ss:$16 sps:$4 sm:$0xff]  }
 0x2e6   :  { %7860 = vmatpush1.bf16.msra.mxu1 %v9723_v13  ;;  %7437 = vmatprep.subr.bf16.mxu0 %v9728_v40  ;;  %v9780_v13 = vld [vmem:[#allocation8 + $0x560] ss:$16 sps:$4 sm:$0xff]   ;;  %v9783_v40 = vld [vmem:[#allocation8 + $0x568] ss:$16 sps:$4 sm:$0xff]  }
 0x2e7   :  { %7423 = vmatmul.mubr.bf16.gmra.mrb[36].mxu0 %v10643_v57  ;;  %7861 = vmatprep.subr.bf16.mxu1 %v9731_v42  ;;  %v9788_v42 = vld [vmem:[#allocation8 + $0x584] ss:$16 sps:$4 sm:$0xff]  }
 0x2e8   :  { %7847 = vmatmul.mubr.bf16.gmra.mrb[36].mxu1 %v10643_v57  ;;  %7465 = vmatprep.mubr.bf16.mxu0 %v10723_v23  ;;  %v9749_v57 = vld [vmem:[#allocation8 + $0x4ac] ss:$16 sps:$4 sm:$0xff]  }
 0x2e9   :  { %7438 = vmatpush1.bf16.msra.mxu0 %v9726_v1  ;;  %7889 = vmatprep.mubr.bf16.mxu1 %v10723_v23  ;;  %v9747_v23 = vld [vmem:[#allocation8 + $0x4a8] ss:$16 sps:$4 sm:$0xff]   ;;  %v9791_v1 = vld [vmem:[#allocation8 + $0x58c] ss:$16 sps:$4 sm:$0xff]  }
 0x2ea   :  { %7862 = vmatpush1.bf16.msra.mxu1 %v9729_v43  ;;  %7439 = vmatprep.subr.bf16.mxu0 %v9734_v34  ;;  %v9786_v43 = vld [vmem:[#allocation8 + $0x580] ss:$16 sps:$4 sm:$0xff]   ;;  %v9789_v34 = vld [vmem:[#allocation8 + $0x588] ss:$16 sps:$4 sm:$0xff]  }
 0x2eb   :  { %7863 = vmatprep.subr.bf16.mxu1 %v9737_v8  ;;  %v9794_v8 = vld [vmem:[#allocation8 + $0x5a4] ss:$16 sps:$4 sm:$0xff]  }
 0x2ed   :  { %7440 = vmatpush1.bf16.msra.mxu0 %v9732_v61  ;;  %v9797_v61 = vld [vmem:[#allocation8 + $0x5ac] ss:$16 sps:$4 sm:$0xff]  }
 0x2ee   :  { %7864 = vmatpush1.bf16.msra.mxu1 %v9735_v38  ;;  %7441 = vmatprep.subr.bf16.mxu0 %v9740_v16  ;;  %v9792_v38 = vld [vmem:[#allocation8 + $0x5a0] ss:$16 sps:$4 sm:$0xff]   ;;  %v9795_v16 = vld [vmem:[#allocation8 + $0x5a8] ss:$16 sps:$4 sm:$0xff]  }
 0x2ef   :  { %7865 = vmatprep.subr.bf16.mxu1 %v9743_v17  ;;  %v9800_v17 = vld [vmem:[#allocation8 + $0x5c4] ss:$16 sps:$4 sm:$0xff]  }
 0x2f1   :  { %7442 = vmatpush1.bf16.msra.mxu0 %v9738_v46  ;;  %v9803_v46 = vld [vmem:[#allocation8 + $0x5cc] ss:$16 sps:$4 sm:$0xff]  }
 0x2f2   :  { %7866 = vmatpush1.bf16.msra.mxu1 %v9741_v49  ;;  %7443 = vmatprep.subr.bf16.mxu0 %v9746_v50  ;;  %v9798_v49 = vld [vmem:[#allocation8 + $0x5c0] ss:$16 sps:$4 sm:$0xff]   ;;  %v9801_v50 = vld [vmem:[#allocation8 + $0x5c8] ss:$16 sps:$4 sm:$0xff]  }
 0x2f3   :  { %7867 = vmatprep.subr.bf16.mxu1 %v9749_v57  ;;  %v9806_v57 = vld [vmem:[#allocation8 + $0x5e4] ss:$16 sps:$4 sm:$0xff]  }
 0x2f5   :  { %7444 = vmatpush1.bf16.msra.mxu0 %v9744_v51  ;;  %v9809_v51 = vld [vmem:[#allocation8 + $0x5ec] ss:$16 sps:$4 sm:$0xff]  }
 0x2f6   :  { %7868 = vmatpush1.bf16.msra.mxu1 %v9747_v23  ;;  %7445 = vmatprep.subr.bf16.mxu0 %v9752_v45  ;;  %v9804_v23 = vld [vmem:[#allocation8 + $0x5e0] ss:$16 sps:$4 sm:$0xff]   ;;  %v9807_v45 = vld [vmem:[#allocation8 + $0x5e8] ss:$16 sps:$4 sm:$0xff]  }
 0x2f7   :  { %7869 = vmatprep.subr.bf16.mxu1 %v9755_v22  ;;  %v9812_v22 = vld [vmem:[#allocation8 + $0x604] ss:$16 sps:$4 sm:$0xff]  }
 0x2f9   :  { %7446 = vmatpush1.bf16.msra.mxu0 %v9750_v59  ;;  %v9815_v59 = vld [vmem:[#allocation8 + $0x60c] ss:$16 sps:$4 sm:$0xff]  }
 0x2fa   :  { %7870 = vmatpush1.bf16.msra.mxu1 %v9753_v60  ;;  %7447 = vmatprep.subr.bf16.mxu0 %v9758_v12  ;;  %v9810_v60 = vld [vmem:[#allocation8 + $0x600] ss:$16 sps:$4 sm:$0xff]   ;;  %v9813_v12 = vld [vmem:[#allocation8 + $0x608] ss:$16 sps:$4 sm:$0xff]  }
 0x2fb   :  { %7871 = vmatprep.subr.bf16.mxu1 %v9761_v28  ;;  %v9818_v28 = vld [vmem:[#allocation8 + $0x624] ss:$16 sps:$4 sm:$0xff]  }
 0x2fd   :  { %7448 = vmatpush1.bf16.msra.mxu0 %v9756_v47  ;;  %v9821_v47 = vld [vmem:[#allocation8 + $0x62c] ss:$16 sps:$4 sm:$0xff]  }
 0x2fe   :  { %7872 = vmatpush1.bf16.msra.mxu1 %v9759_v56  ;;  %7449 = vmatprep.subr.bf16.mxu0 %v9764_v18  ;;  %v9816_v56 = vld [vmem:[#allocation8 + $0x620] ss:$16 sps:$4 sm:$0xff]   ;;  %v9819_v18 = vld [vmem:[#allocation8 + $0x628] ss:$16 sps:$4 sm:$0xff]  }
 0x2ff   :  { %7873 = vmatprep.subr.bf16.mxu1 %v9767_v41  ;;  %v9824_v41 = vld [vmem:[#allocation8 + $0x644] ss:$16 sps:$4 sm:$0xff]  }
 0x301   :  { %7450 = vmatpush1.bf16.msra.mxu0 %v9762_v62  ;;  %v9827_v62 = vld [vmem:[#allocation8 + $0x64c] ss:$16 sps:$4 sm:$0xff]  }
 0x302   :  { %7874 = vmatpush1.bf16.msra.mxu1 %v9765_v0  ;;  %7451 = vmatprep.subr.bf16.mxu0 %v9770_v15  ;;  %v9822_v0 = vld [vmem:[#allocation8 + $0x640] ss:$16 sps:$4 sm:$0xff]   ;;  %v9825_v15 = vld [vmem:[#allocation8 + $0x648] ss:$16 sps:$4 sm:$0xff]  }
 0x303   :  { %7875 = vmatprep.subr.bf16.mxu1 %v9773_v2  ;;  %v9830_v2 = vld [vmem:[#allocation8 + $0x664] ss:$16 sps:$4 sm:$0xff]  }
 0x305   :  { %7452 = vmatpush1.bf16.msra.mxu0 %v9768_v9  ;;  %v9831_v9 = vld [vmem:[#allocation8 + $0x668] ss:$16 sps:$4 sm:$0xff]  }
 0x306   :  { %7876 = vmatpush1.bf16.msra.mxu1 %v9771_v11  ;;  %7453 = vmatprep.subr.bf16.mxu0 %v9776_v19  ;;  %v9836_v11 = vld [vmem:[#allocation8 + $0x684] ss:$16 sps:$4 sm:$0xff]   ;;  %v9839_v19 = vld [vmem:[#allocation8 + $0x68c] ss:$16 sps:$4 sm:$0xff]  }
 0x307   :  { %7877 = vmatprep.subr.bf16.mxu1 %v9779_v20  ;;  %v9834_v20 = vld [vmem:[#allocation8 + $0x680] ss:$16 sps:$4 sm:$0xff]  }
 0x309   :  { %7454 = vmatpush1.bf16.msra.mxu0 %v9774_v39  ;;  %v10830_v39 = vrot.slane %v10761_v36, %v627_v48  ;;  %v10845_v48 = vrot.slane %v10761_v36, %v639_v53 }
 0x30a   :  { %7878 = vmatpush1.bf16.msra.mxu1 %v9777_v6  ;;  %7455 = vmatprep.subr.bf16.mxu0 %v9782_v24  ;;  %v10840_v6 = vrot.slane %v10761_v36, %v631_v52  ;;  %v9842_v24 = vld [vmem:[#allocation8 + $0x6a4] ss:$16 sps:$4 sm:$0xff]  }
 0x30b   :  { %7879 = vmatprep.subr.bf16.mxu1 %v9785_v25  ;;  %v9845_v25 = vld [vmem:[#allocation8 + $0x6ac] ss:$16 sps:$4 sm:$0xff]  }
 0x30d   :  { %7456 = vmatpush1.bf16.msra.mxu0 %v9780_v13 }
 0x30e   :  { %7880 = vmatpush1.bf16.msra.mxu1 %v9783_v40  ;;  %7457 = vmatprep.subr.bf16.mxu0 %v9788_v42 }
 0x30f   :  { %7881 = vmatprep.subr.bf16.mxu1 %v9791_v1  ;;  %v9840_v1 = vld [vmem:[#allocation8 + $0x6a0] ss:$16 sps:$4 sm:$0xff]  }
 0x311   :  { %7458 = vmatpush1.bf16.msra.mxu0 %v9786_v43 }
 0x312   :  { %7882 = vmatpush1.bf16.msra.mxu1 %v9789_v34  ;;  %7459 = vmatprep.subr.bf16.mxu0 %v9794_v8  ;;  %v9843_v8 = vld [vmem:[#allocation8 + $0x6a8] ss:$16 sps:$4 sm:$0xff]  }
 0x313   :  { %7883 = vmatprep.subr.bf16.mxu1 %v9797_v61  ;;  %v9848_v61 = vld [vmem:[#allocation8 + $0x6c4] ss:$16 sps:$4 sm:$0xff]  }
 0x315   :  { %7460 = vmatpush1.bf16.msra.mxu0 %v9792_v38 }
 0x316   :  { %7884 = vmatpush1.bf16.msra.mxu1 %v9795_v16  ;;  %7461 = vmatprep.subr.bf16.mxu0 %v9800_v17  ;;  %v9851_v17 = vld [vmem:[#allocation8 + $0x6cc] ss:$16 sps:$4 sm:$0xff]  }
 0x317   :  { %7885 = vmatprep.subr.bf16.mxu1 %v9803_v46 }
 0x319   :  { %7462 = vmatpush1.bf16.msra.mxu0 %v9798_v49 }
 0x31a   :  { %7886 = vmatpush1.bf16.msra.mxu1 %v9801_v50  ;;  %7463 = vmatprep.subr.bf16.mxu0 %v9806_v57 }
 0x31b   :  { %7887 = vmatprep.subr.bf16.mxu1 %v9809_v51 }
 0x31d   :  { %7464 = vmatpush1.bf16.msra.mxu0 %v9804_v23 }
 0x31e   :  { %7888 = vmatpush1.bf16.msra.mxu1 %v9807_v45  ;;  %7486 = vmatprep.subr.bf16.mxu0 %v9812_v22  ;;  %v9846_v45 = vld [vmem:[#allocation8 + $0x6c0] ss:$16 sps:$4 sm:$0xff]   ;;  %v9849_v22 = vld [vmem:[#allocation8 + $0x6c8] ss:$16 sps:$4 sm:$0xff]  }
 0x31f   :  { %7910 = vmatprep.subr.bf16.mxu1 %v9815_v59 }
 0x320   :  { %7466 = vmatmul.mubr.bf16.vlgmr.msra.gmra.mrb[32].mxu0 %v10717_v14 }
 0x321   :  { %7890 = vmatmul.mubr.bf16.vlgmr.msra.gmra.mrb[32].mxu1 %v10717_v14  ;;  %7475 = vmatprep.mubr.bf16.mxu0 %v10741_v27  ;;  %v9833_v14 = vld [vmem:[#allocation8 + $0x66c] ss:$16 sps:$4 sm:$0xff]  }
 0x322   :  { %7487 = vmatpush1.bf16.msra.mxu0 %v9810_v60  ;;  %7899 = vmatprep.mubr.bf16.mxu1 %v10741_v27  ;;  %v9828_v27 = vld [vmem:[#allocation8 + $0x660] ss:$16 sps:$4 sm:$0xff]  }
 0x323   :  { %7911 = vmatpush1.bf16.msra.mxu1 %v9813_v12  ;;  %7488 = vmatprep.subr.bf16.mxu0 %v9818_v28 }
 0x324   :  { %7912 = vmatprep.subr.bf16.mxu1 %v9821_v47  ;;  %v9854_v47 = vld [vmem:[#allocation8 + $0x6e4] ss:$16 sps:$4 sm:$0xff]  }
 0x326   :  { %7489 = vmatpush1.bf16.msra.mxu0 %v9816_v56 }
 0x327   :  { %7913 = vmatpush1.bf16.msra.mxu1 %v9819_v18  ;;  %7490 = vmatprep.subr.bf16.mxu0 %v9824_v41 }
 0x328   :  { %7476 = vmatmul.mubr.bf16.gmra.mrb[36].mxu0 %v10737_v10  ;;  %7914 = vmatprep.subr.bf16.mxu1 %v9827_v62  ;;  %v9857_v62 = vld [vmem:[#allocation8 + $0x6ec] ss:$16 sps:$4 sm:$0xff]  }
 0x329   :  { %7900 = vmatmul.mubr.bf16.gmra.mrb[36].mxu1 %v10737_v10  ;;  %7518 = vmatprep.mubr.bf16.mxu0 %v10725_v29  ;;  %v9837_v10 = vld [vmem:[#allocation8 + $0x688] ss:$16 sps:$4 sm:$0xff]  }
 0x32a   :  { %7491 = vmatpush1.bf16.msra.mxu0 %v9822_v0  ;;  %7942 = vmatprep.mubr.bf16.mxu1 %v10725_v29  ;;  %v10835_v29 = vrot.slane %v10761_v36, %v635_v55 }
 0x32b   :  { %7915 = vmatpush1.bf16.msra.mxu1 %v9825_v15  ;;  %7492 = vmatprep.subr.bf16.mxu0 %v9830_v2 }
 0x32c   :  { %7916 = vmatprep.subr.bf16.mxu1 %v9833_v14 }
 0x32e   :  { %7493 = vmatpush1.bf16.msra.mxu0 %v9828_v27 }
 0x32f   :  { %7917 = vmatpush1.bf16.msra.mxu1 %v9831_v9  ;;  %7494 = vmatprep.subr.bf16.mxu0 %v9836_v11 }
 0x330   :  { %7918 = vmatprep.subr.bf16.mxu1 %v9839_v19  ;;  %v9852_v19 = vld [vmem:[#allocation8 + $0x6e0] ss:$16 sps:$4 sm:$0xff]  }
 0x331   :  { %v4012_v13 = vpop.f32.mrb[24].mxu0  ;;  %v4118_v42 = vpop.f32.mrb[24].mxu1 }
 0x332   :  { %7495 = vmatpush1.bf16.msra.mxu0 %v9834_v20  ;;  %v9290_v40 = vadd.f32 %v4012_v13, %v10830_v39  ;;  %v4014_v55 = vpop.f32.mrb[25].mxu0  ;;  %v9298_v43 = vadd.f32 %v4118_v42, %v10835_v29  ;;  %v4120_v34 = vpop.f32.mrb[25].mxu1 }
 0x333   :  { %7919 = vmatpush1.bf16.msra.mxu1 %v9837_v10  ;;  %v9291_v52 = vadd.f32 %v4014_v55, %v10840_v6  ;;  %7496 = vmatprep.subr.bf16.mxu0 %v9842_v24  ;;  %v4016_v54 = vpop.f32.mrb[26].mxu0  ;;  %v9299_v53 = vadd.f32 %v4120_v34, %v10845_v48  ;;  %v4122_v38 = vpop.f32.mrb[26].mxu1 }
 0x334   :  { %7920 = vmatprep.subr.bf16.mxu1 %v9845_v25  ;;  %v9292_v36 = vadd.f32 %v4016_v54, %v10830_v39  ;;  %v4018_v16 = vpop.f32.mrb[27].mxu0  ;;  %v9300_v46 = vadd.f32 %v4122_v38, %v10835_v29  ;;  %v4124_v50 = vpop.f32.mrb[27].mxu1  ;;  %v4149_v57 = vmax.f32 %v9290_v40, 0.0  ;;  %v4151_v59 = vmax.f32 %v9298_v43, 0.0  ;;  %v9855_v25 = vld [vmem:[#allocation8 + $0x6e8] ss:$16 sps:$4 sm:$0xff]  }
 0x335   :  { %v9293_v49 = vadd.f32 %v4018_v16, %v10840_v6  ;;  %v9301_v23 = vadd.f32 %v4124_v50, %v10845_v48  ;;  %v4150_v60 = vmax.f32 %v9291_v52, 0.0  ;;  %v4152_v56 = vmax.f32 %v9299_v53, 0.0  ;;  %v9860_v40 = vld [vmem:[#allocation8 + $0x704] ss:$16 sps:$4 sm:$0xff]   ;;  %v9863_v52 = vld [vmem:[#allocation8 + $0x70c] ss:$16 sps:$4 sm:$0xff]  }
 0x336   :  { %v4165_v51 = vmax.f32 %v9292_v36, 0.0  ;;  %7497 = vmatpush1.bf16.msra.mxu0 %v9840_v1  ;;  %v4167_v12 = vmax.f32 %v9300_v46, 0.0  ;;  %v9858_v38 = vld [vmem:[#allocation8 + $0x700] ss:$16 sps:$4 sm:$0xff]   ;;  %v9861_v16 = vld [vmem:[#allocation8 + $0x708] ss:$16 sps:$4 sm:$0xff]  }
 0x337   :  { %7921 = vmatpush1.bf16.msra.mxu1 %v9843_v8  ;;  %v4166_v28 = vmax.f32 %v9293_v49, 0.0  ;;  %7498 = vmatprep.subr.bf16.mxu0 %v9848_v61  ;;  %v4168_v41 = vmax.f32 %v9301_v23, 0.0  ;;  %v9866_v50 = vld [vmem:[#allocation8 + $0x724] ss:$16 sps:$4 sm:$0xff]  }
 0x338   :  { %v10855_v18 = vpack.c.bf16 %v4165_v51, %v4149_v57  ;;  %7922 = vmatprep.subr.bf16.mxu1 %v9851_v17  ;;  %v10857_v0 = vpack.c.bf16 %v4167_v12, %v4151_v59  ;;  %v9867_v59 = vld [vmem:[#allocation8 + $0x728] ss:$16 sps:$4 sm:$0xff]   ;;  %v9875_v12 = vld [vmem:[#allocation8 + $0x74c] ss:$16 sps:$4 sm:$0xff]  }
 0x339   :  { %v10859_v15 = vpack.c.bf16 %v4166_v28, %v4150_v60  ;;  %v4022_v2 = vpop.f32.mrb[28].mxu0  ;;  %v10861_v14 = vpack.c.bf16 %v4168_v41, %v4152_v56  ;;  %v4128_v9 = vpop.f32.mrb[28].mxu1  ;;  %v9872_v60 = vld [vmem:[#allocation8 + $0x744] ss:$16 sps:$4 sm:$0xff]   ;;  %v9870_v28 = vld [vmem:[#allocation8 + $0x740] ss:$16 sps:$4 sm:$0xff]  }
 0x33a   :  { %7499 = vmatpush1.bf16.msra.mxu0 %v9846_v45  ;;  %v9294_v27 = vadd.f32 %v4022_v2, %v10830_v39  ;;  %v4024_v11 = vpop.f32.mrb[29].mxu0  ;;  %v9302_v20 = vadd.f32 %v4128_v9, %v10835_v29  ;;  %v4130_v24 = vpop.f32.mrb[29].mxu1  ;;  %v9878_v56 = vld [vmem:[#allocation8 + $0x764] ss:$16 sps:$4 sm:$0xff]   ;;  %v9881_v41 = vld [vmem:[#allocation8 + $0x76c] ss:$16 sps:$4 sm:$0xff]  }
 0x33b   :  { %7923 = vmatpush1.bf16.msra.mxu1 %v9849_v22  ;;  %v9295_v10 = vadd.f32 %v4024_v11, %v10840_v6  ;;  %7500 = vmatprep.subr.bf16.mxu0 %v9854_v47  ;;  %v4026_v13 = vpop.f32.mrb[30].mxu0  ;;  %v9303_v42 = vadd.f32 %v4130_v24, %v10845_v48  ;;  %v4132_v1 = vpop.f32.mrb[30].mxu1  ;;  %v9864_v22 = vld [vmem:[#allocation8 + $0x720] ss:$16 sps:$4 sm:$0xff]   ;;  %v9873_v47 = vld [vmem:[#allocation8 + $0x748] ss:$16 sps:$4 sm:$0xff]  }
 0x33c   :  { %7924 = vmatprep.subr.bf16.mxu1 %v9857_v62  ;;  %v9296_v55 = vadd.f32 %v4026_v13, %v10830_v39  ;;  %v4028_v43 = vpop.f32.mrb[31].mxu0  ;;  %v9304_v34 = vadd.f32 %v4132_v1, %v10835_v29  ;;  %v4134_v54 = vpop.f32.mrb[31].mxu1  ;;  %v4181_v61 = vmax.f32 %v9294_v27, 0.0  ;;  %v4183_v17 = vmax.f32 %v9302_v20, 0.0  ;;  %v9876_v62 = vld [vmem:[#allocation8 + $0x760] ss:$16 sps:$4 sm:$0xff]  }
 0x33d   :  { %v9297_v8 = vadd.f32 %v4028_v43, %v10840_v6  ;;  %v9305_v36 = vadd.f32 %v4134_v54, %v10845_v48  ;;  %v4182_v46 = vmax.f32 %v9295_v10, 0.0  ;;  %v4184_v57 = vmax.f32 %v9303_v42, 0.0  ;;  %v9869_v6 = vld [vmem:[#allocation8 + $0x72c] ss:$16 sps:$4 sm:$0xff]   ;;  %v9879_v2 = vld [vmem:[#allocation8 + $0x768] ss:$16 sps:$4 sm:$0xff]  }
 0x33e   :  { %v4197_v53 = vmax.f32 %v9296_v55, 0.0  ;;  %7501 = vmatpush1.bf16.msra.mxu0 %v9852_v19  ;;  %v4199_v49 = vmax.f32 %v9304_v34, 0.0  ;;  %v9884_v27 = vld [vmem:[#allocation8 + $0x784] ss:$16 sps:$4 sm:$0xff]   ;;  %v9887_v9 = vld [vmem:[#allocation8 + $0x78c] ss:$16 sps:$4 sm:$0xff]  }
 0x33f   :  { %7925 = vmatpush1.bf16.msra.mxu1 %v9855_v25  ;;  %v4198_v39 = vmax.f32 %v9297_v8, 0.0  ;;  %7502 = vmatprep.subr.bf16.mxu0 %v9860_v40  ;;  %v4200_v29 = vmax.f32 %v9305_v36, 0.0  ;;  %v9882_v11 = vld [vmem:[#allocation8 + $0x780] ss:$16 sps:$4 sm:$0xff]   ;;  %v9885_v19 = vld [vmem:[#allocation8 + $0x788] ss:$16 sps:$4 sm:$0xff]  }
 0x340   :  { %v10871_v51 = vpack.c.bf16 %v4197_v53, %v4181_v61  ;;  %7926 = vmatprep.subr.bf16.mxu1 %v9863_v52  ;;  %v10873_v23 = vpack.c.bf16 %v4199_v49, %v4183_v17  ;;  %v9890_v20 = vld [vmem:[#allocation8 + $0x7a4] ss:$16 sps:$4 sm:$0xff]   ;;  %v9893_v10 = vld [vmem:[#allocation8 + $0x7ac] ss:$16 sps:$4 sm:$0xff]   ;;  %v9888_v24 = vld [vmem:[#allocation8 + $0x7a0] ss:$16 sps:$4 sm:$0xff]  }
 0x341   :  { %v10875_v45 = vpack.c.bf16 %v4198_v39, %v4182_v46  ;;  %v10877_v48 = vpack.c.bf16 %v4200_v29, %v4184_v57  ;;  %v9891_v25 = vld [vmem:[#allocation8 + $0x7a8] ss:$16 sps:$4 sm:$0xff]   ;;  %v9896_v13 = vld [vmem:[#allocation8 + $0x7c4] ss:$16 sps:$4 sm:$0xff]   ;;  %v9899_v40 = vld [vmem:[#allocation8 + $0x7cc] ss:$16 sps:$4 sm:$0xff]  }
 0x342   :  { %7503 = vmatpush1.bf16.msra.mxu0 %v9858_v38  ;;  %v9894_v42 = vld [vmem:[#allocation8 + $0x7c0] ss:$16 sps:$4 sm:$0xff]   ;;  %v9897_v55 = vld [vmem:[#allocation8 + $0x7c8] ss:$16 sps:$4 sm:$0xff]   ;;  %v9902_v1 = vld [vmem:[#allocation8 + $0x7e4] ss:$16 sps:$4 sm:$0xff]  }
 0x343   :  { %7927 = vmatpush1.bf16.msra.mxu1 %v9861_v16  ;;  %7504 = vmatprep.subr.bf16.mxu0 %v9866_v50  ;;  %v9905_v43 = vld [vmem:[#allocation8 + $0x7ec] ss:$16 sps:$4 sm:$0xff]   ;;  %v9900_v52 = vld [vmem:[#allocation8 + $0x7e0] ss:$16 sps:$4 sm:$0xff]   ;;  %v9903_v34 = vld [vmem:[#allocation8 + $0x7e8] ss:$16 sps:$4 sm:$0xff]  }
 0x344   :  { %7928 = vmatprep.subr.bf16.mxu1 %v9869_v6  ;;  %v9908_v8 = vld [vmem:[#allocation8 + $0x804] ss:$16 sps:$4 sm:$0xff]   ;;  %v9911_v54 = vld [vmem:[#allocation8 + $0x80c] ss:$16 sps:$4 sm:$0xff]   ;;  %v9906_v61 = vld [vmem:[#allocation8 + $0x800] ss:$16 sps:$4 sm:$0xff]  }
 0x345   :  { %v9909_v53 = vld [vmem:[#allocation8 + $0x808] ss:$16 sps:$4 sm:$0xff]   ;;  %v9914_v36 = vld [vmem:[#allocation8 + $0x824] ss:$16 sps:$4 sm:$0xff]   ;;  %v9917_v38 = vld [vmem:[#allocation8 + $0x82c] ss:$16 sps:$4 sm:$0xff]  }
 0x346   :  { %7505 = vmatpush1.bf16.msra.mxu0 %v9864_v22  ;;  %v9912_v16 = vld [vmem:[#allocation8 + $0x820] ss:$16 sps:$4 sm:$0xff]   ;;  %v9915_v17 = vld [vmem:[#allocation8 + $0x828] ss:$16 sps:$4 sm:$0xff]   ;;  %v9920_v46 = vld [vmem:[#allocation8 + $0x844] ss:$16 sps:$4 sm:$0xff]  }
 0x347   :  { %7929 = vmatpush1.bf16.msra.mxu1 %v9867_v59  ;;  %7506 = vmatprep.subr.bf16.mxu0 %v9872_v60  ;;  %v9923_v49 = vld [vmem:[#allocation8 + $0x84c] ss:$16 sps:$4 sm:$0xff]   ;;  %v9918_v39 = vld [vmem:[#allocation8 + $0x840] ss:$16 sps:$4 sm:$0xff]   ;;  %v9921_v50 = vld [vmem:[#allocation8 + $0x848] ss:$16 sps:$4 sm:$0xff]  }
 0x348   :  { %7930 = vmatprep.subr.bf16.mxu1 %v9875_v12  ;;  %v9926_v57 = vld [vmem:[#allocation8 + $0x864] ss:$16 sps:$4 sm:$0xff]   ;;  %v9927_v29 = vld [vmem:[#allocation8 + $0x868] ss:$16 sps:$4 sm:$0xff]   ;;  %v9935_v22 = vld [vmem:[#allocation8 + $0x88c] ss:$16 sps:$4 sm:$0xff]  }
 0x349   :  { %v9932_v6 = vld [vmem:[#allocation8 + $0x884] ss:$16 sps:$4 sm:$0xff]   ;;  %v9930_v59 = vld [vmem:[#allocation8 + $0x880] ss:$16 sps:$4 sm:$0xff]   ;;  %v9933_v60 = vld [vmem:[#allocation8 + $0x888] ss:$16 sps:$4 sm:$0xff]  }
 0x34a   :  { %7507 = vmatpush1.bf16.msra.mxu0 %v9870_v28  ;;  %v9938_v12 = vld [vmem:[#allocation8 + $0x8a4] ss:$16 sps:$4 sm:$0xff]   ;;  %v9936_v28 = vld [vmem:[#allocation8 + $0x8a0] ss:$16 sps:$4 sm:$0xff]  }
 0x34b   :  { %7931 = vmatpush1.bf16.msra.mxu1 %v9873_v47  ;;  %7508 = vmatprep.subr.bf16.mxu0 %v9878_v56  ;;  %v9944_v47 = vld [vmem:[#allocation8 + $0x8c4] ss:$16 sps:$4 sm:$0xff]   ;;  %v9947_v56 = vld [vmem:[#allocation8 + $0x8cc] ss:$16 sps:$4 sm:$0xff]  }
 0x34c   :  { %7932 = vmatprep.subr.bf16.mxu1 %v9881_v41  ;;  %v9942_v41 = vld [vmem:[#allocation8 + $0x8c0] ss:$16 sps:$4 sm:$0xff]  }
 0x34e   :  { %7509 = vmatpush1.bf16.msra.mxu0 %v9876_v62  ;;  %v9945_v62 = vld [vmem:[#allocation8 + $0x8c8] ss:$16 sps:$4 sm:$0xff]  }
 0x34f   :  { %7933 = vmatpush1.bf16.msra.mxu1 %v9879_v2  ;;  %7510 = vmatprep.subr.bf16.mxu0 %v9884_v27  ;;  %v9950_v2 = vld [vmem:[#allocation8 + $0x8e4] ss:$16 sps:$4 sm:$0xff]   ;;  %v9953_v27 = vld [vmem:[#allocation8 + $0x8ec] ss:$16 sps:$4 sm:$0xff]  }
 0x350   :  { %7934 = vmatprep.subr.bf16.mxu1 %v9887_v9  ;;  %v9948_v9 = vld [vmem:[#allocation8 + $0x8e0] ss:$16 sps:$4 sm:$0xff]  }
 0x352   :  { %7511 = vmatpush1.bf16.msra.mxu0 %v9882_v11  ;;  %v9951_v11 = vld [vmem:[#allocation8 + $0x8e8] ss:$16 sps:$4 sm:$0xff]  }
 0x353   :  { %7935 = vmatpush1.bf16.msra.mxu1 %v9885_v19  ;;  %7512 = vmatprep.subr.bf16.mxu0 %v9890_v20  ;;  %v9956_v19 = vld [vmem:[#allocation8 + $0x904] ss:$16 sps:$4 sm:$0xff]   ;;  %v9959_v20 = vld [vmem:[#allocation8 + $0x90c] ss:$16 sps:$4 sm:$0xff]  }
 0x354   :  { %7936 = vmatprep.subr.bf16.mxu1 %v9893_v10  ;;  %v9954_v10 = vld [vmem:[#allocation8 + $0x900] ss:$16 sps:$4 sm:$0xff]  }
 0x356   :  { %7513 = vmatpush1.bf16.msra.mxu0 %v9888_v24  ;;  %v9957_v24 = vld [vmem:[#allocation8 + $0x908] ss:$16 sps:$4 sm:$0xff]  }
 0x357   :  { %7937 = vmatpush1.bf16.msra.mxu1 %v9891_v25  ;;  %7514 = vmatprep.subr.bf16.mxu0 %v9896_v13  ;;  %v9962_v25 = vld [vmem:[#allocation8 + $0x924] ss:$16 sps:$4 sm:$0xff]   ;;  %v9965_v13 = vld [vmem:[#allocation8 + $0x92c] ss:$16 sps:$4 sm:$0xff]  }
 0x358   :  { %7938 = vmatprep.subr.bf16.mxu1 %v9899_v40  ;;  %v9960_v40 = vld [vmem:[#allocation8 + $0x920] ss:$16 sps:$4 sm:$0xff]  }
 0x35a   :  { %7515 = vmatpush1.bf16.msra.mxu0 %v9894_v42  ;;  %v9963_v42 = vld [vmem:[#allocation8 + $0x928] ss:$16 sps:$4 sm:$0xff]  }
 0x35b   :  { %7939 = vmatpush1.bf16.msra.mxu1 %v9897_v55  ;;  %7516 = vmatprep.subr.bf16.mxu0 %v9902_v1  ;;  %v9968_v55 = vld [vmem:[#allocation8 + $0x944] ss:$16 sps:$4 sm:$0xff]   ;;  %v9971_v1 = vld [vmem:[#allocation8 + $0x94c] ss:$16 sps:$4 sm:$0xff]  }
 0x35c   :  { %7940 = vmatprep.subr.bf16.mxu1 %v9905_v43  ;;  %v9966_v43 = vld [vmem:[#allocation8 + $0x940] ss:$16 sps:$4 sm:$0xff]  }
 0x35e   :  { %7517 = vmatpush1.bf16.msra.mxu0 %v9900_v52  ;;  %v9969_v52 = vld [vmem:[#allocation8 + $0x948] ss:$16 sps:$4 sm:$0xff]  }
 0x35f   :  { %7941 = vmatpush1.bf16.msra.mxu1 %v9903_v34  ;;  %7539 = vmatprep.subr.bf16.mxu0 %v9908_v8  ;;  %v9974_v34 = vld [vmem:[#allocation8 + $0x964] ss:$16 sps:$4 sm:$0xff]   ;;  %v9977_v8 = vld [vmem:[#allocation8 + $0x96c] ss:$16 sps:$4 sm:$0xff]  }
 0x360   :  { %7963 = vmatprep.subr.bf16.mxu1 %v9911_v54  ;;  %v9972_v54 = vld [vmem:[#allocation8 + $0x960] ss:$16 sps:$4 sm:$0xff]  }
 0x361   :  { %7519 = vmatmul.mubr.bf16.vlgmr.msra.gmra.mrb[32].mxu0 %v10721_v21 }
 0x362   :  { %7943 = vmatmul.mubr.bf16.vlgmr.msra.gmra.mrb[32].mxu1 %v10721_v21  ;;  %7528 = vmatprep.mubr.bf16.mxu0 %v10743_v31  ;;  %v9929_v21 = vld [vmem:[#allocation8 + $0x86c] ss:$16 sps:$4 sm:$0xff]  }
 0x363   :  { %7540 = vmatpush1.bf16.msra.mxu0 %v9906_v61  ;;  %7952 = vmatprep.mubr.bf16.mxu1 %v10743_v31  ;;  %v9924_v31 = vld [vmem:[#allocation8 + $0x860] ss:$16 sps:$4 sm:$0xff]   ;;  %v9975_v61 = vld [vmem:[#allocation8 + $0x968] ss:$16 sps:$4 sm:$0xff]  }
 0x364   :  { %7964 = vmatpush1.bf16.msra.mxu1 %v9909_v53  ;;  %7541 = vmatprep.subr.bf16.mxu0 %v9914_v36  ;;  %v9980_v53 = vld [vmem:[#allocation8 + $0x984] ss:$16 sps:$4 sm:$0xff]   ;;  %v9983_v36 = vld [vmem:[#allocation8 + $0x98c] ss:$16 sps:$4 sm:$0xff]  }
 0x365   :  { %7965 = vmatprep.subr.bf16.mxu1 %v9917_v38  ;;  %v9978_v38 = vld [vmem:[#allocation8 + $0x980] ss:$16 sps:$4 sm:$0xff]  }
 0x367   :  { %7542 = vmatpush1.bf16.msra.mxu0 %v9912_v16  ;;  %v9981_v16 = vld [vmem:[#allocation8 + $0x988] ss:$16 sps:$4 sm:$0xff]  }
 0x368   :  { %7966 = vmatpush1.bf16.msra.mxu1 %v9915_v17  ;;  %7543 = vmatprep.subr.bf16.mxu0 %v9920_v46  ;;  %v9986_v17 = vld [vmem:[#allocation8 + $0x9a4] ss:$16 sps:$4 sm:$0xff]   ;;  %v9989_v46 = vld [vmem:[#allocation8 + $0x9ac] ss:$16 sps:$4 sm:$0xff]  }
 0x369   :  { %7529 = vmatmul.mubr.bf16.gmra.mrb[36].mxu0 %v10739_v26  ;;  %7967 = vmatprep.subr.bf16.mxu1 %v9923_v49  ;;  %v9984_v49 = vld [vmem:[#allocation8 + $0x9a0] ss:$16 sps:$4 sm:$0xff]  }
 0x36a   :  { %7953 = vmatmul.mubr.bf16.gmra.mrb[36].mxu1 %v10739_v26  ;;  %7571 = vmatprep.mubr.bf16.mxu0 %v10791_v37  ;;  %v9941_v26 = vld [vmem:[#allocation8 + $0x8ac] ss:$16 sps:$4 sm:$0xff]  }
 0x36b   :  { %7544 = vmatpush1.bf16.msra.mxu0 %v9918_v39  ;;  %7995 = vmatprep.mubr.bf16.mxu1 %v10791_v37  ;;  %v9939_v37 = vld [vmem:[#allocation8 + $0x8a8] ss:$16 sps:$4 sm:$0xff]  }
 0x36c   :  { %7968 = vmatpush1.bf16.msra.mxu1 %v9921_v50  ;;  %7545 = vmatprep.subr.bf16.mxu0 %v9926_v57  ;;  %v9987_v39 = vld [vmem:[#allocation8 + $0x9a8] ss:$16 sps:$4 sm:$0xff]   ;;  %v9992_v50 = vld [vmem:[#allocation8 + $0x9c4] ss:$16 sps:$4 sm:$0xff]   ;;  %v9995_v57 = vld [vmem:[#allocation8 + $0x9cc] ss:$16 sps:$4 sm:$0xff]  }
 0x36d   :  { %7969 = vmatprep.subr.bf16.mxu1 %v9929_v21  ;;  %v9990_v21 = vld [vmem:[#allocation8 + $0x9c0] ss:$16 sps:$4 sm:$0xff]  }
 0x36f   :  { %7546 = vmatpush1.bf16.msra.mxu0 %v9924_v31  ;;  %v9993_v31 = vld [vmem:[#allocation8 + $0x9c8] ss:$16 sps:$4 sm:$0xff]  }
 0x370   :  { %7970 = vmatpush1.bf16.msra.mxu1 %v9927_v29  ;;  %7547 = vmatprep.subr.bf16.mxu0 %v9932_v6  ;;  %v9998_v29 = vld [vmem:[#allocation8 + $0x9e4] ss:$16 sps:$4 sm:$0xff]   ;;  %v10001_v6 = vld [vmem:[#allocation8 + $0x9ec] ss:$16 sps:$4 sm:$0xff]  }
 0x371   :  { %7971 = vmatprep.subr.bf16.mxu1 %v9935_v22  ;;  %v9996_v22 = vld [vmem:[#allocation8 + $0x9e0] ss:$16 sps:$4 sm:$0xff]  }
 0x373   :  { %7548 = vmatpush1.bf16.msra.mxu0 %v9930_v59  ;;  %v9999_v59 = vld [vmem:[#allocation8 + $0x9e8] ss:$16 sps:$4 sm:$0xff]  }
 0x374   :  { %7972 = vmatpush1.bf16.msra.mxu1 %v9933_v60  ;;  %7549 = vmatprep.subr.bf16.mxu0 %v9938_v12  ;;  %v10004_v60 = vld [vmem:[#allocation8 + $0xa04] ss:$16 sps:$4 sm:$0xff]   ;;  %v10007_v12 = vld [vmem:[#allocation8 + $0xa0c] ss:$16 sps:$4 sm:$0xff]  }
 0x375   :  { %7973 = vmatprep.subr.bf16.mxu1 %v9941_v26  ;;  %v10002_v26 = vld [vmem:[#allocation8 + $0xa00] ss:$16 sps:$4 sm:$0xff]  }
 0x377   :  { %7550 = vmatpush1.bf16.msra.mxu0 %v9936_v28  ;;  %v10005_v28 = vld [vmem:[#allocation8 + $0xa08] ss:$16 sps:$4 sm:$0xff]  }
 0x378   :  { %7974 = vmatpush1.bf16.msra.mxu1 %v9939_v37  ;;  %7551 = vmatprep.subr.bf16.mxu0 %v9944_v47  ;;  %v10010_v37 = vld [vmem:[#allocation8 + $0xa24] ss:$16 sps:$4 sm:$0xff]   ;;  %v10013_v47 = vld [vmem:[#allocation8 + $0xa2c] ss:$16 sps:$4 sm:$0xff]  }
 0x379   :  { %7975 = vmatprep.subr.bf16.mxu1 %v9947_v56  ;;  %v10008_v56 = vld [vmem:[#allocation8 + $0xa20] ss:$16 sps:$4 sm:$0xff]  }
 0x37b   :  { %7552 = vmatpush1.bf16.msra.mxu0 %v9942_v41  ;;  %v10011_v41 = vld [vmem:[#allocation8 + $0xa28] ss:$16 sps:$4 sm:$0xff]  }
 0x37c   :  { %7976 = vmatpush1.bf16.msra.mxu1 %v9945_v62  ;;  %7553 = vmatprep.subr.bf16.mxu0 %v9950_v2  ;;  %v10016_v62 = vld [vmem:[#allocation8 + $0xa44] ss:$16 sps:$4 sm:$0xff]   ;;  %v10019_v2 = vld [vmem:[#allocation8 + $0xa4c] ss:$16 sps:$4 sm:$0xff]  }
 0x37d   :  { %7977 = vmatprep.subr.bf16.mxu1 %v9953_v27  ;;  %v10014_v27 = vld [vmem:[#allocation8 + $0xa40] ss:$16 sps:$4 sm:$0xff]  }
 0x37f   :  { %7554 = vmatpush1.bf16.msra.mxu0 %v9948_v9  ;;  %v10017_v9 = vld [vmem:[#allocation8 + $0xa48] ss:$16 sps:$4 sm:$0xff]  }
 0x380   :  { %7978 = vmatpush1.bf16.msra.mxu1 %v9951_v11  ;;  %7555 = vmatprep.subr.bf16.mxu0 %v9956_v19  ;;  %v10022_v11 = vld [vmem:[#allocation8 + $0xa64] ss:$16 sps:$4 sm:$0xff]   ;;  %v10023_v19 = vld [vmem:[#allocation8 + $0xa68] ss:$16 sps:$4 sm:$0xff]  }
 0x381   :  { %7979 = vmatprep.subr.bf16.mxu1 %v9959_v20  ;;  %v10028_v20 = vld [vmem:[#allocation8 + $0xa84] ss:$16 sps:$4 sm:$0xff]  }
 0x383   :  { %7556 = vmatpush1.bf16.msra.mxu0 %v9954_v10  ;;  %v10031_v10 = vld [vmem:[#allocation8 + $0xa8c] ss:$16 sps:$4 sm:$0xff]  }
 0x384   :  { %7980 = vmatpush1.bf16.msra.mxu1 %v9957_v24  ;;  %7557 = vmatprep.subr.bf16.mxu0 %v9962_v25  ;;  %v10026_v24 = vld [vmem:[#allocation8 + $0xa80] ss:$16 sps:$4 sm:$0xff]   ;;  %v10029_v25 = vld [vmem:[#allocation8 + $0xa88] ss:$16 sps:$4 sm:$0xff]  }
 0x385   :  { %7981 = vmatprep.subr.bf16.mxu1 %v9965_v13  ;;  %v10034_v13 = vld [vmem:[#allocation8 + $0xaa4] ss:$16 sps:$4 sm:$0xff]  }
 0x387   :  { %7558 = vmatpush1.bf16.msra.mxu0 %v9960_v40  ;;  %v10032_v40 = vld [vmem:[#allocation8 + $0xaa0] ss:$16 sps:$4 sm:$0xff]  }
 0x388   :  { %7982 = vmatpush1.bf16.msra.mxu1 %v9963_v42  ;;  %7559 = vmatprep.subr.bf16.mxu0 %v9968_v55  ;;  %v10040_v42 = vld [vmem:[#allocation8 + $0xac4] ss:$16 sps:$4 sm:$0xff]   ;;  %v10043_v55 = vld [vmem:[#allocation8 + $0xacc] ss:$16 sps:$4 sm:$0xff]  }
 0x389   :  { %7983 = vmatprep.subr.bf16.mxu1 %v9971_v1  ;;  %v10038_v1 = vld [vmem:[#allocation8 + $0xac0] ss:$16 sps:$4 sm:$0xff]  }
 0x38b   :  { %7560 = vmatpush1.bf16.msra.mxu0 %v9966_v43  ;;  %v10041_v43 = vld [vmem:[#allocation8 + $0xac8] ss:$16 sps:$4 sm:$0xff]  }
 0x38c   :  { %7984 = vmatpush1.bf16.msra.mxu1 %v9969_v52  ;;  %7561 = vmatprep.subr.bf16.mxu0 %v9974_v34  ;;  %v10046_v52 = vld [vmem:[#allocation8 + $0xae4] ss:$16 sps:$4 sm:$0xff]   ;;  %v10049_v34 = vld [vmem:[#allocation8 + $0xaec] ss:$16 sps:$4 sm:$0xff]  }
 0x38d   :  { %7985 = vmatprep.subr.bf16.mxu1 %v9977_v8  ;;  %v10044_v8 = vld [vmem:[#allocation8 + $0xae0] ss:$16 sps:$4 sm:$0xff]  }
 0x38f   :  { %7562 = vmatpush1.bf16.msra.mxu0 %v9972_v54  ;;  %v10047_v54 = vld [vmem:[#allocation8 + $0xae8] ss:$16 sps:$4 sm:$0xff]  }
 0x390   :  { %7986 = vmatpush1.bf16.msra.mxu1 %v9975_v61  ;;  %7563 = vmatprep.subr.bf16.mxu0 %v9980_v53  ;;  %v10052_v61 = vld [vmem:[#allocation8 + $0xb04] ss:$16 sps:$4 sm:$0xff]   ;;  %v10055_v53 = vld [vmem:[#allocation8 + $0xb0c] ss:$16 sps:$4 sm:$0xff]  }
 0x391   :  { %7987 = vmatprep.subr.bf16.mxu1 %v9983_v36  ;;  %v10050_v36 = vld [vmem:[#allocation8 + $0xb00] ss:$16 sps:$4 sm:$0xff]  }
 0x393   :  { %7564 = vmatpush1.bf16.msra.mxu0 %v9978_v38  ;;  %v10053_v38 = vld [vmem:[#allocation8 + $0xb08] ss:$16 sps:$4 sm:$0xff]  }
 0x394   :  { %7988 = vmatpush1.bf16.msra.mxu1 %v9981_v16  ;;  %7565 = vmatprep.subr.bf16.mxu0 %v9986_v17  ;;  %v10058_v16 = vld [vmem:[#allocation8 + $0xb24] ss:$16 sps:$4 sm:$0xff]   ;;  %v10061_v17 = vld [vmem:[#allocation8 + $0xb2c] ss:$16 sps:$4 sm:$0xff]  }
 0x395   :  { %7989 = vmatprep.subr.bf16.mxu1 %v9989_v46  ;;  %v10056_v46 = vld [vmem:[#allocation8 + $0xb20] ss:$16 sps:$4 sm:$0xff]  }
 0x397   :  { %7566 = vmatpush1.bf16.msra.mxu0 %v9984_v49  ;;  %v10059_v49 = vld [vmem:[#allocation8 + $0xb28] ss:$16 sps:$4 sm:$0xff]  }
 0x398   :  { %7990 = vmatpush1.bf16.msra.mxu1 %v9987_v39  ;;  %7567 = vmatprep.subr.bf16.mxu0 %v9992_v50  ;;  %v10064_v39 = vld [vmem:[#allocation8 + $0xb44] ss:$16 sps:$4 sm:$0xff]   ;;  %v10067_v50 = vld [vmem:[#allocation8 + $0xb4c] ss:$16 sps:$4 sm:$0xff]  }
 0x399   :  { %7991 = vmatprep.subr.bf16.mxu1 %v9995_v57  ;;  %v10062_v57 = vld [vmem:[#allocation8 + $0xb40] ss:$16 sps:$4 sm:$0xff]  }
 0x39b   :  { %7568 = vmatpush1.bf16.msra.mxu0 %v9990_v21  ;;  %v10065_v21 = vld [vmem:[#allocation8 + $0xb48] ss:$16 sps:$4 sm:$0xff]  }
 0x39c   :  { %7992 = vmatpush1.bf16.msra.mxu1 %v9993_v31  ;;  %7569 = vmatprep.subr.bf16.mxu0 %v9998_v29  ;;  %v10070_v31 = vld [vmem:[#allocation8 + $0xb64] ss:$16 sps:$4 sm:$0xff]   ;;  %v10073_v29 = vld [vmem:[#allocation8 + $0xb6c] ss:$16 sps:$4 sm:$0xff]  }
 0x39d   :  { %7993 = vmatprep.subr.bf16.mxu1 %v10001_v6  ;;  %v10068_v6 = vld [vmem:[#allocation8 + $0xb60] ss:$16 sps:$4 sm:$0xff]  }
 0x39f   :  { %7570 = vmatpush1.bf16.msra.mxu0 %v9996_v22  ;;  %v10071_v22 = vld [vmem:[#allocation8 + $0xb68] ss:$16 sps:$4 sm:$0xff]  }
 0x3a0   :  { %7994 = vmatpush1.bf16.msra.mxu1 %v9999_v59  ;;  %7592 = vmatprep.subr.bf16.mxu0 %v10004_v60  ;;  %v10076_v59 = vld [vmem:[#allocation8 + $0xb84] ss:$16 sps:$4 sm:$0xff]   ;;  %v10079_v60 = vld [vmem:[#allocation8 + $0xb8c] ss:$16 sps:$4 sm:$0xff]  }
 0x3a1   :  { %8016 = vmatprep.subr.bf16.mxu1 %v10007_v12  ;;  %v10074_v12 = vld [vmem:[#allocation8 + $0xb80] ss:$16 sps:$4 sm:$0xff]  }
 0x3a2   :  { %7572 = vmatmul.mubr.bf16.vlgmr.msra.gmra.mrb[32].mxu0 %v10787_v58 }
 0x3a3   :  { %7996 = vmatmul.mubr.bf16.vlgmr.msra.gmra.mrb[32].mxu1 %v10787_v58  ;;  %7581 = vmatprep.mubr.bf16.mxu0 %v10807_v32  ;;  %v10025_v58 = vld [vmem:[#allocation8 + $0xa6c] ss:$16 sps:$4 sm:$0xff]  }
 0x3a4   :  { %7593 = vmatpush1.bf16.msra.mxu0 %v10002_v26  ;;  %8005 = vmatprep.mubr.bf16.mxu1 %v10807_v32  ;;  %v10020_v32 = vld [vmem:[#allocation8 + $0xa60] ss:$16 sps:$4 sm:$0xff]   ;;  %v10077_v26 = vld [vmem:[#allocation8 + $0xb88] ss:$16 sps:$4 sm:$0xff]  }
 0x3a5   :  { %8017 = vmatpush1.bf16.msra.mxu1 %v10005_v28  ;;  %7594 = vmatprep.subr.bf16.mxu0 %v10010_v37  ;;  %v10082_v28 = vld [vmem:[#allocation8 + $0xba4] ss:$16 sps:$4 sm:$0xff]   ;;  %v10085_v37 = vld [vmem:[#allocation8 + $0xbac] ss:$16 sps:$4 sm:$0xff]  }
 0x3a6   :  { %8018 = vmatprep.subr.bf16.mxu1 %v10013_v47  ;;  %v10080_v47 = vld [vmem:[#allocation8 + $0xba0] ss:$16 sps:$4 sm:$0xff]  }
 0x3a8   :  { %7595 = vmatpush1.bf16.msra.mxu0 %v10008_v56  ;;  %v10083_v56 = vld [vmem:[#allocation8 + $0xba8] ss:$16 sps:$4 sm:$0xff]  }
 0x3a9   :  { %8019 = vmatpush1.bf16.msra.mxu1 %v10011_v41  ;;  %7596 = vmatprep.subr.bf16.mxu0 %v10016_v62  ;;  %v10088_v41 = vld [vmem:[#allocation8 + $0xbc4] ss:$16 sps:$4 sm:$0xff]   ;;  %v10091_v62 = vld [vmem:[#allocation8 + $0xbcc] ss:$16 sps:$4 sm:$0xff]  }
 0x3aa   :  { %7582 = vmatmul.mubr.bf16.gmra.mrb[36].mxu0 %v10803_v30  ;;  %8020 = vmatprep.subr.bf16.mxu1 %v10019_v2  ;;  %v10086_v2 = vld [vmem:[#allocation8 + $0xbc0] ss:$16 sps:$4 sm:$0xff]  }
 0x3ab   :  { %8006 = vmatmul.mubr.bf16.gmra.mrb[36].mxu1 %v10803_v30  ;;  %7624 = vmatprep.mubr.bf16.mxu0 %v10793_v44  ;;  %v10037_v30 = vld [vmem:[#allocation8 + $0xaac] ss:$16 sps:$4 sm:$0xff]  }
 0x3ac   :  { %7597 = vmatpush1.bf16.msra.mxu0 %v10014_v27  ;;  %8048 = vmatprep.mubr.bf16.mxu1 %v10793_v44  ;;  %v10035_v44 = vld [vmem:[#allocation8 + $0xaa8] ss:$16 sps:$4 sm:$0xff]  }
 0x3ad   :  { %8021 = vmatpush1.bf16.msra.mxu1 %v10017_v9  ;;  %7598 = vmatprep.subr.bf16.mxu0 %v10022_v11  ;;  %v10089_v27 = vld [vmem:[#allocation8 + $0xbc8] ss:$16 sps:$4 sm:$0xff]   ;;  %v10094_v9 = vld [vmem:[#allocation8 + $0xbe4] ss:$16 sps:$4 sm:$0xff]   ;;  %v10097_v11 = vld [vmem:[#allocation8 + $0xbec] ss:$16 sps:$4 sm:$0xff]  }
 0x3ae   :  { %8022 = vmatprep.subr.bf16.mxu1 %v10025_v58  ;;  %v10092_v58 = vld [vmem:[#allocation8 + $0xbe0] ss:$16 sps:$4 sm:$0xff]  }
 0x3b0   :  { %7599 = vmatpush1.bf16.msra.mxu0 %v10020_v32  ;;  %v10095_v32 = vld [vmem:[#allocation8 + $0xbe8] ss:$16 sps:$4 sm:$0xff]  }
 0x3b1   :  { %8023 = vmatpush1.bf16.msra.mxu1 %v10023_v19  ;;  %7600 = vmatprep.subr.bf16.mxu0 %v10028_v20  ;;  %v10100_v19 = vld [vmem:[#allocation8 + $0xc04] ss:$16 sps:$4 sm:$0xff]   ;;  %v10103_v20 = vld [vmem:[#allocation8 + $0xc0c] ss:$16 sps:$4 sm:$0xff]  }
 0x3b2   :  { %8024 = vmatprep.subr.bf16.mxu1 %v10031_v10  ;;  %v10098_v10 = vld [vmem:[#allocation8 + $0xc00] ss:$16 sps:$4 sm:$0xff]  }
 0x3b4   :  { %7601 = vmatpush1.bf16.msra.mxu0 %v10026_v24  ;;  %v10101_v24 = vld [vmem:[#allocation8 + $0xc08] ss:$16 sps:$4 sm:$0xff]  }
 0x3b5   :  { %8025 = vmatpush1.bf16.msra.mxu1 %v10029_v25  ;;  %7602 = vmatprep.subr.bf16.mxu0 %v10034_v13  ;;  %v10106_v25 = vld [vmem:[#allocation8 + $0xc24] ss:$16 sps:$4 sm:$0xff]   ;;  %v10109_v13 = vld [vmem:[#allocation8 + $0xc2c] ss:$16 sps:$4 sm:$0xff]  }
 0x3b6   :  { %8026 = vmatprep.subr.bf16.mxu1 %v10037_v30  ;;  %v10104_v30 = vld [vmem:[#allocation8 + $0xc20] ss:$16 sps:$4 sm:$0xff]  }
 0x3b8   :  { %7603 = vmatpush1.bf16.msra.mxu0 %v10032_v40  ;;  %v10107_v40 = vld [vmem:[#allocation8 + $0xc28] ss:$16 sps:$4 sm:$0xff]  }
 0x3b9   :  { %8027 = vmatpush1.bf16.msra.mxu1 %v10035_v44  ;;  %7604 = vmatprep.subr.bf16.mxu0 %v10040_v42  ;;  %v10112_v44 = vld [vmem:[#allocation8 + $0xc44] ss:$16 sps:$4 sm:$0xff]   ;;  %v10115_v42 = vld [vmem:[#allocation8 + $0xc4c] ss:$16 sps:$4 sm:$0xff]  }
 0x3ba   :  { %8028 = vmatprep.subr.bf16.mxu1 %v10043_v55  ;;  %v10110_v55 = vld [vmem:[#allocation8 + $0xc40] ss:$16 sps:$4 sm:$0xff]  }
 0x3bc   :  { %7605 = vmatpush1.bf16.msra.mxu0 %v10038_v1  ;;  %v10113_v1 = vld [vmem:[#allocation8 + $0xc48] ss:$16 sps:$4 sm:$0xff]  }
 0x3bd   :  { %8029 = vmatpush1.bf16.msra.mxu1 %v10041_v43  ;;  %7606 = vmatprep.subr.bf16.mxu0 %v10046_v52  ;;  %v10118_v43 = vld [vmem:[#allocation8 + $0xc64] ss:$16 sps:$4 sm:$0xff]   ;;  %v10119_v52 = vld [vmem:[#allocation8 + $0xc68] ss:$16 sps:$4 sm:$0xff]  }
 0x3be   :  { %8030 = vmatprep.subr.bf16.mxu1 %v10049_v34  ;;  %v10124_v34 = vld [vmem:[#allocation8 + $0xc84] ss:$16 sps:$4 sm:$0xff]  }
 0x3c0   :  { %7607 = vmatpush1.bf16.msra.mxu0 %v10044_v8  ;;  %v10127_v8 = vld [vmem:[#allocation8 + $0xc8c] ss:$16 sps:$4 sm:$0xff]  }
 0x3c1   :  { %8031 = vmatpush1.bf16.msra.mxu1 %v10047_v54  ;;  %7608 = vmatprep.subr.bf16.mxu0 %v10052_v61  ;;  %v10122_v54 = vld [vmem:[#allocation8 + $0xc80] ss:$16 sps:$4 sm:$0xff]   ;;  %v10125_v61 = vld [vmem:[#allocation8 + $0xc88] ss:$16 sps:$4 sm:$0xff]  }
 0x3c2   :  { %8032 = vmatprep.subr.bf16.mxu1 %v10055_v53  ;;  %v10130_v53 = vld [vmem:[#allocation8 + $0xca4] ss:$16 sps:$4 sm:$0xff]  }
 0x3c4   :  { %7609 = vmatpush1.bf16.msra.mxu0 %v10050_v36  ;;  %v10128_v36 = vld [vmem:[#allocation8 + $0xca0] ss:$16 sps:$4 sm:$0xff]  }
 0x3c5   :  { %8033 = vmatpush1.bf16.msra.mxu1 %v10053_v38  ;;  %7610 = vmatprep.subr.bf16.mxu0 %v10058_v16  ;;  %v10136_v38 = vld [vmem:[#allocation8 + $0xcc4] ss:$16 sps:$4 sm:$0xff]   ;;  %v10139_v16 = vld [vmem:[#allocation8 + $0xccc] ss:$16 sps:$4 sm:$0xff]  }
 0x3c6   :  { %8034 = vmatprep.subr.bf16.mxu1 %v10061_v17  ;;  %v10134_v17 = vld [vmem:[#allocation8 + $0xcc0] ss:$16 sps:$4 sm:$0xff]  }
 0x3c8   :  { %7611 = vmatpush1.bf16.msra.mxu0 %v10056_v46  ;;  %v10137_v46 = vld [vmem:[#allocation8 + $0xcc8] ss:$16 sps:$4 sm:$0xff]  }
 0x3c9   :  { %8035 = vmatpush1.bf16.msra.mxu1 %v10059_v49  ;;  %7612 = vmatprep.subr.bf16.mxu0 %v10064_v39  ;;  %v10142_v49 = vld [vmem:[#allocation8 + $0xce4] ss:$16 sps:$4 sm:$0xff]   ;;  %v10145_v39 = vld [vmem:[#allocation8 + $0xcec] ss:$16 sps:$4 sm:$0xff]  }
 0x3ca   :  { %8036 = vmatprep.subr.bf16.mxu1 %v10067_v50  ;;  %v10140_v50 = vld [vmem:[#allocation8 + $0xce0] ss:$16 sps:$4 sm:$0xff]  }
 0x3cc   :  { %7613 = vmatpush1.bf16.msra.mxu0 %v10062_v57  ;;  %v10143_v57 = vld [vmem:[#allocation8 + $0xce8] ss:$16 sps:$4 sm:$0xff]  }
 0x3cd   :  { %8037 = vmatpush1.bf16.msra.mxu1 %v10065_v21  ;;  %7614 = vmatprep.subr.bf16.mxu0 %v10070_v31  ;;  %v10148_v21 = vld [vmem:[#allocation8 + $0xd04] ss:$16 sps:$4 sm:$0xff]   ;;  %v10151_v31 = vld [vmem:[#allocation8 + $0xd0c] ss:$16 sps:$4 sm:$0xff]  }
 0x3ce   :  { %8038 = vmatprep.subr.bf16.mxu1 %v10073_v29  ;;  %v10146_v29 = vld [vmem:[#allocation8 + $0xd00] ss:$16 sps:$4 sm:$0xff]  }
 0x3d0   :  { %7615 = vmatpush1.bf16.msra.mxu0 %v10068_v6  ;;  %v10149_v6 = vld [vmem:[#allocation8 + $0xd08] ss:$16 sps:$4 sm:$0xff]  }
 0x3d1   :  { %8039 = vmatpush1.bf16.msra.mxu1 %v10071_v22  ;;  %7616 = vmatprep.subr.bf16.mxu0 %v10076_v59  ;;  %v10154_v22 = vld [vmem:[#allocation8 + $0xd24] ss:$16 sps:$4 sm:$0xff]   ;;  %v10157_v59 = vld [vmem:[#allocation8 + $0xd2c] ss:$16 sps:$4 sm:$0xff]  }
 0x3d2   :  { %8040 = vmatprep.subr.bf16.mxu1 %v10079_v60  ;;  %v10152_v60 = vld [vmem:[#allocation8 + $0xd20] ss:$16 sps:$4 sm:$0xff]  }
 0x3d4   :  { %7617 = vmatpush1.bf16.msra.mxu0 %v10074_v12  ;;  %v10155_v12 = vld [vmem:[#allocation8 + $0xd28] ss:$16 sps:$4 sm:$0xff]  }
 0x3d5   :  { %8041 = vmatpush1.bf16.msra.mxu1 %v10077_v26  ;;  %7618 = vmatprep.subr.bf16.mxu0 %v10082_v28  ;;  %v10160_v26 = vld [vmem:[#allocation8 + $0xd44] ss:$16 sps:$4 sm:$0xff]   ;;  %v10163_v28 = vld [vmem:[#allocation8 + $0xd4c] ss:$16 sps:$4 sm:$0xff]  }
 0x3d6   :  { %8042 = vmatprep.subr.bf16.mxu1 %v10085_v37  ;;  %v10158_v37 = vld [vmem:[#allocation8 + $0xd40] ss:$16 sps:$4 sm:$0xff]  }
 0x3d8   :  { %7619 = vmatpush1.bf16.msra.mxu0 %v10080_v47  ;;  %v10161_v47 = vld [vmem:[#allocation8 + $0xd48] ss:$16 sps:$4 sm:$0xff]  }
 0x3d9   :  { %8043 = vmatpush1.bf16.msra.mxu1 %v10083_v56  ;;  %7620 = vmatprep.subr.bf16.mxu0 %v10088_v41  ;;  %v10166_v56 = vld [vmem:[#allocation8 + $0xd64] ss:$16 sps:$4 sm:$0xff]   ;;  %v10169_v41 = vld [vmem:[#allocation8 + $0xd6c] ss:$16 sps:$4 sm:$0xff]  }
 0x3da   :  { %8044 = vmatprep.subr.bf16.mxu1 %v10091_v62  ;;  %v10164_v62 = vld [vmem:[#allocation8 + $0xd60] ss:$16 sps:$4 sm:$0xff]  }
 0x3dc   :  { %7621 = vmatpush1.bf16.msra.mxu0 %v10086_v2  ;;  %v10167_v2 = vld [vmem:[#allocation8 + $0xd68] ss:$16 sps:$4 sm:$0xff]  }
 0x3dd   :  { %8045 = vmatpush1.bf16.msra.mxu1 %v10089_v27  ;;  %7622 = vmatprep.subr.bf16.mxu0 %v10094_v9  ;;  %v10172_v27 = vld [vmem:[#allocation8 + $0xd84] ss:$16 sps:$4 sm:$0xff]   ;;  %v10175_v9 = vld [vmem:[#allocation8 + $0xd8c] ss:$16 sps:$4 sm:$0xff]  }
 0x3de   :  { %8046 = vmatprep.subr.bf16.mxu1 %v10097_v11  ;;  %v10170_v11 = vld [vmem:[#allocation8 + $0xd80] ss:$16 sps:$4 sm:$0xff]  }
 0x3e0   :  { %7623 = vmatpush1.bf16.msra.mxu0 %v10092_v58  ;;  %v10173_v58 = vld [vmem:[#allocation8 + $0xd88] ss:$16 sps:$4 sm:$0xff]  }
 0x3e1   :  { %8047 = vmatpush1.bf16.msra.mxu1 %v10095_v32  ;;  %7645 = vmatprep.subr.bf16.mxu0 %v10100_v19  ;;  %v10178_v32 = vld [vmem:[#allocation8 + $0xda4] ss:$16 sps:$4 sm:$0xff]   ;;  %v10181_v19 = vld [vmem:[#allocation8 + $0xdac] ss:$16 sps:$4 sm:$0xff]  }
 0x3e2   :  { %8069 = vmatprep.subr.bf16.mxu1 %v10103_v20  ;;  %v10176_v20 = vld [vmem:[#allocation8 + $0xda0] ss:$16 sps:$4 sm:$0xff]  }
 0x3e3   :  { %7625 = vmatmul.mubr.bf16.vlgmr.msra.gmra.mrb[32].mxu0 %v10789_v35 }
 0x3e4   :  { %8049 = vmatmul.mubr.bf16.vlgmr.msra.gmra.mrb[32].mxu1 %v10789_v35  ;;  %7634 = vmatprep.mubr.bf16.mxu0 %v10809_v33  ;;  %v10121_v35 = vld [vmem:[#allocation8 + $0xc6c] ss:$16 sps:$4 sm:$0xff]  }
 0x3e5   :  { %7646 = vmatpush1.bf16.msra.mxu0 %v10098_v10  ;;  %8058 = vmatprep.mubr.bf16.mxu1 %v10809_v33  ;;  %v10116_v33 = vld [vmem:[#allocation8 + $0xc60] ss:$16 sps:$4 sm:$0xff]   ;;  %v10179_v10 = vld [vmem:[#allocation8 + $0xda8] ss:$16 sps:$4 sm:$0xff]  }
 0x3e6   :  { %8070 = vmatpush1.bf16.msra.mxu1 %v10101_v24  ;;  %7647 = vmatprep.subr.bf16.mxu0 %v10106_v25  ;;  %v10184_v24 = vld [vmem:[#allocation8 + $0xdc4] ss:$16 sps:$4 sm:$0xff]   ;;  %v10187_v25 = vld [vmem:[#allocation8 + $0xdcc] ss:$16 sps:$4 sm:$0xff]  }
 0x3e7   :  { %8071 = vmatprep.subr.bf16.mxu1 %v10109_v13  ;;  %v10182_v13 = vld [vmem:[#allocation8 + $0xdc0] ss:$16 sps:$4 sm:$0xff]  }
 0x3e9   :  { %7648 = vmatpush1.bf16.msra.mxu0 %v10104_v30  ;;  %v10185_v30 = vld [vmem:[#allocation8 + $0xdc8] ss:$16 sps:$4 sm:$0xff]  }
 0x3ea   :  { %8072 = vmatpush1.bf16.msra.mxu1 %v10107_v40  ;;  %7649 = vmatprep.subr.bf16.mxu0 %v10112_v44  ;;  %v10190_v40 = vld [vmem:[#allocation8 + $0xde4] ss:$16 sps:$4 sm:$0xff]   ;;  %v10193_v44 = vld [vmem:[#allocation8 + $0xdec] ss:$16 sps:$4 sm:$0xff]  }
 0x3eb   :  { %7635 = vmatmul.mubr.bf16.gmra.mrb[36].mxu0 %v10805_v3  ;;  %8073 = vmatprep.subr.bf16.mxu1 %v10115_v42  ;;  %v10188_v42 = vld [vmem:[#allocation8 + $0xde0] ss:$16 sps:$4 sm:$0xff]  }
 0x3ec   :  { %8059 = vmatmul.mubr.bf16.gmra.mrb[36].mxu1 %v10805_v3  ;;  %7677 = vmatprep.mubr.bf16.mxu0 %v10859_v15  ;;  %v10133_v3 = vld [vmem:[#allocation8 + $0xcac] ss:$16 sps:$4 sm:$0xff]  }
 0x3ed   :  { %7650 = vmatpush1.bf16.msra.mxu0 %v10110_v55  ;;  %8101 = vmatprep.mubr.bf16.mxu1 %v10859_v15  ;;  %v10131_v15 = vld [vmem:[#allocation8 + $0xca8] ss:$16 sps:$4 sm:$0xff]  }
 0x3ee   :  { %8074 = vmatpush1.bf16.msra.mxu1 %v10113_v1  ;;  %7651 = vmatprep.subr.bf16.mxu0 %v10118_v43  ;;  %v10191_v55 = vld [vmem:[#allocation8 + $0xde8] ss:$16 sps:$4 sm:$0xff]   ;;  %v10196_v1 = vld [vmem:[#allocation8 + $0xe04] ss:$16 sps:$4 sm:$0xff]   ;;  %v10199_v43 = vld [vmem:[#allocation8 + $0xe0c] ss:$16 sps:$4 sm:$0xff]  }
 0x3ef   :  { %8075 = vmatprep.subr.bf16.mxu1 %v10121_v35  ;;  %v10194_v35 = vld [vmem:[#allocation8 + $0xe00] ss:$16 sps:$4 sm:$0xff]  }
 0x3f1   :  { %7652 = vmatpush1.bf16.msra.mxu0 %v10116_v33  ;;  %v10197_v33 = vld [vmem:[#allocation8 + $0xe08] ss:$16 sps:$4 sm:$0xff]  }
 0x3f2   :  { %8076 = vmatpush1.bf16.msra.mxu1 %v10119_v52  ;;  %7653 = vmatprep.subr.bf16.mxu0 %v10124_v34  ;;  %v10202_v52 = vld [vmem:[#allocation8 + $0xe24] ss:$16 sps:$4 sm:$0xff]   ;;  %v10205_v34 = vld [vmem:[#allocation8 + $0xe2c] ss:$16 sps:$4 sm:$0xff]  }
 0x3f3   :  { %8077 = vmatprep.subr.bf16.mxu1 %v10127_v8  ;;  %v10200_v8 = vld [vmem:[#allocation8 + $0xe20] ss:$16 sps:$4 sm:$0xff]  }
 0x3f5   :  { %7654 = vmatpush1.bf16.msra.mxu0 %v10122_v54  ;;  %v10203_v54 = vld [vmem:[#allocation8 + $0xe28] ss:$16 sps:$4 sm:$0xff]  }
 0x3f6   :  { %8078 = vmatpush1.bf16.msra.mxu1 %v10125_v61  ;;  %7655 = vmatprep.subr.bf16.mxu0 %v10130_v53  ;;  %v10208_v61 = vld [vmem:[#allocation8 + $0xe44] ss:$16 sps:$4 sm:$0xff]   ;;  %v10211_v53 = vld [vmem:[#allocation8 + $0xe4c] ss:$16 sps:$4 sm:$0xff]  }
 0x3f7   :  { %8079 = vmatprep.subr.bf16.mxu1 %v10133_v3  ;;  %v10206_v3 = vld [vmem:[#allocation8 + $0xe40] ss:$16 sps:$4 sm:$0xff]  }
 0x3f9   :  { %7656 = vmatpush1.bf16.msra.mxu0 %v10128_v36  ;;  %v10209_v36 = vld [vmem:[#allocation8 + $0xe48] ss:$16 sps:$4 sm:$0xff]  }
 0x3fa   :  { %8080 = vmatpush1.bf16.msra.mxu1 %v10131_v15  ;;  %7657 = vmatprep.subr.bf16.mxu0 %v10136_v38  ;;  %v10214_v15 = vld [vmem:[#allocation8 + $0xe64] ss:$16 sps:$4 sm:$0xff]   ;;  %v10215_v38 = vld [vmem:[#allocation8 + $0xe68] ss:$16 sps:$4 sm:$0xff]  }
 0x3fb   :  { %8081 = vmatprep.subr.bf16.mxu1 %v10139_v16  ;;  %v10220_v16 = vld [vmem:[#allocation8 + $0xe84] ss:$16 sps:$4 sm:$0xff]  }
 0x3fd   :  { %7658 = vmatpush1.bf16.msra.mxu0 %v10134_v17  ;;  %v10223_v17 = vld [vmem:[#allocation8 + $0xe8c] ss:$16 sps:$4 sm:$0xff]  }
 0x3fe   :  { %8082 = vmatpush1.bf16.msra.mxu1 %v10137_v46  ;;  %7659 = vmatprep.subr.bf16.mxu0 %v10142_v49  ;;  %v10218_v46 = vld [vmem:[#allocation8 + $0xe80] ss:$16 sps:$4 sm:$0xff]   ;;  %v10221_v49 = vld [vmem:[#allocation8 + $0xe88] ss:$16 sps:$4 sm:$0xff]  }
 0x3ff   :  { %8083 = vmatprep.subr.bf16.mxu1 %v10145_v39  ;;  %v10226_v39 = vld [vmem:[#allocation8 + $0xea4] ss:$16 sps:$4 sm:$0xff]  }
 0x401   :  { %7660 = vmatpush1.bf16.msra.mxu0 %v10140_v50  ;;  %v10224_v50 = vld [vmem:[#allocation8 + $0xea0] ss:$16 sps:$4 sm:$0xff]  }
 0x402   :  { %8084 = vmatpush1.bf16.msra.mxu1 %v10143_v57  ;;  %7661 = vmatprep.subr.bf16.mxu0 %v10148_v21  ;;  %v10232_v57 = vld [vmem:[#allocation8 + $0xec4] ss:$16 sps:$4 sm:$0xff]   ;;  %v10235_v21 = vld [vmem:[#allocation8 + $0xecc] ss:$16 sps:$4 sm:$0xff]  }
 0x403   :  { %8085 = vmatprep.subr.bf16.mxu1 %v10151_v31  ;;  %v10230_v31 = vld [vmem:[#allocation8 + $0xec0] ss:$16 sps:$4 sm:$0xff]  }
 0x405   :  { %7662 = vmatpush1.bf16.msra.mxu0 %v10146_v29  ;;  %v10233_v29 = vld [vmem:[#allocation8 + $0xec8] ss:$16 sps:$4 sm:$0xff]  }
 0x406   :  { %8086 = vmatpush1.bf16.msra.mxu1 %v10149_v6  ;;  %7663 = vmatprep.subr.bf16.mxu0 %v10154_v22  ;;  %v10238_v6 = vld [vmem:[#allocation8 + $0xee4] ss:$16 sps:$4 sm:$0xff]   ;;  %v10241_v22 = vld [vmem:[#allocation8 + $0xeec] ss:$16 sps:$4 sm:$0xff]  }
 0x407   :  { %8087 = vmatprep.subr.bf16.mxu1 %v10157_v59  ;;  %v10236_v59 = vld [vmem:[#allocation8 + $0xee0] ss:$16 sps:$4 sm:$0xff]  }
 0x409   :  { %7664 = vmatpush1.bf16.msra.mxu0 %v10152_v60  ;;  %v10239_v60 = vld [vmem:[#allocation8 + $0xee8] ss:$16 sps:$4 sm:$0xff]  }
 0x40a   :  { %8088 = vmatpush1.bf16.msra.mxu1 %v10155_v12  ;;  %7665 = vmatprep.subr.bf16.mxu0 %v10160_v26  ;;  %v10244_v12 = vld [vmem:[#allocation8 + $0xf04] ss:$16 sps:$4 sm:$0xff]   ;;  %v10247_v26 = vld [vmem:[#allocation8 + $0xf0c] ss:$16 sps:$4 sm:$0xff]  }
 0x40b   :  { %8089 = vmatprep.subr.bf16.mxu1 %v10163_v28  ;;  %v10242_v28 = vld [vmem:[#allocation8 + $0xf00] ss:$16 sps:$4 sm:$0xff]  }
 0x40d   :  { %7666 = vmatpush1.bf16.msra.mxu0 %v10158_v37  ;;  %v10245_v37 = vld [vmem:[#allocation8 + $0xf08] ss:$16 sps:$4 sm:$0xff]  }
 0x40e   :  { %8090 = vmatpush1.bf16.msra.mxu1 %v10161_v47  ;;  %7667 = vmatprep.subr.bf16.mxu0 %v10166_v56  ;;  %v10250_v47 = vld [vmem:[#allocation8 + $0xf24] ss:$16 sps:$4 sm:$0xff]   ;;  %v10253_v56 = vld [vmem:[#allocation8 + $0xf2c] ss:$16 sps:$4 sm:$0xff]  }
 0x40f   :  { %8091 = vmatprep.subr.bf16.mxu1 %v10169_v41  ;;  %v10248_v41 = vld [vmem:[#allocation8 + $0xf20] ss:$16 sps:$4 sm:$0xff]  }
 0x411   :  { %7668 = vmatpush1.bf16.msra.mxu0 %v10164_v62  ;;  %v10251_v62 = vld [vmem:[#allocation8 + $0xf28] ss:$16 sps:$4 sm:$0xff]  }
 0x412   :  { %8092 = vmatpush1.bf16.msra.mxu1 %v10167_v2  ;;  %7669 = vmatprep.subr.bf16.mxu0 %v10172_v27  ;;  %v10256_v2 = vld [vmem:[#allocation8 + $0xf44] ss:$16 sps:$4 sm:$0xff]   ;;  %v10259_v27 = vld [vmem:[#allocation8 + $0xf4c] ss:$16 sps:$4 sm:$0xff]  }
 0x413   :  { %8093 = vmatprep.subr.bf16.mxu1 %v10175_v9  ;;  %v10254_v9 = vld [vmem:[#allocation8 + $0xf40] ss:$16 sps:$4 sm:$0xff]  }
 0x415   :  { %7670 = vmatpush1.bf16.msra.mxu0 %v10170_v11  ;;  %v10257_v11 = vld [vmem:[#allocation8 + $0xf48] ss:$16 sps:$4 sm:$0xff]  }
 0x416   :  { %8094 = vmatpush1.bf16.msra.mxu1 %v10173_v58  ;;  %7671 = vmatprep.subr.bf16.mxu0 %v10178_v32  ;;  %v10262_v58 = vld [vmem:[#allocation8 + $0xf64] ss:$16 sps:$4 sm:$0xff]   ;;  %v10265_v32 = vld [vmem:[#allocation8 + $0xf6c] ss:$16 sps:$4 sm:$0xff]  }
 0x417   :  { %8095 = vmatprep.subr.bf16.mxu1 %v10181_v19  ;;  %v10260_v19 = vld [vmem:[#allocation8 + $0xf60] ss:$16 sps:$4 sm:$0xff]  }
 0x419   :  { %7672 = vmatpush1.bf16.msra.mxu0 %v10176_v20  ;;  %v10263_v20 = vld [vmem:[#allocation8 + $0xf68] ss:$16 sps:$4 sm:$0xff]  }
 0x41a   :  { %8096 = vmatpush1.bf16.msra.mxu1 %v10179_v10  ;;  %7673 = vmatprep.subr.bf16.mxu0 %v10184_v24  ;;  %v10268_v10 = vld [vmem:[#allocation8 + $0xf84] ss:$16 sps:$4 sm:$0xff]   ;;  %v10271_v24 = vld [vmem:[#allocation8 + $0xf8c] ss:$16 sps:$4 sm:$0xff]  }
 0x41b   :  { %8097 = vmatprep.subr.bf16.mxu1 %v10187_v25  ;;  %v10266_v25 = vld [vmem:[#allocation8 + $0xf80] ss:$16 sps:$4 sm:$0xff]  }
 0x41d   :  { %7674 = vmatpush1.bf16.msra.mxu0 %v10182_v13  ;;  %v10269_v13 = vld [vmem:[#allocation8 + $0xf88] ss:$16 sps:$4 sm:$0xff]  }
 0x41e   :  { %8098 = vmatpush1.bf16.msra.mxu1 %v10185_v30  ;;  %7675 = vmatprep.subr.bf16.mxu0 %v10190_v40  ;;  %v10274_v30 = vld [vmem:[#allocation8 + $0xfa4] ss:$16 sps:$4 sm:$0xff]   ;;  %v10277_v40 = vld [vmem:[#allocation8 + $0xfac] ss:$16 sps:$4 sm:$0xff]  }
 0x41f   :  { %8099 = vmatprep.subr.bf16.mxu1 %v10193_v44  ;;  %v10272_v44 = vld [vmem:[#allocation8 + $0xfa0] ss:$16 sps:$4 sm:$0xff]  }
 0x421   :  { %7676 = vmatpush1.bf16.msra.mxu0 %v10188_v42  ;;  %v10275_v42 = vld [vmem:[#allocation8 + $0xfa8] ss:$16 sps:$4 sm:$0xff]  }
 0x422   :  { %8100 = vmatpush1.bf16.msra.mxu1 %v10191_v55  ;;  %7698 = vmatprep.subr.bf16.mxu0 %v10196_v1  ;;  %v10280_v55 = vld [vmem:[#allocation8 + $0xfc4] ss:$16 sps:$4 sm:$0xff]   ;;  %v10283_v1 = vld [vmem:[#allocation8 + $0xfcc] ss:$16 sps:$4 sm:$0xff]  }
 0x423   :  { %8122 = vmatprep.subr.bf16.mxu1 %v10199_v43  ;;  %v10278_v43 = vld [vmem:[#allocation8 + $0xfc0] ss:$16 sps:$4 sm:$0xff]  }
 0x424   :  { %7678 = vmatmul.mubr.bf16.vlgmr.msra.gmra.mrb[32].mxu0 %v10855_v18 }
 0x425   :  { %8102 = vmatmul.mubr.bf16.vlgmr.msra.gmra.mrb[32].mxu1 %v10855_v18  ;;  %7687 = vmatprep.mubr.bf16.mxu0 %v10875_v45  ;;  %v10217_v18 = vld [vmem:[#allocation8 + $0xe6c] ss:$16 sps:$4 sm:$0xff]  }
 0x426   :  { %7699 = vmatpush1.bf16.msra.mxu0 %v10194_v35  ;;  %8111 = vmatprep.mubr.bf16.mxu1 %v10875_v45  ;;  %v10212_v45 = vld [vmem:[#allocation8 + $0xe60] ss:$16 sps:$4 sm:$0xff]   ;;  %v10281_v35 = vld [vmem:[#allocation8 + $0xfc8] ss:$16 sps:$4 sm:$0xff]  }
 0x427   :  { %8123 = vmatpush1.bf16.msra.mxu1 %v10197_v33  ;;  %7700 = vmatprep.subr.bf16.mxu0 %v10202_v52  ;;  %v10286_v33 = vld [vmem:[#allocation8 + $0xfe4] ss:$16 sps:$4 sm:$0xff]   ;;  %v10289_v52 = vld [vmem:[#allocation8 + $0xfec] ss:$16 sps:$4 sm:$0xff]  }
 0x428   :  { %8124 = vmatprep.subr.bf16.mxu1 %v10205_v34  ;;  %v10284_v34 = vld [vmem:[#allocation8 + $0xfe0] ss:$16 sps:$4 sm:$0xff]  }
 0x42a   :  { %7701 = vmatpush1.bf16.msra.mxu0 %v10200_v8  ;;  %v10287_v8 = vld [vmem:[#allocation8 + $0xfe8] ss:$16 sps:$4 sm:$0xff]  }
 0x42b   :  { %8125 = vmatpush1.bf16.msra.mxu1 %v10203_v54  ;;  %7702 = vmatprep.subr.bf16.mxu0 %v10208_v61  ;;  %v4745_v54 = vld [vmem:[#allocation10] sm:$0xf] }
 0x42c   :  { %7688 = vmatmul.mubr.bf16.gmra.mrb[36].mxu0 %v10871_v51  ;;  %8126 = vmatprep.subr.bf16.mxu1 %v10211_v53  ;;  %v4750_v61 = vrot.slane %v4745_v54, %v10567_v63  ;;  %v4758_v53 = vrot.slane %v4745_v54, %v10573_v4 }
 0x42d   :  { %8112 = vmatmul.mubr.bf16.gmra.mrb[36].mxu1 %v10871_v51  ;;  %7730 = vmatprep.mubr.bf16.mxu0 %v10861_v14  ;;  %v10229_v51 = vld [vmem:[#allocation8 + $0xeac] ss:$16 sps:$4 sm:$0xff]  }
 0x42e   :  { %7703 = vmatpush1.bf16.msra.mxu0 %v10206_v3  ;;  %8154 = vmatprep.mubr.bf16.mxu1 %v10861_v14  ;;  %v10227_v14 = vld [vmem:[#allocation8 + $0xea8] ss:$16 sps:$4 sm:$0xff]   ;;  %v4754_v3 = vrot.slane %v4745_v54, %v10576_v5 }
 0x42f   :  { %8127 = vmatpush1.bf16.msra.mxu1 %v10209_v36  ;;  %7704 = vmatprep.subr.bf16.mxu0 %v10214_v15  ;;  %v4762_v36 = vrot.slane %v4745_v54, %v10579_v7 }
 0x430   :  { %8128 = vmatprep.subr.bf16.mxu1 %v10217_v18 }
 0x432   :  { %7705 = vmatpush1.bf16.msra.mxu0 %v10212_v45 }
 0x433   :  { %8129 = vmatpush1.bf16.msra.mxu1 %v10215_v38  ;;  %7706 = vmatprep.subr.bf16.mxu0 %v10220_v16 }
 0x434   :  { %8130 = vmatprep.subr.bf16.mxu1 %v10223_v17 }
 0x436   :  { %7707 = vmatpush1.bf16.msra.mxu0 %v10218_v46 }
 0x437   :  { %8131 = vmatpush1.bf16.msra.mxu1 %v10221_v49  ;;  %7708 = vmatprep.subr.bf16.mxu0 %v10226_v39 }
 0x438   :  { %8132 = vmatprep.subr.bf16.mxu1 %v10229_v51 }
 0x43a   :  { %7709 = vmatpush1.bf16.msra.mxu0 %v10224_v50 }
 0x43b   :  { %8133 = vmatpush1.bf16.msra.mxu1 %v10227_v14  ;;  %7710 = vmatprep.subr.bf16.mxu0 %v10232_v57 }
 0x43c   :  { %8134 = vmatprep.subr.bf16.mxu1 %v10235_v21 }
 0x43e   :  { %7711 = vmatpush1.bf16.msra.mxu0 %v10230_v31 }
 0x43f   :  { %8135 = vmatpush1.bf16.msra.mxu1 %v10233_v29  ;;  %7712 = vmatprep.subr.bf16.mxu0 %v10238_v6 }
 0x440   :  { %8136 = vmatprep.subr.bf16.mxu1 %v10241_v22 }
 0x442   :  { %7713 = vmatpush1.bf16.msra.mxu0 %v10236_v59 }
 0x443   :  { %8137 = vmatpush1.bf16.msra.mxu1 %v10239_v60  ;;  %7714 = vmatprep.subr.bf16.mxu0 %v10244_v12 }
 0x444   :  { %8138 = vmatprep.subr.bf16.mxu1 %v10247_v26 }
 0x446   :  { %7715 = vmatpush1.bf16.msra.mxu0 %v10242_v28 }
 0x447   :  { %8139 = vmatpush1.bf16.msra.mxu1 %v10245_v37  ;;  %7716 = vmatprep.subr.bf16.mxu0 %v10250_v47 }
 0x448   :  { %8140 = vmatprep.subr.bf16.mxu1 %v10253_v56 }
 0x44a   :  { %7717 = vmatpush1.bf16.msra.mxu0 %v10248_v41 }
 0x44b   :  { %8141 = vmatpush1.bf16.msra.mxu1 %v10251_v62  ;;  %7718 = vmatprep.subr.bf16.mxu0 %v10256_v2 }
 0x44c   :  { %8142 = vmatprep.subr.bf16.mxu1 %v10259_v27 }
 0x44e   :  { %7719 = vmatpush1.bf16.msra.mxu0 %v10254_v9 }
 0x44f   :  { %8143 = vmatpush1.bf16.msra.mxu1 %v10257_v11  ;;  %7720 = vmatprep.subr.bf16.mxu0 %v10262_v58 }
 0x450   :  { %8144 = vmatprep.subr.bf16.mxu1 %v10265_v32 }
 0x452   :  { %7721 = vmatpush1.bf16.msra.mxu0 %v10260_v19 }
 0x453   :  { %8145 = vmatpush1.bf16.msra.mxu1 %v10263_v20  ;;  %7722 = vmatprep.subr.bf16.mxu0 %v10268_v10 }
 0x454   :  { %8146 = vmatprep.subr.bf16.mxu1 %v10271_v24 }
 0x456   :  { %7723 = vmatpush1.bf16.msra.mxu0 %v10266_v25 }
 0x457   :  { %8147 = vmatpush1.bf16.msra.mxu1 %v10269_v13  ;;  %7724 = vmatprep.subr.bf16.mxu0 %v10274_v30 }
 0x458   :  { %8148 = vmatprep.subr.bf16.mxu1 %v10277_v40 }
 0x45a   :  { %7725 = vmatpush1.bf16.msra.mxu0 %v10272_v44 }
 0x45b   :  { %8149 = vmatpush1.bf16.msra.mxu1 %v10275_v42  ;;  %7726 = vmatprep.subr.bf16.mxu0 %v10280_v55 }
 0x45c   :  { %8150 = vmatprep.subr.bf16.mxu1 %v10283_v1 }
 0x45e   :  { %7727 = vmatpush1.bf16.msra.mxu0 %v10278_v43 }
 0x45f   :  { %8151 = vmatpush1.bf16.msra.mxu1 %v10281_v35  ;;  %7728 = vmatprep.subr.bf16.mxu0 %v10286_v33 }
 0x460   :  { %8152 = vmatprep.subr.bf16.mxu1 %v10289_v52 }
 0x462   :  { %7729 = vmatpush1.bf16.msra.mxu0 %v10284_v34 }
 0x463   :  { %8153 = vmatpush1.bf16.msra.mxu1 %v10287_v8 }
 0x465   :  { %7731 = vmatmul.mubr.bf16.vlgmr.msra.gmra.mrb[32].mxu0 %v10857_v0 }
 0x466   :  { %8155 = vmatmul.mubr.bf16.vlgmr.msra.gmra.mrb[32].mxu1 %v10857_v0  ;;  %7740 = vmatprep.mubr.bf16.mxu0 %v10877_v48 }
 0x467   :  { %8164 = vmatprep.mubr.bf16.mxu1 %v10877_v48 }
 0x46d   :  { %7741 = vmatmul.mubr.bf16.gmra.mrb[36].mxu0 %v10873_v23 }
 0x46e   :  { %8165 = vmatmul.mubr.bf16.gmra.mrb[36].mxu1 %v10873_v23 }
 0x538   :  { %v7732_v15 = vpop.f32.mrb[32].mxu0 }
 0x539   :  { %v9306_v18 = vadd.f32 %v7732_v15, %v4750_v61  ;;  %v8156_v0 = vpop.f32.mrb[32].mxu1  ;;  %v7734_v45 = vpop.f32.mrb[33].mxu0 }
 0x53a   :  { %v9314_v38 = vadd.f32 %v8156_v0, %v4758_v53  ;;  %v9307_v16 = vadd.f32 %v7734_v45, %v4754_v3  ;;  %v8158_v48 = vpop.f32.mrb[33].mxu1  ;;  %v7736_v17 = vpop.f32.mrb[34].mxu0 }
 0x53b   :  { %8175 = vst [vmem:[#allocation11] sm:$0xff] %v9306_v18  ;;  %v9315_v46 = vadd.f32 %v8158_v48, %v4762_v36  ;;  %v9308_v23 = vadd.f32 %v7736_v17, %v4750_v61  ;;  %v8160_v49 = vpop.f32.mrb[34].mxu1  ;;  %v7738_v39 = vpop.f32.mrb[35].mxu0 }
 0x53c   :  { %8177 = vst [vmem:[#allocation11 + $0x10] sm:$0xff] %v9314_v38  ;;  %8176 = vst [vmem:[#allocation11 + $0x8] sm:$0xff] %v9307_v16  ;;  %v9316_v63 = vadd.f32 %v8160_v49, %v4758_v53  ;;  %v9309_v4 = vadd.f32 %v7738_v39, %v4754_v3  ;;  %v8162_v5 = vpop.f32.mrb[35].mxu1 }
 0x53d   :  { %8178 = vst [vmem:[#allocation11 + $0x18] sm:$0xff] %v9315_v46  ;;  %8179 = vst [vmem:[#allocation11 + $0x20] sm:$0xff] %v9308_v23  ;;  %v9317_v7 = vadd.f32 %v8162_v5, %v4762_v36 }
 0x53e   :  { %8181 = vst [vmem:[#allocation11 + $0x30] sm:$0xff] %v9316_v63  ;;  %8180 = vst [vmem:[#allocation11 + $0x28] sm:$0xff] %v9309_v4 }
 0x53f   :  { %8182 = vst [vmem:[#allocation11 + $0x38] sm:$0xff] %v9317_v7 }
 0x540   :  { %v7742_v51 = vpop.f32.mrb[36].mxu0 }
 0x541   :  { %v9310_v50 = vadd.f32 %v7742_v51, %v4750_v61  ;;  %v8166_v14 = vpop.f32.mrb[36].mxu1  ;;  %v7744_v57 = vpop.f32.mrb[37].mxu0 }
 0x542   :  { %v9318_v21 = vadd.f32 %v8166_v14, %v4758_v53  ;;  %v9311_v31 = vadd.f32 %v7744_v57, %v4754_v3  ;;  %v8168_v29 = vpop.f32.mrb[37].mxu1  ;;  %v7746_v6 = vpop.f32.mrb[38].mxu0 }
 0x543   :  { %8183 = vst [vmem:[#allocation11 + $0x40] sm:$0xff] %v9310_v50  ;;  %v9319_v22 = vadd.f32 %v8168_v29, %v4762_v36  ;;  %v9312_v59 = vadd.f32 %v7746_v6, %v4750_v61  ;;  %v8170_v60 = vpop.f32.mrb[38].mxu1  ;;  %v7748_v12 = vpop.f32.mrb[39].mxu0 }
 0x544   :  { %8185 = vst [vmem:[#allocation11 + $0x50] sm:$0xff] %v9318_v21  ;;  %8184 = vst [vmem:[#allocation11 + $0x48] sm:$0xff] %v9311_v31  ;;  %v9320_v26 = vadd.f32 %v8170_v60, %v4758_v53  ;;  %v9313_v28 = vadd.f32 %v7748_v12, %v4754_v3  ;;  %v8172_v37 = vpop.f32.mrb[39].mxu1 }
 0x545   :  { %8186 = vst [vmem:[#allocation11 + $0x58] sm:$0xff] %v9319_v22  ;;  %8187 = vst [vmem:[#allocation11 + $0x60] sm:$0xff] %v9312_v59  ;;  %v9321_v47 = vadd.f32 %v8172_v37, %v4762_v36 }
 0x546   :  { %8189 = vst [vmem:[#allocation11 + $0x70] sm:$0xff] %v9320_v26  ;;  %8188 = vst [vmem:[#allocation11 + $0x68] sm:$0xff] %v9313_v28 }
 0x547   :  { %8190 = vst [vmem:[#allocation11 + $0x78] sm:$0xff] %v9321_v47 }
 0x548   :  { %10428 = shalt.err (!%p10425_p2)
}
 0x549   :  { %s10429_s30 = scalar_lea.hbm %s10938_s5, 2048 }
 0x54a   :  { %p10430_p3 = scmp.ne.s32.totalorder %s10938_s5, %s10429_s30  ;;  %p10433_p4 = scmp.lt.u32.totalorder %s10429_s30, %s10938_s5 }
 0x54c   :  { %p10435_p5 = pnand %p10433_p4, %p10430_p3 }
 0x54e   :  { %10438 = shalt.err (!%p10435_p5)
}
 0x54f   :  { %s10457_s11 = smov 512   ;;  %s10458_s12 = smov 32  }
 0x550   :  { %8202 = dma.vmem_to_hbm [thread:$0]  %s8197_s27, 2048, %s10938_s5, [#allocation4], %s10457_s11, %s10457_s11, %s10458_s12  }
 0x551   :  { %10445 = dma.done.wait [#allocation4], 2048  }
 0x552   :  { %10446 = vsyncadd [#allocation4], 4294965248 }
 0x553   :  { %8206 = vsyncpa [#allocation3], 1 }
 0x554   :  { %8207 = vsyncpa [#allocation6], 1 }
 0x555   :  { %8208 = vsyncpa [#allocation9], 1 }
 0x556   :  { %8209 = vsyncpa [#allocation4], 1 }

</bundles_post_ra>
